<compile_context>
chip_gen: v5e
topology: v5e:2x2
jax: 0.10.0
libtpu: 0.0.40
codegen_flags: <defaults>
</compile_context>

<pallas_src>
import functools

import jax
import jax.numpy as jnp
from jax.experimental import pallas as pl
from jax.experimental.pallas import tpu as pltpu

# ----------------------------- model config ---------------------------------
N_STATES = 16
H_DIM = 64
EXP_FACTOR = 2
N_LAYERS = 6
RS_EPS = 1e-5                      # RSNorm eps (clamp on sqrt(var))
SIMBA_EPS = 1e-5                   # nn.RMSNorm(eps=1e-5) inside SimBaLayer
FINAL_EPS = 1.1920929e-07          # nn.RMSNorm default eps = finfo(float32).eps

LANE = 128
DEFAULT_BATCH_TILE = 1024          # sweep 1024-2048 for very large batches


def _relu_squared(x):
    # sign(x) * relu(x)^2 == relu(x)^2 ; one mul instead of sign/pow.
    r = jnp.maximum(x, 0.0)
    return r * r


def _rmsnorm_fm(x, w, eps):
    # feature-major: x is (F, TB), w is (F, 1); normalize over features (axis 0).
    return x * jax.lax.rsqrt(jnp.mean(x * x, axis=0, keepdims=True) + eps) * w


def _rmsnorm_bm(x, w, eps):
    # batch-major (pure-JAX reference): normalize over the last axis.
    return x * jax.lax.rsqrt(jnp.mean(x * x, axis=-1, keepdims=True) + eps) * w


# ------------------------------- kernel --------------------------------------
def critic_kernel(
    x_ref,          # (TB, n_states)   batch-major input tile (f32)
    pw_ref,         # (h, n_states)    RSNorm folded in; mm dtype
    pb_ref,         # (h, 1)           f32
    rms_w_ref,      # (L, h, 1)        f32
    w1_ref,         # (L, 2h, h)       mm dtype
    b1_ref,         # (L, 2h, 1)       f32
    w2_ref,         # (L, h, 2h)       mm dtype
    b2_ref,         # (L, h, 1)        f32
    ln_w_ref,       # (h, 1)           f32
    cw1_ref,        # (h, h)           mm dtype
    cb1_ref,        # (h, 1)           f32
    cw2_ref,        # (1, h)           mm dtype
    cb2_ref,        # (1, 1)           f32
    out_ref,        # (1, TB)          lane-dense output row
):
    def dot(w, a):
        # Weights already in the MXU dtype (cast once in the wrapper); only the f32
        # activation is cast per matmul.  f32 accumulation on the MXU.
        return jnp.dot(w, a.astype(w.dtype), preferred_element_type=jnp.float32)

    pw = pw_ref[...]
    # First layer: contract the last dim of both operands (A @ B^T) so the batch-major
    # input needs no wrapper-side transpose; output is feature-major (h, TB).
    h = jax.lax.dot_general(
        pw, x_ref[...].astype(pw.dtype),
        dimension_numbers=(((1,), (1,)), ((), ())),
        preferred_element_type=jnp.float32) + pb_ref[...]

    # ---- SimBa residual blocks (statically unrolled) ------------------------
    for l in range(N_LAYERS):
        y = _rmsnorm_fm(h, rms_w_ref[l], SIMBA_EPS)
        y = dot(w1_ref[l], y) + b1_ref[l]                  # (2h, TB)
        y = _relu_squared(y)
        y = dot(w2_ref[l], y) + b2_ref[l]                  # (h, TB)
        # Dropout(p=0.0) is identity
        h = h + y

    # ---- final RMSNorm -------------------------------------------------------
    h = _rmsnorm_fm(h, ln_w_ref[...], FINAL_EPS)

    # ---- critic head: Linear -> ReluSquared -> Linear(h -> 1) ----------------
    v = dot(cw1_ref[...], h) + cb1_ref[...]                # (h, TB)
    v = _relu_squared(v)
    v = dot(cw2_ref[...], v) + cb2_ref[...]                # (1, TB)

    out_ref[...] = v.astype(out_ref.dtype)


def _full_spec(shape):
    # Parameter blocks: whole array, same block for every grid step.
    n = len(shape)
    return pl.BlockSpec(shape, lambda i, _n=n: (0,) * _n)


@functools.partial(
    jax.jit, static_argnames=("batch_tile", "matmul_dtype", "core_parallel"))
def critic_forward(x, params, *, batch_tile=DEFAULT_BATCH_TILE,
                   matmul_dtype=jnp.bfloat16, core_parallel=False):
    B, n_states = x.shape
    assert n_states == N_STATES
    assert batch_tile % LANE == 0

    (rs_mean, rs_var, pre_w, pre_b, rms_w, w1, b1, w2, b2,
     ln_w, cw1, cb1, cw2, cb2) = params

    mm = matmul_dtype

    # ---- fold eval-mode RSNorm into the first Linear (feature-major weights).
    # TODO(synk): RSNorm running-stat updates are training-only in-place buffer
    # mutations; not reproduced here (eval semantics).
    inv_std = 1.0 / jnp.maximum(jnp.sqrt(rs_var), RS_EPS)        # (1, n_states)
    pw_f32 = pre_w.T * inv_std                                   # (h, n_states)
    pb = pre_b.T - pw_f32 @ rs_mean.T                            # (h, 1), f32
    pw = pw_f32.astype(mm)

    # Matmul weights cast ONCE to the MXU dtype; biases / norm weights stay f32
    # (they only feed elementwise VPU math).
    rms_w_fm = jnp.swapaxes(rms_w, 1, 2)                         # (L, h, 1)
    w1_fm = jnp.swapaxes(w1, 1, 2).astype(mm)                    # (L, 2h, h)
    b1_fm = jnp.swapaxes(b1, 1, 2)                               # (L, 2h, 1)
    w2_fm = jnp.swapaxes(w2, 1, 2).astype(mm)                    # (L, h, 2h)
    b2_fm = jnp.swapaxes(b2, 1, 2)                               # (L, h, 1)
    ln_w_fm = ln_w.T                                             # (h, 1)
    cw1_fm = cw1.T.astype(mm)                                    # (h, h)
    cb1_fm = cb1.T                                               # (h, 1)
    cw2_fm = cw2.T.astype(mm)                                    # (1, h)

    # ---- batch tiling: lane-aligned tile; pad rows only when B % tile != 0.
    tile = min(batch_tile, pl.cdiv(B, LANE) * LANE)
    Bp = pl.cdiv(B, tile) * tile
    if Bp != B:
        x = jnp.pad(x, ((0, Bp - B), (0, 0)))

    args = (x, pw, pb, rms_w_fm, w1_fm, b1_fm, w2_fm, b2_fm,
            ln_w_fm, cw1_fm, cb1_fm, cw2_fm, cb2)

    in_specs = [pl.BlockSpec((tile, n_states), lambda i: (i, 0))]
    in_specs += [_full_spec(a.shape) for a in args[1:]]
    out_specs = pl.BlockSpec((1, tile), lambda i: (0, i))

    # v7x: core_parallel=True shards the batch grid axis across the 2 TensorCores.
    sem = pltpu.CORE_PARALLEL if core_parallel else "parallel"

    out = pl.pallas_call(
        critic_kernel,
        out_shape=jax.ShapeDtypeStruct((1, Bp), jnp.float32),
        grid_spec=pltpu.PrefetchScalarGridSpec(
            num_scalar_prefetch=0,
            grid=(Bp // tile,),
            in_specs=in_specs,
            out_specs=out_specs,
        ),
        compiler_params=pltpu.CompilerParams(
            dimension_semantics=(sem,),
            vmem_limit_bytes=32 * 1024 * 1024),
    )(*args)

    return out[0, :B][:, None]


# ------------------------------ params / reference ---------------------------
def init_params(key):
    """Deterministic synthetic parameters matching the PyTorch module shapes.

    Stored in the batch-major (in_features, out_features) convention used by the
    pure-JAX reference; the wrapper converts to the kernel's feature-major layout.
    """
    ks = jax.random.split(key, 16)
    f32 = jnp.float32
    h, e = H_DIM, H_DIM * EXP_FACTOR

    # RSNorm buffers (fresh module): mean=0, var=1
    rs_mean = jnp.zeros((1, N_STATES), f32)
    rs_var = jnp.ones((1, N_STATES), f32)

    def lin(k, fan_in, shape):
        bound = 1.0 / jnp.sqrt(fan_in)
        return jax.random.uniform(k, shape, f32, -bound, bound)

    pre_w = lin(ks[0], N_STATES, (N_STATES, h))
    pre_b = lin(ks[1], N_STATES, (1, h))

    rms_w = jnp.ones((N_LAYERS, 1, h), f32)          # nn.RMSNorm weight init = 1
    w1 = lin(ks[2], h, (N_LAYERS, h, e))
    b1 = lin(ks[3], h, (N_LAYERS, 1, e))
    w2 = lin(ks[4], e, (N_LAYERS, e, h))
    b2 = lin(ks[5], e, (N_LAYERS, 1, h))

    ln_w = jnp.ones((1, h), f32)
    cw1 = lin(ks[6], h, (h, h))
    cb1 = lin(ks[7], h, (1, h))
    cw2 = lin(ks[8], h, (h, 1))
    cb2 = lin(ks[9], h, (1, 1))

    return (rs_mean, rs_var, pre_w, pre_b, rms_w, w1, b1, w2, b2,
            ln_w, cw1, cb1, cw2, cb2)


def critic_reference(x, params):
    """Pure-JAX reference (mirrors the PyTorch eval-mode forward)."""
    (rs_mean, rs_var, pre_w, pre_b, rms_w, w1, b1, w2, b2,
     ln_w, cw1, cb1, cw2, cb2) = params
    x = (x - rs_mean) / jnp.maximum(jnp.sqrt(rs_var), RS_EPS)
    h = x @ pre_w + pre_b
    for l in range(N_LAYERS):
        y = _rmsnorm_bm(h, rms_w[l], SIMBA_EPS)
        y = _relu_squared(y @ w1[l] + b1[l])
        y = y @ w2[l] + b2[l]
        h = h + y
    h = _rmsnorm_bm(h, ln_w, FINAL_EPS)
    v = _relu_squared(h @ cw1 + cb1)
    return v @ cw2 + cb2


if __name__ == "__main__":
    key = jax.random.PRNGKey(0)
    k_x1, k_x2, k_p = jax.random.split(key, 3)

    params = init_params(k_p)

    # ---- exact-semantics check: f32 MXU path vs pure-JAX reference ----------
    B1 = 16
    x1 = jax.random.normal(k_x1, (B1, N_STATES), jnp.float32)
    v1 = critic_forward(x1, params, matmul_dtype=jnp.float32)
    jax.block_until_ready(v1)
    v1_ref = critic_reference(x1, params)
    assert v1.shape == (B1, 1)
    assert jnp.allclose(v1, v1_ref, atol=5e-4, rtol=5e-4), (
        f"f32 max abs err = {jnp.max(jnp.abs(v1 - v1_ref))}")

    # ---- performance path: default bf16 MXU operands, padded multi-tile grid -
    B2 = 1500
    x2 = jax.random.normal(k_x2, (B2, N_STATES), jnp.float32)
    v2 = critic_forward(x2, params)            # bf16 MXU, tile=1024, grid of 2
    jax.block_until_ready(v2)
    v2_ref = critic_reference(x2, params)
    assert v2.shape == (B2, 1)
    assert jnp.allclose(v2, v2_ref, atol=5e-2, rtol=5e-2), (
        f"bf16 max abs err = {jnp.max(jnp.abs(v2 - v2_ref))}")

    print("KERNEL_OK")
</pallas_src>

<mosaic_0001>
module attributes {stable_mosaic.version = 11 : i64} {
  func.func @critic_kernel(%arg0: i32, %arg1: memref<128x16xf32, #tpu.memory_space<vmem>>, %arg2: memref<64x16xf32, #tpu.memory_space<vmem>>, %arg3: memref<64x1xf32, #tpu.memory_space<vmem>>, %arg4: memref<6x64x1xf32, #tpu.memory_space<vmem>>, %arg5: memref<6x128x64xf32, #tpu.memory_space<vmem>>, %arg6: memref<6x128x1xf32, #tpu.memory_space<vmem>>, %arg7: memref<6x64x128xf32, #tpu.memory_space<vmem>>, %arg8: memref<6x64x1xf32, #tpu.memory_space<vmem>>, %arg9: memref<64x1xf32, #tpu.memory_space<vmem>>, %arg10: memref<64x64xf32, #tpu.memory_space<vmem>>, %arg11: memref<64x1xf32, #tpu.memory_space<vmem>>, %arg12: memref<1x64xf32, #tpu.memory_space<vmem>>, %arg13: memref<1x1xf32, #tpu.memory_space<vmem>>, %arg14: memref<1x128xf32, #tpu.memory_space<vmem>>) attributes {dimension_semantics = [#tpu.dimension_semantics<parallel>], iteration_bounds = array<i64: 1>, scalar_prefetch = 0 : i64, scratch_operands = 0 : i64, tpu.core_type = #tpu.core_type<tc>, window_params = [{transform_indices = @transform_0, window_bounds = array<i64: 128, 16>}, {pipeline_mode = #tpu.pipeline_mode<synchronous>, transform_indices = @transform_1, window_bounds = array<i64: 64, 16>}, {pipeline_mode = #tpu.pipeline_mode<synchronous>, transform_indices = @transform_2, window_bounds = array<i64: 64, 1>}, {pipeline_mode = #tpu.pipeline_mode<synchronous>, transform_indices = @transform_3, window_bounds = array<i64: 6, 64, 1>}, {pipeline_mode = #tpu.pipeline_mode<synchronous>, transform_indices = @transform_4, window_bounds = array<i64: 6, 128, 64>}, {pipeline_mode = #tpu.pipeline_mode<synchronous>, transform_indices = @transform_5, window_bounds = array<i64: 6, 128, 1>}, {pipeline_mode = #tpu.pipeline_mode<synchronous>, transform_indices = @transform_6, window_bounds = array<i64: 6, 64, 128>}, {pipeline_mode = #tpu.pipeline_mode<synchronous>, transform_indices = @transform_7, window_bounds = array<i64: 6, 64, 1>}, {pipeline_mode = #tpu.pipeline_mode<synchronous>, transform_indices = @transform_8, window_bounds = array<i64: 64, 1>}, {pipeline_mode = #tpu.pipeline_mode<synchronous>, transform_indices = @transform_9, window_bounds = array<i64: 64, 64>}, {pipeline_mode = #tpu.pipeline_mode<synchronous>, transform_indices = @transform_10, window_bounds = array<i64: 64, 1>}, {pipeline_mode = #tpu.pipeline_mode<synchronous>, transform_indices = @transform_11, window_bounds = array<i64: 1, 64>}, {pipeline_mode = #tpu.pipeline_mode<synchronous>, transform_indices = @transform_12, window_bounds = array<i64: 1, 1>}, {transform_indices = @transform_13, window_bounds = array<i64: 1, 128>}]} {
    %c0 = arith.constant 0 : index
    %c0_0 = arith.constant 0 : index
    %0 = vector.load %arg2[%c0, %c0_0] : memref<64x16xf32, #tpu.memory_space<vmem>>, vector<64x16xf32>
    %c0_1 = arith.constant 0 : index
    %c0_2 = arith.constant 0 : index
    %1 = vector.load %arg1[%c0_1, %c0_2] : memref<128x16xf32, #tpu.memory_space<vmem>>, vector<128x16xf32>
    %cst = arith.constant dense<0.000000e+00> : vector<64x128xf32>
    %2 = tpu.matmul %0, %1, %cst {dimension_numbers = #tpu.dot_dimension_numbers<[1], [1], [0], [0], [0, 0, 1, 0], [], []>} : vector<64x16xf32>, vector<128x16xf32>, vector<64x128xf32> -> vector<64x128xf32>
    %c0_3 = arith.constant 0 : index
    %c0_4 = arith.constant 0 : index
    %3 = vector.load %arg3[%c0_3, %c0_4] : memref<64x1xf32, #tpu.memory_space<vmem>>, vector<64x1xf32>
    %4 = vector.broadcast %3 : vector<64x1xf32> to vector<64x128xf32>
    %5 = arith.addf %2, %4 : vector<64x128xf32>
    %c0_5 = arith.constant 0 : index
    %c0_6 = arith.constant 0 : index
    %c0_7 = arith.constant 0 : index
    %6 = vector.load %arg4[%c0_5, %c0_6, %c0_7] : memref<6x64x1xf32, #tpu.memory_space<vmem>>, vector<1x64x1xf32>
    %7 = vector.shape_cast %6 : vector<1x64x1xf32> to vector<64x1xf32>
    %8 = arith.mulf %5, %5 : vector<64x128xf32>
    %cst_8 = arith.constant dense<0.000000e+00> : vector<128xf32>
    %9 = vector.multi_reduction <add>, %8, %cst_8 [0] : vector<64x128xf32> to vector<128xf32>
    %10 = vector.shape_cast %9 : vector<128xf32> to vector<1x128xf32>
    %cst_9 = arith.constant 6.400000e+01 : f32
    %11 = vector.broadcast %cst_9 : f32 to vector<1x128xf32>
    %12 = arith.divf %10, %11 : vector<1x128xf32>
    %cst_10 = arith.constant 9.99999974E-6 : f32
    %13 = vector.broadcast %cst_10 : f32 to vector<1x128xf32>
    %14 = arith.addf %12, %13 : vector<1x128xf32>
    %15 = math.rsqrt %14 : vector<1x128xf32>
    %16 = vector.broadcast %15 : vector<1x128xf32> to vector<64x128xf32>
    %17 = arith.mulf %5, %16 : vector<64x128xf32>
    %18 = vector.broadcast %7 : vector<64x1xf32> to vector<64x128xf32>
    %19 = arith.mulf %17, %18 : vector<64x128xf32>
    %c0_11 = arith.constant 0 : index
    %c0_12 = arith.constant 0 : index
    %c0_13 = arith.constant 0 : index
    %20 = vector.load %arg5[%c0_11, %c0_12, %c0_13] : memref<6x128x64xf32, #tpu.memory_space<vmem>>, vector<1x128x64xf32>
    %21 = vector.shape_cast %20 : vector<1x128x64xf32> to vector<128x64xf32>
    %cst_14 = arith.constant dense<0.000000e+00> : vector<128x128xf32>
    %22 = tpu.matmul %21, %19, %cst_14 {dimension_numbers = #tpu.dot_dimension_numbers<[1], [0], [0], [1], [0, 0, 1, 1], [], []>} : vector<128x64xf32>, vector<64x128xf32>, vector<128x128xf32> -> vector<128x128xf32>
    %c0_15 = arith.constant 0 : index
    %c0_16 = arith.constant 0 : index
    %c0_17 = arith.constant 0 : index
    %23 = vector.load %arg6[%c0_15, %c0_16, %c0_17] : memref<6x128x1xf32, #tpu.memory_space<vmem>>, vector<1x128x1xf32>
    %24 = vector.shape_cast %23 : vector<1x128x1xf32> to vector<128x1xf32>
    %25 = vector.broadcast %24 : vector<128x1xf32> to vector<128x128xf32>
    %26 = arith.addf %22, %25 : vector<128x128xf32>
    %cst_18 = arith.constant 0.000000e+00 : f32
    %27 = vector.broadcast %cst_18 : f32 to vector<128x128xf32>
    %28 = arith.maximumf %26, %27 : vector<128x128xf32>
    %29 = arith.mulf %28, %28 : vector<128x128xf32>
    %c0_19 = arith.constant 0 : index
    %c0_20 = arith.constant 0 : index
    %c0_21 = arith.constant 0 : index
    %30 = vector.load %arg7[%c0_19, %c0_20, %c0_21] : memref<6x64x128xf32, #tpu.memory_space<vmem>>, vector<1x64x128xf32>
    %31 = vector.shape_cast %30 : vector<1x64x128xf32> to vector<64x128xf32>
    %cst_22 = arith.constant dense<0.000000e+00> : vector<64x128xf32>
    %32 = tpu.matmul %31, %29, %cst_22 {dimension_numbers = #tpu.dot_dimension_numbers<[1], [0], [0], [1], [0, 0, 1, 1], [], []>} : vector<64x128xf32>, vector<128x128xf32>, vector<64x128xf32> -> vector<64x128xf32>
    %c0_23 = arith.constant 0 : index
    %c0_24 = arith.constant 0 : index
    %c0_25 = arith.constant 0 : index
    %33 = vector.load %arg8[%c0_23, %c0_24, %c0_25] : memref<6x64x1xf32, #tpu.memory_space<vmem>>, vector<1x64x1xf32>
    %34 = vector.shape_cast %33 : vector<1x64x1xf32> to vector<64x1xf32>
    %35 = vector.broadcast %34 : vector<64x1xf32> to vector<64x128xf32>
    %36 = arith.addf %32, %35 : vector<64x128xf32>
    %37 = arith.addf %5, %36 : vector<64x128xf32>
    %c1 = arith.constant 1 : index
    %c0_26 = arith.constant 0 : index
    %c0_27 = arith.constant 0 : index
    %38 = vector.load %arg4[%c1, %c0_26, %c0_27] : memref<6x64x1xf32, #tpu.memory_space<vmem>>, vector<1x64x1xf32>
    %39 = vector.shape_cast %38 : vector<1x64x1xf32> to vector<64x1xf32>
    %40 = arith.mulf %37, %37 : vector<64x128xf32>
    %cst_28 = arith.constant dense<0.000000e+00> : vector<128xf32>
    %41 = vector.multi_reduction <add>, %40, %cst_28 [0] : vector<64x128xf32> to vector<128xf32>
    %42 = vector.shape_cast %41 : vector<128xf32> to vector<1x128xf32>
    %cst_29 = arith.constant 6.400000e+01 : f32
    %43 = vector.broadcast %cst_29 : f32 to vector<1x128xf32>
    %44 = arith.divf %42, %43 : vector<1x128xf32>
    %cst_30 = arith.constant 9.99999974E-6 : f32
    %45 = vector.broadcast %cst_30 : f32 to vector<1x128xf32>
    %46 = arith.addf %44, %45 : vector<1x128xf32>
    %47 = math.rsqrt %46 : vector<1x128xf32>
    %48 = vector.broadcast %47 : vector<1x128xf32> to vector<64x128xf32>
    %49 = arith.mulf %37, %48 : vector<64x128xf32>
    %50 = vector.broadcast %39 : vector<64x1xf32> to vector<64x128xf32>
    %51 = arith.mulf %49, %50 : vector<64x128xf32>
    %c1_31 = arith.constant 1 : index
    %c0_32 = arith.constant 0 : index
    %c0_33 = arith.constant 0 : index
    %52 = vector.load %arg5[%c1_31, %c0_32, %c0_33] : memref<6x128x64xf32, #tpu.memory_space<vmem>>, vector<1x128x64xf32>
    %53 = vector.shape_cast %52 : vector<1x128x64xf32> to vector<128x64xf32>
    %cst_34 = arith.constant dense<0.000000e+00> : vector<128x128xf32>
    %54 = tpu.matmul %53, %51, %cst_34 {dimension_numbers = #tpu.dot_dimension_numbers<[1], [0], [0], [1], [0, 0, 1, 1], [], []>} : vector<128x64xf32>, vector<64x128xf32>, vector<128x128xf32> -> vector<128x128xf32>
    %c1_35 = arith.constant 1 : index
    %c0_36 = arith.constant 0 : index
    %c0_37 = arith.constant 0 : index
    %55 = vector.load %arg6[%c1_35, %c0_36, %c0_37] : memref<6x128x1xf32, #tpu.memory_space<vmem>>, vector<1x128x1xf32>
    %56 = vector.shape_cast %55 : vector<1x128x1xf32> to vector<128x1xf32>
    %57 = vector.broadcast %56 : vector<128x1xf32> to vector<128x128xf32>
    %58 = arith.addf %54, %57 : vector<128x128xf32>
    %cst_38 = arith.constant 0.000000e+00 : f32
    %59 = vector.broadcast %cst_38 : f32 to vector<128x128xf32>
    %60 = arith.maximumf %58, %59 : vector<128x128xf32>
    %61 = arith.mulf %60, %60 : vector<128x128xf32>
    %c1_39 = arith.constant 1 : index
    %c0_40 = arith.constant 0 : index
    %c0_41 = arith.constant 0 : index
    %62 = vector.load %arg7[%c1_39, %c0_40, %c0_41] : memref<6x64x128xf32, #tpu.memory_space<vmem>>, vector<1x64x128xf32>
    %63 = vector.shape_cast %62 : vector<1x64x128xf32> to vector<64x128xf32>
    %cst_42 = arith.constant dense<0.000000e+00> : vector<64x128xf32>
    %64 = tpu.matmul %63, %61, %cst_42 {dimension_numbers = #tpu.dot_dimension_numbers<[1], [0], [0], [1], [0, 0, 1, 1], [], []>} : vector<64x128xf32>, vector<128x128xf32>, vector<64x128xf32> -> vector<64x128xf32>
    %c1_43 = arith.constant 1 : index
    %c0_44 = arith.constant 0 : index
    %c0_45 = arith.constant 0 : index
    %65 = vector.load %arg8[%c1_43, %c0_44, %c0_45] : memref<6x64x1xf32, #tpu.memory_space<vmem>>, vector<1x64x1xf32>
    %66 = vector.shape_cast %65 : vector<1x64x1xf32> to vector<64x1xf32>
    %67 = vector.broadcast %66 : vector<64x1xf32> to vector<64x128xf32>
    %68 = arith.addf %64, %67 : vector<64x128xf32>
    %69 = arith.addf %37, %68 : vector<64x128xf32>
    %c2 = arith.constant 2 : index
    %c0_46 = arith.constant 0 : index
    %c0_47 = arith.constant 0 : index
    %70 = vector.load %arg4[%c2, %c0_46, %c0_47] : memref<6x64x1xf32, #tpu.memory_space<vmem>>, vector<1x64x1xf32>
    %71 = vector.shape_cast %70 : vector<1x64x1xf32> to vector<64x1xf32>
    %72 = arith.mulf %69, %69 : vector<64x128xf32>
    %cst_48 = arith.constant dense<0.000000e+00> : vector<128xf32>
    %73 = vector.multi_reduction <add>, %72, %cst_48 [0] : vector<64x128xf32> to vector<128xf32>
    %74 = vector.shape_cast %73 : vector<128xf32> to vector<1x128xf32>
    %cst_49 = arith.constant 6.400000e+01 : f32
    %75 = vector.broadcast %cst_49 : f32 to vector<1x128xf32>
    %76 = arith.divf %74, %75 : vector<1x128xf32>
    %cst_50 = arith.constant 9.99999974E-6 : f32
    %77 = vector.broadcast %cst_50 : f32 to vector<1x128xf32>
    %78 = arith.addf %76, %77 : vector<1x128xf32>
    %79 = math.rsqrt %78 : vector<1x128xf32>
    %80 = vector.broadcast %79 : vector<1x128xf32> to vector<64x128xf32>
    %81 = arith.mulf %69, %80 : vector<64x128xf32>
    %82 = vector.broadcast %71 : vector<64x1xf32> to vector<64x128xf32>
    %83 = arith.mulf %81, %82 : vector<64x128xf32>
    %c2_51 = arith.constant 2 : index
    %c0_52 = arith.constant 0 : index
    %c0_53 = arith.constant 0 : index
    %84 = vector.load %arg5[%c2_51, %c0_52, %c0_53] : memref<6x128x64xf32, #tpu.memory_space<vmem>>, vector<1x128x64xf32>
    %85 = vector.shape_cast %84 : vector<1x128x64xf32> to vector<128x64xf32>
    %cst_54 = arith.constant dense<0.000000e+00> : vector<128x128xf32>
    %86 = tpu.matmul %85, %83, %cst_54 {dimension_numbers = #tpu.dot_dimension_numbers<[1], [0], [0], [1], [0, 0, 1, 1], [], []>} : vector<128x64xf32>, vector<64x128xf32>, vector<128x128xf32> -> vector<128x128xf32>
    %c2_55 = arith.constant 2 : index
    %c0_56 = arith.constant 0 : index
    %c0_57 = arith.constant 0 : index
    %87 = vector.load %arg6[%c2_55, %c0_56, %c0_57] : memref<6x128x1xf32, #tpu.memory_space<vmem>>, vector<1x128x1xf32>
    %88 = vector.shape_cast %87 : vector<1x128x1xf32> to vector<128x1xf32>
    %89 = vector.broadcast %88 : vector<128x1xf32> to vector<128x128xf32>
    %90 = arith.addf %86, %89 : vector<128x128xf32>
    %cst_58 = arith.constant 0.000000e+00 : f32
    %91 = vector.broadcast %cst_58 : f32 to vector<128x128xf32>
    %92 = arith.maximumf %90, %91 : vector<128x128xf32>
    %93 = arith.mulf %92, %92 : vector<128x128xf32>
    %c2_59 = arith.constant 2 : index
    %c0_60 = arith.constant 0 : index
    %c0_61 = arith.constant 0 : index
    %94 = vector.load %arg7[%c2_59, %c0_60, %c0_61] : memref<6x64x128xf32, #tpu.memory_space<vmem>>, vector<1x64x128xf32>
    %95 = vector.shape_cast %94 : vector<1x64x128xf32> to vector<64x128xf32>
    %cst_62 = arith.constant dense<0.000000e+00> : vector<64x128xf32>
    %96 = tpu.matmul %95, %93, %cst_62 {dimension_numbers = #tpu.dot_dimension_numbers<[1], [0], [0], [1], [0, 0, 1, 1], [], []>} : vector<64x128xf32>, vector<128x128xf32>, vector<64x128xf32> -> vector<64x128xf32>
    %c2_63 = arith.constant 2 : index
    %c0_64 = arith.constant 0 : index
    %c0_65 = arith.constant 0 : index
    %97 = vector.load %arg8[%c2_63, %c0_64, %c0_65] : memref<6x64x1xf32, #tpu.memory_space<vmem>>, vector<1x64x1xf32>
    %98 = vector.shape_cast %97 : vector<1x64x1xf32> to vector<64x1xf32>
    %99 = vector.broadcast %98 : vector<64x1xf32> to vector<64x128xf32>
    %100 = arith.addf %96, %99 : vector<64x128xf32>
    %101 = arith.addf %69, %100 : vector<64x128xf32>
    %c3 = arith.constant 3 : index
    %c0_66 = arith.constant 0 : index
    %c0_67 = arith.constant 0 : index
    %102 = vector.load %arg4[%c3, %c0_66, %c0_67] : memref<6x64x1xf32, #tpu.memory_space<vmem>>, vector<1x64x1xf32>
    %103 = vector.shape_cast %102 : vector<1x64x1xf32> to vector<64x1xf32>
    %104 = arith.mulf %101, %101 : vector<64x128xf32>
    %cst_68 = arith.constant dense<0.000000e+00> : vector<128xf32>
    %105 = vector.multi_reduction <add>, %104, %cst_68 [0] : vector<64x128xf32> to vector<128xf32>
    %106 = vector.shape_cast %105 : vector<128xf32> to vector<1x128xf32>
    %cst_69 = arith.constant 6.400000e+01 : f32
    %107 = vector.broadcast %cst_69 : f32 to vector<1x128xf32>
    %108 = arith.divf %106, %107 : vector<1x128xf32>
    %cst_70 = arith.constant 9.99999974E-6 : f32
    %109 = vector.broadcast %cst_70 : f32 to vector<1x128xf32>
    %110 = arith.addf %108, %109 : vector<1x128xf32>
    %111 = math.rsqrt %110 : vector<1x128xf32>
    %112 = vector.broadcast %111 : vector<1x128xf32> to vector<64x128xf32>
    %113 = arith.mulf %101, %112 : vector<64x128xf32>
    %114 = vector.broadcast %103 : vector<64x1xf32> to vector<64x128xf32>
    %115 = arith.mulf %113, %114 : vector<64x128xf32>
    %c3_71 = arith.constant 3 : index
    %c0_72 = arith.constant 0 : index
    %c0_73 = arith.constant 0 : index
    %116 = vector.load %arg5[%c3_71, %c0_72, %c0_73] : memref<6x128x64xf32, #tpu.memory_space<vmem>>, vector<1x128x64xf32>
    %117 = vector.shape_cast %116 : vector<1x128x64xf32> to vector<128x64xf32>
    %cst_74 = arith.constant dense<0.000000e+00> : vector<128x128xf32>
    %118 = tpu.matmul %117, %115, %cst_74 {dimension_numbers = #tpu.dot_dimension_numbers<[1], [0], [0], [1], [0, 0, 1, 1], [], []>} : vector<128x64xf32>, vector<64x128xf32>, vector<128x128xf32> -> vector<128x128xf32>
    %c3_75 = arith.constant 3 : index
    %c0_76 = arith.constant 0 : index
    %c0_77 = arith.constant 0 : index
    %119 = vector.load %arg6[%c3_75, %c0_76, %c0_77] : memref<6x128x1xf32, #tpu.memory_space<vmem>>, vector<1x128x1xf32>
    %120 = vector.shape_cast %119 : vector<1x128x1xf32> to vector<128x1xf32>
    %121 = vector.broadcast %120 : vector<128x1xf32> to vector<128x128xf32>
    %122 = arith.addf %118, %121 : vector<128x128xf32>
    %cst_78 = arith.constant 0.000000e+00 : f32
    %123 = vector.broadcast %cst_78 : f32 to vector<128x128xf32>
    %124 = arith.maximumf %122, %123 : vector<128x128xf32>
    %125 = arith.mulf %124, %124 : vector<128x128xf32>
    %c3_79 = arith.constant 3 : index
    %c0_80 = arith.constant 0 : index
    %c0_81 = arith.constant 0 : index
    %126 = vector.load %arg7[%c3_79, %c0_80, %c0_81] : memref<6x64x128xf32, #tpu.memory_space<vmem>>, vector<1x64x128xf32>
    %127 = vector.shape_cast %126 : vector<1x64x128xf32> to vector<64x128xf32>
    %cst_82 = arith.constant dense<0.000000e+00> : vector<64x128xf32>
    %128 = tpu.matmul %127, %125, %cst_82 {dimension_numbers = #tpu.dot_dimension_numbers<[1], [0], [0], [1], [0, 0, 1, 1], [], []>} : vector<64x128xf32>, vector<128x128xf32>, vector<64x128xf32> -> vector<64x128xf32>
    %c3_83 = arith.constant 3 : index
    %c0_84 = arith.constant 0 : index
    %c0_85 = arith.constant 0 : index
    %129 = vector.load %arg8[%c3_83, %c0_84, %c0_85] : memref<6x64x1xf32, #tpu.memory_space<vmem>>, vector<1x64x1xf32>
    %130 = vector.shape_cast %129 : vector<1x64x1xf32> to vector<64x1xf32>
    %131 = vector.broadcast %130 : vector<64x1xf32> to vector<64x128xf32>
    %132 = arith.addf %128, %131 : vector<64x128xf32>
    %133 = arith.addf %101, %132 : vector<64x128xf32>
    %c4 = arith.constant 4 : index
    %c0_86 = arith.constant 0 : index
    %c0_87 = arith.constant 0 : index
    %134 = vector.load %arg4[%c4, %c0_86, %c0_87] : memref<6x64x1xf32, #tpu.memory_space<vmem>>, vector<1x64x1xf32>
    %135 = vector.shape_cast %134 : vector<1x64x1xf32> to vector<64x1xf32>
    %136 = arith.mulf %133, %133 : vector<64x128xf32>
    %cst_88 = arith.constant dense<0.000000e+00> : vector<128xf32>
    %137 = vector.multi_reduction <add>, %136, %cst_88 [0] : vector<64x128xf32> to vector<128xf32>
    %138 = vector.shape_cast %137 : vector<128xf32> to vector<1x128xf32>
    %cst_89 = arith.constant 6.400000e+01 : f32
    %139 = vector.broadcast %cst_89 : f32 to vector<1x128xf32>
    %140 = arith.divf %138, %139 : vector<1x128xf32>
    %cst_90 = arith.constant 9.99999974E-6 : f32
    %141 = vector.broadcast %cst_90 : f32 to vector<1x128xf32>
    %142 = arith.addf %140, %141 : vector<1x128xf32>
    %143 = math.rsqrt %142 : vector<1x128xf32>
    %144 = vector.broadcast %143 : vector<1x128xf32> to vector<64x128xf32>
    %145 = arith.mulf %133, %144 : vector<64x128xf32>
    %146 = vector.broadcast %135 : vector<64x1xf32> to vector<64x128xf32>
    %147 = arith.mulf %145, %146 : vector<64x128xf32>
    %c4_91 = arith.constant 4 : index
    %c0_92 = arith.constant 0 : index
    %c0_93 = arith.constant 0 : index
    %148 = vector.load %arg5[%c4_91, %c0_92, %c0_93] : memref<6x128x64xf32, #tpu.memory_space<vmem>>, vector<1x128x64xf32>
    %149 = vector.shape_cast %148 : vector<1x128x64xf32> to vector<128x64xf32>
    %cst_94 = arith.constant dense<0.000000e+00> : vector<128x128xf32>
    %150 = tpu.matmul %149, %147, %cst_94 {dimension_numbers = #tpu.dot_dimension_numbers<[1], [0], [0], [1], [0, 0, 1, 1], [], []>} : vector<128x64xf32>, vector<64x128xf32>, vector<128x128xf32> -> vector<128x128xf32>
    %c4_95 = arith.constant 4 : index
    %c0_96 = arith.constant 0 : index
    %c0_97 = arith.constant 0 : index
    %151 = vector.load %arg6[%c4_95, %c0_96, %c0_97] : memref<6x128x1xf32, #tpu.memory_space<vmem>>, vector<1x128x1xf32>
    %152 = vector.shape_cast %151 : vector<1x128x1xf32> to vector<128x1xf32>
    %153 = vector.broadcast %152 : vector<128x1xf32> to vector<128x128xf32>
    %154 = arith.addf %150, %153 : vector<128x128xf32>
    %cst_98 = arith.constant 0.000000e+00 : f32
    %155 = vector.broadcast %cst_98 : f32 to vector<128x128xf32>
    %156 = arith.maximumf %154, %155 : vector<128x128xf32>
    %157 = arith.mulf %156, %156 : vector<128x128xf32>
    %c4_99 = arith.constant 4 : index
    %c0_100 = arith.constant 0 : index
    %c0_101 = arith.constant 0 : index
    %158 = vector.load %arg7[%c4_99, %c0_100, %c0_101] : memref<6x64x128xf32, #tpu.memory_space<vmem>>, vector<1x64x128xf32>
    %159 = vector.shape_cast %158 : vector<1x64x128xf32> to vector<64x128xf32>
    %cst_102 = arith.constant dense<0.000000e+00> : vector<64x128xf32>
    %160 = tpu.matmul %159, %157, %cst_102 {dimension_numbers = #tpu.dot_dimension_numbers<[1], [0], [0], [1], [0, 0, 1, 1], [], []>} : vector<64x128xf32>, vector<128x128xf32>, vector<64x128xf32> -> vector<64x128xf32>
    %c4_103 = arith.constant 4 : index
    %c0_104 = arith.constant 0 : index
    %c0_105 = arith.constant 0 : index
    %161 = vector.load %arg8[%c4_103, %c0_104, %c0_105] : memref<6x64x1xf32, #tpu.memory_space<vmem>>, vector<1x64x1xf32>
    %162 = vector.shape_cast %161 : vector<1x64x1xf32> to vector<64x1xf32>
    %163 = vector.broadcast %162 : vector<64x1xf32> to vector<64x128xf32>
    %164 = arith.addf %160, %163 : vector<64x128xf32>
    %165 = arith.addf %133, %164 : vector<64x128xf32>
    %c5 = arith.constant 5 : index
    %c0_106 = arith.constant 0 : index
    %c0_107 = arith.constant 0 : index
    %166 = vector.load %arg4[%c5, %c0_106, %c0_107] : memref<6x64x1xf32, #tpu.memory_space<vmem>>, vector<1x64x1xf32>
    %167 = vector.shape_cast %166 : vector<1x64x1xf32> to vector<64x1xf32>
    %168 = arith.mulf %165, %165 : vector<64x128xf32>
    %cst_108 = arith.constant dense<0.000000e+00> : vector<128xf32>
    %169 = vector.multi_reduction <add>, %168, %cst_108 [0] : vector<64x128xf32> to vector<128xf32>
    %170 = vector.shape_cast %169 : vector<128xf32> to vector<1x128xf32>
    %cst_109 = arith.constant 6.400000e+01 : f32
    %171 = vector.broadcast %cst_109 : f32 to vector<1x128xf32>
    %172 = arith.divf %170, %171 : vector<1x128xf32>
    %cst_110 = arith.constant 9.99999974E-6 : f32
    %173 = vector.broadcast %cst_110 : f32 to vector<1x128xf32>
    %174 = arith.addf %172, %173 : vector<1x128xf32>
    %175 = math.rsqrt %174 : vector<1x128xf32>
    %176 = vector.broadcast %175 : vector<1x128xf32> to vector<64x128xf32>
    %177 = arith.mulf %165, %176 : vector<64x128xf32>
    %178 = vector.broadcast %167 : vector<64x1xf32> to vector<64x128xf32>
    %179 = arith.mulf %177, %178 : vector<64x128xf32>
    %c5_111 = arith.constant 5 : index
    %c0_112 = arith.constant 0 : index
    %c0_113 = arith.constant 0 : index
    %180 = vector.load %arg5[%c5_111, %c0_112, %c0_113] : memref<6x128x64xf32, #tpu.memory_space<vmem>>, vector<1x128x64xf32>
    %181 = vector.shape_cast %180 : vector<1x128x64xf32> to vector<128x64xf32>
    %cst_114 = arith.constant dense<0.000000e+00> : vector<128x128xf32>
    %182 = tpu.matmul %181, %179, %cst_114 {dimension_numbers = #tpu.dot_dimension_numbers<[1], [0], [0], [1], [0, 0, 1, 1], [], []>} : vector<128x64xf32>, vector<64x128xf32>, vector<128x128xf32> -> vector<128x128xf32>
    %c5_115 = arith.constant 5 : index
    %c0_116 = arith.constant 0 : index
    %c0_117 = arith.constant 0 : index
    %183 = vector.load %arg6[%c5_115, %c0_116, %c0_117] : memref<6x128x1xf32, #tpu.memory_space<vmem>>, vector<1x128x1xf32>
    %184 = vector.shape_cast %183 : vector<1x128x1xf32> to vector<128x1xf32>
    %185 = vector.broadcast %184 : vector<128x1xf32> to vector<128x128xf32>
    %186 = arith.addf %182, %185 : vector<128x128xf32>
    %cst_118 = arith.constant 0.000000e+00 : f32
    %187 = vector.broadcast %cst_118 : f32 to vector<128x128xf32>
    %188 = arith.maximumf %186, %187 : vector<128x128xf32>
    %189 = arith.mulf %188, %188 : vector<128x128xf32>
    %c5_119 = arith.constant 5 : index
    %c0_120 = arith.constant 0 : index
    %c0_121 = arith.constant 0 : index
    %190 = vector.load %arg7[%c5_119, %c0_120, %c0_121] : memref<6x64x128xf32, #tpu.memory_space<vmem>>, vector<1x64x128xf32>
    %191 = vector.shape_cast %190 : vector<1x64x128xf32> to vector<64x128xf32>
    %cst_122 = arith.constant dense<0.000000e+00> : vector<64x128xf32>
    %192 = tpu.matmul %191, %189, %cst_122 {dimension_numbers = #tpu.dot_dimension_numbers<[1], [0], [0], [1], [0, 0, 1, 1], [], []>} : vector<64x128xf32>, vector<128x128xf32>, vector<64x128xf32> -> vector<64x128xf32>
    %c5_123 = arith.constant 5 : index
    %c0_124 = arith.constant 0 : index
    %c0_125 = arith.constant 0 : index
    %193 = vector.load %arg8[%c5_123, %c0_124, %c0_125] : memref<6x64x1xf32, #tpu.memory_space<vmem>>, vector<1x64x1xf32>
    %194 = vector.shape_cast %193 : vector<1x64x1xf32> to vector<64x1xf32>
    %195 = vector.broadcast %194 : vector<64x1xf32> to vector<64x128xf32>
    %196 = arith.addf %192, %195 : vector<64x128xf32>
    %197 = arith.addf %165, %196 : vector<64x128xf32>
    %c0_126 = arith.constant 0 : index
    %c0_127 = arith.constant 0 : index
    %198 = vector.load %arg9[%c0_126, %c0_127] : memref<64x1xf32, #tpu.memory_space<vmem>>, vector<64x1xf32>
    %199 = arith.mulf %197, %197 : vector<64x128xf32>
    %cst_128 = arith.constant dense<0.000000e+00> : vector<128xf32>
    %200 = vector.multi_reduction <add>, %199, %cst_128 [0] : vector<64x128xf32> to vector<128xf32>
    %201 = vector.shape_cast %200 : vector<128xf32> to vector<1x128xf32>
    %cst_129 = arith.constant 6.400000e+01 : f32
    %202 = vector.broadcast %cst_129 : f32 to vector<1x128xf32>
    %203 = arith.divf %201, %202 : vector<1x128xf32>
    %cst_130 = arith.constant 1.1920929E-7 : f32
    %204 = vector.broadcast %cst_130 : f32 to vector<1x128xf32>
    %205 = arith.addf %203, %204 : vector<1x128xf32>
    %206 = math.rsqrt %205 : vector<1x128xf32>
    %207 = vector.broadcast %206 : vector<1x128xf32> to vector<64x128xf32>
    %208 = arith.mulf %197, %207 : vector<64x128xf32>
    %209 = vector.broadcast %198 : vector<64x1xf32> to vector<64x128xf32>
    %210 = arith.mulf %208, %209 : vector<64x128xf32>
    %c0_131 = arith.constant 0 : index
    %c0_132 = arith.constant 0 : index
    %211 = vector.load %arg10[%c0_131, %c0_132] : memref<64x64xf32, #tpu.memory_space<vmem>>, vector<64x64xf32>
    %cst_133 = arith.constant dense<0.000000e+00> : vector<64x128xf32>
    %212 = tpu.matmul %211, %210, %cst_133 {dimension_numbers = #tpu.dot_dimension_numbers<[1], [0], [0], [1], [0, 0, 1, 1], [], []>} : vector<64x64xf32>, vector<64x128xf32>, vector<64x128xf32> -> vector<64x128xf32>
    %c0_134 = arith.constant 0 : index
    %c0_135 = arith.constant 0 : index
    %213 = vector.load %arg11[%c0_134, %c0_135] : memref<64x1xf32, #tpu.memory_space<vmem>>, vector<64x1xf32>
    %214 = vector.broadcast %213 : vector<64x1xf32> to vector<64x128xf32>
    %215 = arith.addf %212, %214 : vector<64x128xf32>
    %cst_136 = arith.constant 0.000000e+00 : f32
    %216 = vector.broadcast %cst_136 : f32 to vector<64x128xf32>
    %217 = arith.maximumf %215, %216 : vector<64x128xf32>
    %218 = arith.mulf %217, %217 : vector<64x128xf32>
    %c0_137 = arith.constant 0 : index
    %c0_138 = arith.constant 0 : index
    %219 = vector.load %arg12[%c0_137, %c0_138] : memref<1x64xf32, #tpu.memory_space<vmem>>, vector<1x64xf32>
    %cst_139 = arith.constant dense<0.000000e+00> : vector<1x128xf32>
    %220 = tpu.matmul %219, %218, %cst_139 {dimension_numbers = #tpu.dot_dimension_numbers<[1], [0], [0], [1], [0, 0, 1, 1], [], []>} : vector<1x64xf32>, vector<64x128xf32>, vector<1x128xf32> -> vector<1x128xf32>
    %c0_140 = arith.constant 0 : index
    %c0_141 = arith.constant 0 : index
    %221 = vector.load %arg13[%c0_140, %c0_141] : memref<1x1xf32, #tpu.memory_space<vmem>>, vector<1x1xf32>
    %222 = vector.broadcast %221 : vector<1x1xf32> to vector<1x128xf32>
    %223 = arith.addf %220, %222 : vector<1x128xf32>
    %c0_142 = arith.constant 0 : index
    %c0_143 = arith.constant 0 : index
    %224 = vector.load %arg14[%c0_142, %c0_143] : memref<1x128xf32, #tpu.memory_space<vmem>>, vector<1x128xf32>
    tpu.vector_store %arg14[%c0_142, %c0_143], %223 {strides = array<i32>} : memref<1x128xf32, #tpu.memory_space<vmem>>, vector<1x128xf32>,
    return
  }
  func.func @transform_0(%arg0: i32) -> (i32, i32) {
    %c0_i32 = arith.constant 0 : i32
    %c0_i32_0 = arith.constant 0 : i32
    return %arg0, %c0_i32 : i32, i32
  }
  func.func @transform_1(%arg0: i32) -> (i32, i32) {
    %c0_i32 = arith.constant 0 : i32
    %c0_i32_0 = arith.constant 0 : i32
    %c0_i32_1 = arith.constant 0 : i32
    return %c0_i32, %c0_i32_0 : i32, i32
  }
  func.func @transform_2(%arg0: i32) -> (i32, i32) {
    %c0_i32 = arith.constant 0 : i32
    %c0_i32_0 = arith.constant 0 : i32
    %c0_i32_1 = arith.constant 0 : i32
    return %c0_i32, %c0_i32_0 : i32, i32
  }
  func.func @transform_3(%arg0: i32) -> (i32, i32, i32) {
    %c0_i32 = arith.constant 0 : i32
    %c0_i32_0 = arith.constant 0 : i32
    %c0_i32_1 = arith.constant 0 : i32
    %c0_i32_2 = arith.constant 0 : i32
    return %c0_i32, %c0_i32_0, %c0_i32_1 : i32, i32, i32
  }
  func.func @transform_4(%arg0: i32) -> (i32, i32, i32) {
    %c0_i32 = arith.constant 0 : i32
    %c0_i32_0 = arith.constant 0 : i32
    %c0_i32_1 = arith.constant 0 : i32
    %c0_i32_2 = arith.constant 0 : i32
    return %c0_i32, %c0_i32_0, %c0_i32_1 : i32, i32, i32
  }
  func.func @transform_5(%arg0: i32) -> (i32, i32, i32) {
    %c0_i32 = arith.constant 0 : i32
    %c0_i32_0 = arith.constant 0 : i32
    %c0_i32_1 = arith.constant 0 : i32
    %c0_i32_2 = arith.constant 0 : i32
    return %c0_i32, %c0_i32_0, %c0_i32_1 : i32, i32, i32
  }
  func.func @transform_6(%arg0: i32) -> (i32, i32, i32) {
    %c0_i32 = arith.constant 0 : i32
    %c0_i32_0 = arith.constant 0 : i32
    %c0_i32_1 = arith.constant 0 : i32
    %c0_i32_2 = arith.constant 0 : i32
    return %c0_i32, %c0_i32_0, %c0_i32_1 : i32, i32, i32
  }
  func.func @transform_7(%arg0: i32) -> (i32, i32, i32) {
    %c0_i32 = arith.constant 0 : i32
    %c0_i32_0 = arith.constant 0 : i32
    %c0_i32_1 = arith.constant 0 : i32
    %c0_i32_2 = arith.constant 0 : i32
    return %c0_i32, %c0_i32_0, %c0_i32_1 : i32, i32, i32
  }
  func.func @transform_8(%arg0: i32) -> (i32, i32) {
    %c0_i32 = arith.constant 0 : i32
    %c0_i32_0 = arith.constant 0 : i32
    %c0_i32_1 = arith.constant 0 : i32
    return %c0_i32, %c0_i32_0 : i32, i32
  }
  func.func @transform_9(%arg0: i32) -> (i32, i32) {
    %c0_i32 = arith.constant 0 : i32
    %c0_i32_0 = arith.constant 0 : i32
    %c0_i32_1 = arith.constant 0 : i32
    return %c0_i32, %c0_i32_0 : i32, i32
  }
  func.func @transform_10(%arg0: i32) -> (i32, i32) {
    %c0_i32 = arith.constant 0 : i32
    %c0_i32_0 = arith.constant 0 : i32
    %c0_i32_1 = arith.constant 0 : i32
    return %c0_i32, %c0_i32_0 : i32, i32
  }
  func.func @transform_11(%arg0: i32) -> (i32, i32) {
    %c0_i32 = arith.constant 0 : i32
    %c0_i32_0 = arith.constant 0 : i32
    %c0_i32_1 = arith.constant 0 : i32
    return %c0_i32, %c0_i32_0 : i32, i32
  }
  func.func @transform_12(%arg0: i32) -> (i32, i32) {
    %c0_i32 = arith.constant 0 : i32
    %c0_i32_0 = arith.constant 0 : i32
    %c0_i32_1 = arith.constant 0 : i32
    return %c0_i32, %c0_i32_0 : i32, i32
  }
  func.func @transform_13(%arg0: i32) -> (i32, i32) {
    %c0_i32 = arith.constant 0 : i32
    %c0_i32_0 = arith.constant 0 : i32
    return %c0_i32, %arg0 : i32, i32
  }
}

</mosaic_0001>

<bundles_post_ra>
// kernel: critic_forward.1
= control target key start
LH: loop header
LB: loop body
LE: loop exit
PB: predicated region body
PF: predicated region fallthrough
CT: control target
= control target key end

     0   :  { %v3727_v0 = vmov 0   ;;  %vm118_vm0 = vcmask 130048   ;;  %vm448_vm5 = vcmask 523264   ;;  %s5668_s2 = inlined_call_operand.vmem [shape: f32[64,1], index: 2, kind: input, shape index: {}]   ;;  %s5669_s0 = inlined_call_operand.vmem [shape: f32[128,16], index: 0, kind: input, shape index: {}]   ;;  %s5670_s3 = inlined_call_operand.vmem [shape: f32[6,64,1], index: 3, kind: input, shape index: {}]   ;;  %s5671_s5 = inlined_call_operand.vmem [shape: f32[6,128,1], index: 5, kind: input, shape index: {}]   ;;  %s5672_s1 = inlined_call_operand.vmem [shape: f32[64,16], index: 1, kind: input, shape index: {}]   ;;  %s5673_s7 = inlined_call_operand.vmem [shape: f32[6,64,1], index: 7, kind: input, shape index: {}]   ;;  %s5674_s4 = inlined_call_operand.vmem [shape: f32[6,128,64], index: 4, kind: input, shape index: {}]   ;;  %s5675_s8 = inlined_call_operand.vmem [shape: f32[64,1], index: 8, kind: input, shape index: {}]   ;;  %s5676_s12 = inlined_call_operand.<no memory space> [shape: f32[1,1], index: 12, kind: input, shape index: {}]   ;;  %s5677_s10 = inlined_call_operand.vmem [shape: f32[64,1], index: 10, kind: input, shape index: {}]   ;;  %s5678_s6 = inlined_call_operand.vmem [shape: f32[6,64,128], index: 6, kind: input, shape index: {}]   ;;  %s5679_s9 = inlined_call_operand.vmem [shape: f32[64,64], index: 9, kind: input, shape index: {}]   ;;  %s5680_s11 = inlined_call_operand.vmem [shape: f32[1,64], index: 11, kind: input, shape index: {}]   ;;  %s5681_s13 = inlined_call_operand.vmem [shape: f32[1,128], index: 13, kind: output, shape index: {}]  }
   0x1   :  { %3710 = vset.pattern.permute.xlu2 %v3727_v0  ;;  %3709 = vset.pattern.permute.xlu1 %v3727_v0  ;;  %v74_v1 = vld [vmem:[%s5668_s2 + $0x20] sm:$0xff]  ;;  %v72_v2 = vld [vmem:[%s5668_s2 + $0x10] sm:$0xff]  ;;  %v69_v4 = vld [vmem:[%s5669_s0 + $0x78] sm:$0xff] }
   0x2   :  { %v70_v3 = vld [vmem:[%s5668_s2] sm:$0xff]  ;;  %3708 = vset.pattern.permute.xlu0 %v3727_v0  ;;  %100 = vperm.xlu2 %3710, %v74_v1   ;;  %v68_v5 = vld [vmem:[%s5669_s0 + $0x70] sm:$0xff]  ;;  %v75_v6 = vld [vmem:[%s5668_s2 + $0x28] sm:$0xff] }
   0x3   :  { %90 = vperm.xlu1 %3709, %v72_v2   ;;  %80 = vperm.xlu0 %3708, %v70_v3   ;;  %v73_v7 = vld [vmem:[%s5668_s2 + $0x18] sm:$0xff]  ;;  %v71_v8 = vld [vmem:[%s5668_s2 + $0x8] sm:$0xff]  ;;  %v66_v10 = vld [vmem:[%s5669_s0 + $0x60] sm:$0xff] }
   0x4   :  { %3289 = vmatpush.xpose.msk.msra.mxu0 %vm118_vm0, %v69_v4  ;;  %v67_v9 = vld [vmem:[%s5669_s0 + $0x68] sm:$0xff]  ;;  %v239_v11 = vld [vmem:[%s5670_s3 + $0x38] sm:$0xff]  ;;  %v76_v13 = vld [vmem:[%s5668_s2 + $0x30] sm:$0xff] }
   0x5   :  { %v77_v12 = vld [vmem:[%s5668_s2 + $0x38] sm:$0xff]  ;;  %v64_v15 = vld [vmem:[%s5669_s0 + $0x50] sm:$0xff]  ;;  %v236_v16 = vld [vmem:[%s5670_s3 + $0x20] sm:$0xff] }
   0x6   :  { %v65_v14 = vld [vmem:[%s5669_s0 + $0x58] sm:$0xff]  ;;  %v237_v17 = vld [vmem:[%s5670_s3 + $0x28] sm:$0xff]  ;;  %v238_v18 = vld [vmem:[%s5670_s3 + $0x30] sm:$0xff] }
   0x7   :  { %v63_v19 = vld [vmem:[%s5669_s0 + $0x48] sm:$0xff]  ;;  %v62_v20 = vld [vmem:[%s5669_s0 + $0x40] sm:$0xff]  ;;  %v234_v22 = vld [vmem:[%s5670_s3 + $0x10] sm:$0xff] }
   0x8   :  { %3290 = vmatpush.xpose.msk.msra.mxu0 %vm118_vm0, %v68_v5  ;;  %v233_v21 = vld [vmem:[%s5670_s3 + $0x8] sm:$0xff]  ;;  %v235_v23 = vld [vmem:[%s5670_s3 + $0x18] sm:$0xff]  ;;  %v60_v25 = vld [vmem:[%s5669_s0 + $0x30] sm:$0xff] }
   0x9   :  { %v61_v24 = vld [vmem:[%s5669_s0 + $0x38] sm:$0xff]  ;;  %v366_v26 = vld [vmem:[%s5671_s5 + $0x70] sm:$0xff]  ;;  %v232_v28 = vld [vmem:[%s5670_s3] sm:$0xff] }
   0xa   :  { %105 = vperm.xlu2 %3710, %v75_v6   ;;  %v367_v27 = vld [vmem:[%s5671_s5 + $0x78] sm:$0xff]  ;;  %v59_v29 = vld [vmem:[%s5669_s0 + $0x28] sm:$0xff]  ;;  %v58_v30 = vld [vmem:[%s5669_s0 + $0x20] sm:$0xff] }
   0xb   :  { %95 = vperm.xlu1 %3709, %v73_v7   ;;  %85 = vperm.xlu0 %3708, %v71_v8   ;;  %v363_v31 = vld [vmem:[%s5671_s5 + $0x58] sm:$0xff]  ;;  %v364_v32 = vld [vmem:[%s5671_s5 + $0x60] sm:$0xff]  ;;  %v365_v33 = vld [vmem:[%s5671_s5 + $0x68] sm:$0xff] }
   0xc   :  { %3291 = vmatpush.xpose.msk.msra.mxu0 %vm118_vm0, %v67_v9  ;;  %v57_v34 = vld [vmem:[%s5669_s0 + $0x18] sm:$0xff]  ;;  %v56_v35 = vld [vmem:[%s5669_s0 + $0x10] sm:$0xff]  ;;  %v360_v36 = vld [vmem:[%s5671_s5 + $0x40] sm:$0xff] }
   0xd   :  { %v361_v37 = vld [vmem:[%s5671_s5 + $0x48] sm:$0xff]  ;;  %v362_v38 = vld [vmem:[%s5671_s5 + $0x50] sm:$0xff]  ;;  %v54_v40 = vld [vmem:[%s5669_s0] sm:$0xff] }
   0xe   :  { %v55_v39 = vld [vmem:[%s5669_s0 + $0x8] sm:$0xff]  ;;  %v46_v42 = vld [vmem:[%s5672_s1] sm:$0xff]  ;;  %v358_v43 = vld [vmem:[%s5671_s5 + $0x30] sm:$0xff] }
   0xf   :  { %v357_v41 = vld [vmem:[%s5671_s5 + $0x28] sm:$0xff]  ;;  %v359_v44 = vld [vmem:[%s5671_s5 + $0x38] sm:$0xff]  ;;  %v354_v45 = vld [vmem:[%s5671_s5 + $0x10] sm:$0xff] }
  0x10   :  { %3292 = vmatpush.xpose.msk.msra.mxu0 %vm118_vm0, %v66_v10  ;;  %v47_v46 = vld [vmem:[%s5672_s1 + $0x8] sm:$0xff]  ;;  %v355_v47 = vld [vmem:[%s5671_s5 + $0x18] sm:$0xff]  ;;  %v356_v48 = vld [vmem:[%s5671_s5 + $0x20] sm:$0xff] }
  0x11   :  { %v602_v49 = vld [vmem:[%s5673_s7] sm:$0xff]  ;;  %v48_v50 = vld [vmem:[%s5672_s1 + $0x10] sm:$0xff]  ;;  %v353_v52 = vld [vmem:[%s5671_s5 + $0x8] sm:$0xff] }
  0x12   :  { %325 = vperm.xlu2 %3710, %v239_v11   ;;  %v352_v51 = vld [vmem:[%s5671_s5] sm:$0xff]  ;;  %v605_v53 = vld [vmem:[%s5673_s7 + $0x18] sm:$0xff]  ;;  %v604_v55 = vld [vmem:[%s5673_s7 + $0x10] sm:$0xff] }
  0x13   :  { %115 = vperm.xlu1 %3709, %v77_v12   ;;  %110 = vperm.xlu0 %3708, %v76_v13   ;;  %v49_v54 = vld [vmem:[%s5672_s1 + $0x18] sm:$0xff]  ;;  %v603_v56 = vld [vmem:[%s5673_s7 + $0x8] sm:$0xff]  ;;  %v608_v57 = vld [vmem:[%s5673_s7 + $0x30] sm:$0xff] }
  0x14   :  { %3293 = vmatpush.xpose.msk.msra.mxu0 %vm118_vm0, %v65_v14  ;;  %v50_v58 = vld [vmem:[%s5672_s1 + $0x20] sm:$0xff]  ;;  %v607_v59 = vld [vmem:[%s5673_s7 + $0x28] sm:$0xff]  ;;  %v3335_v61 = vld [vmem:[%s5670_s3 + $0x70] sm:$0xff] }
  0x15   :  { %v606_v60 = vld [vmem:[%s5673_s7 + $0x20] sm:$0xff]  ;;  %v51_v62 = vld [vmem:[%s5672_s1 + $0x28] sm:$0xff]  ;;  %v3336_v63 = vld [vmem:[%s5670_s3 + $0x78] sm:$0xff] }
  0x16   :  { %v609_v0 = vld [vmem:[%s5673_s7 + $0x38] sm:$0xff]  ;;  %v52_v2 = vld [vmem:[%s5672_s1 + $0x30] sm:$0xff]  ;;  %v3333_v3 = vld [vmem:[%s5670_s3 + $0x60] sm:$0xff] }
  0x17   :  { %v3332_v1 = vld [vmem:[%s5670_s3 + $0x58] sm:$0xff]  ;;  %v3334_v4 = vld [vmem:[%s5670_s3 + $0x68] sm:$0xff]  ;;  %v3329_v5 = vld [vmem:[%s5670_s3 + $0x40] sm:$0xff] }
  0x18   :  { %3294 = vmatpush.xpose.msk.msra.mxu0 %vm118_vm0, %v64_v15  ;;  %v53_v6 = vld [vmem:[%s5672_s1 + $0x38] sm:$0xff]  ;;  %v3330_v7 = vld [vmem:[%s5670_s3 + $0x48] sm:$0xff]  ;;  %v3331_v8 = vld [vmem:[%s5670_s3 + $0x50] sm:$0xff] }
  0x19   :  { %v3366_v9 = vld [vmem:[%s5671_s5 + $0xe8] sm:$0xff]  ;;  %v3367_v10 = vld [vmem:[%s5671_s5 + $0xf0] sm:$0xff]  ;;  %v3368_v11 = vld [vmem:[%s5671_s5 + $0xf8] sm:$0xff] }
  0x1a   :  { %310 = vperm.xlu2 %3710, %v236_v16   ;;  %v3363_v12 = vld [vmem:[%s5671_s5 + $0xd0] sm:$0xff]  ;;  %v3364_v13 = vld [vmem:[%s5671_s5 + $0xd8] sm:$0xff]  ;;  %v3365_v14 = vld [vmem:[%s5671_s5 + $0xe0] sm:$0xff] }
  0x1b   :  { %315 = vperm.xlu1 %3709, %v237_v17   ;;  %320 = vperm.xlu0 %3708, %v238_v18   ;;  %v3360_v15 = vld [vmem:[%s5671_s5 + $0xb8] sm:$0xff]  ;;  %v3361_v16 = vld [vmem:[%s5671_s5 + $0xc0] sm:$0xff]  ;;  %v3362_v17 = vld [vmem:[%s5671_s5 + $0xc8] sm:$0xff] }
  0x1c   :  { %3295 = vmatpush.xpose.msk.msra.mxu0 %vm118_vm0, %v63_v19  ;;  %v3357_v18 = vld [vmem:[%s5671_s5 + $0xa0] sm:$0xff]  ;;  %v3358_v19 = vld [vmem:[%s5671_s5 + $0xa8] sm:$0xff] }
  0x20   :  { %3296 = vmatpush.xpose.msk.msra.mxu0 %vm118_vm0, %v62_v20  ;;  %v3359_v20 = vld [vmem:[%s5671_s5 + $0xb0] sm:$0xff] }
  0x22   :  { %295 = vperm.xlu2 %3710, %v233_v21   ;;  %v3354_v21 = vld [vmem:[%s5671_s5 + $0x88] sm:$0xff] }
  0x23   :  { %300 = vperm.xlu1 %3709, %v234_v22   ;;  %305 = vperm.xlu0 %3708, %v235_v23   ;;  %v3355_v22 = vld [vmem:[%s5671_s5 + $0x90] sm:$0xff]  ;;  %v3356_v23 = vld [vmem:[%s5671_s5 + $0x98] sm:$0xff] }
  0x24   :  { %3297 = vmatpush.xpose.msk.msra.mxu0 %vm118_vm0, %v61_v24  ;;  %v3394_v24 = vld [vmem:[%s5673_s7 + $0x48] sm:$0xff] }
  0x28   :  { %3298 = vmatpush.xpose.msk.msra.mxu0 %vm118_vm0, %v60_v25  ;;  %v3393_v25 = vld [vmem:[%s5673_s7 + $0x40] sm:$0xff] }
  0x2a   :  { %440 = vperm.xlu2 %3710, %v366_v26   ;;  %v3353_v26 = vld [vmem:[%s5671_s5 + $0x80] sm:$0xff] }
  0x2b   :  { %445 = vperm.xlu1 %3709, %v367_v27   ;;  %290 = vperm.xlu0 %3708, %v232_v28   ;;  %v3397_v27 = vld [vmem:[%s5673_s7 + $0x60] sm:$0xff]  ;;  %v3396_v28 = vld [vmem:[%s5673_s7 + $0x58] sm:$0xff] }
  0x2c   :  { %3299 = vmatpush.xpose.msk.msra.mxu0 %vm118_vm0, %v59_v29  ;;  %v3395_v29 = vld [vmem:[%s5673_s7 + $0x50] sm:$0xff] }
  0x30   :  { %3300 = vmatpush.xpose.msk.msra.mxu0 %vm118_vm0, %v58_v30  ;;  %v3400_v30 = vld [vmem:[%s5673_s7 + $0x78] sm:$0xff] }
  0x32   :  { %425 = vperm.xlu2 %3710, %v363_v31   ;;  %v3399_v31 = vld [vmem:[%s5673_s7 + $0x70] sm:$0xff] }
  0x33   :  { %430 = vperm.xlu1 %3709, %v364_v32   ;;  %435 = vperm.xlu0 %3708, %v365_v33   ;;  %v3398_v32 = vld [vmem:[%s5673_s7 + $0x68] sm:$0xff] }
  0x34   :  { %3301 = vmatpush.xpose.msk.msra.mxu0 %vm118_vm0, %v57_v34  ;;  %v3406_v33 = vld [vmem:[%s5670_s3 + $0xa8] sm:$0xff] }
  0x38   :  { %3302 = vmatpush.xpose.msk.msra.mxu0 %vm118_vm0, %v56_v35  ;;  %v3407_v35 = vld [vmem:[%s5670_s3 + $0xb0] sm:$0xff] }
  0x3a   :  { %410 = vperm.xlu2 %3710, %v360_v36   ;;  %v3408_v36 = vld [vmem:[%s5670_s3 + $0xb8] sm:$0xff] }
  0x3b   :  { %415 = vperm.xlu1 %3709, %v361_v37   ;;  %420 = vperm.xlu0 %3708, %v362_v38   ;;  %v3403_v37 = vld [vmem:[%s5670_s3 + $0x90] sm:$0xff] }
  0x3c   :  { %3303 = vmatpush.xpose.msk.msra.mxu0 %vm118_vm0, %v55_v39  ;;  %v3404_v39 = vld [vmem:[%s5670_s3 + $0x98] sm:$0xff] }
  0x40   :  { %3304 = vmatpush.xpose.msk.msra.mxu0 %vm118_vm0, %v54_v40  ;;  %v3405_v40 = vld [vmem:[%s5670_s3 + $0xa0] sm:$0xff] }
  0x42   :  { %395 = vperm.xlu2 %3710, %v357_v41   ;;  %v3440_v41 = vld [vmem:[%s5671_s5 + $0x178] sm:$0xff] }
  0x43   :  { %3305 = vmatmul.msk.f32.vlgmr.msra.gmra.mxu0 %vm118_vm0, %v46_v42  ;;  %400 = vperm.xlu1 %3709, %v358_v43   ;;  %v3401_v43 = vld [vmem:[%s5670_s3 + $0x80] sm:$0xff] }
  0x44   :  { %405 = vperm.xlu0 %3708, %v359_v44   ;;  %v3402_v44 = vld [vmem:[%s5670_s3 + $0x88] sm:$0xff] }
  0x4a   :  { %380 = vperm.xlu2 %3710, %v354_v45   ;;  %v3437_v45 = vld [vmem:[%s5671_s5 + $0x160] sm:$0xff] }
  0x4b   :  { %3306 = vmatmul.msk.f32.gmra.mxu0 %vm118_vm0, %v47_v46  ;;  %385 = vperm.xlu1 %3709, %v355_v47   ;;  %v3438_v47 = vld [vmem:[%s5671_s5 + $0x168] sm:$0xff] }
  0x4c   :  { %390 = vperm.xlu0 %3708, %v356_v48   ;;  %v3439_v48 = vld [vmem:[%s5671_s5 + $0x170] sm:$0xff] }
  0x52   :  { %612 = vperm.xlu2 %3710, %v602_v49  }
  0x53   :  { %3307 = vmatmul.msk.f32.gmra.mxu0 %vm118_vm0, %v48_v50  ;;  %370 = vperm.xlu1 %3709, %v352_v51   ;;  %v3434_v50 = vld [vmem:[%s5671_s5 + $0x148] sm:$0xff] }
  0x54   :  { %375 = vperm.xlu0 %3708, %v353_v52   ;;  %v3435_v52 = vld [vmem:[%s5671_s5 + $0x150] sm:$0xff] }
  0x5a   :  { %627 = vperm.xlu2 %3710, %v605_v53   ;;  %v3436_v53 = vld [vmem:[%s5671_s5 + $0x158] sm:$0xff] }
  0x5b   :  { %3308 = vmatmul.msk.f32.gmra.mxu0 %vm118_vm0, %v49_v54  ;;  %622 = vperm.xlu1 %3709, %v604_v55  }
  0x5c   :  { %617 = vperm.xlu0 %3708, %v603_v56   ;;  %v101_v55 = vpop.permute.xlu2 %100  ;;  %v3431_v56 = vld [vmem:[%s5671_s5 + $0x130] sm:$0xff] }
  0x62   :  { %642 = vperm.xlu2 %3710, %v608_v57  }
  0x63   :  { %3309 = vmatmul.msk.f32.gmra.mxu0 %vm118_vm0, %v50_v58  ;;  %637 = vperm.xlu1 %3709, %v607_v59   ;;  %v3432_v59 = vld [vmem:[%s5671_s5 + $0x138] sm:$0xff] }
  0x64   :  { %632 = vperm.xlu0 %3708, %v606_v60  }
  0x6a   :  { %781 = vperm.xlu2 %3710, %v3335_v61   ;;  %v3433_v61 = vld [vmem:[%s5671_s5 + $0x140] sm:$0xff] }
  0x6b   :  { %3310 = vmatmul.msk.f32.gmra.mxu0 %vm118_vm0, %v51_v62  ;;  %786 = vperm.xlu1 %3709, %v3336_v63  }
  0x6c   :  { %647 = vperm.xlu0 %3708, %v609_v0  }
  0x72   :  { %766 = vperm.xlu2 %3710, %v3332_v1  }
  0x73   :  { %3311 = vmatmul.msk.f32.gmra.mxu0 %vm118_vm0, %v52_v2  ;;  %771 = vperm.xlu1 %3709, %v3333_v3  }
  0x74   :  { %776 = vperm.xlu0 %3708, %v3334_v4  }
  0x75   :  { %v81_v49 = vpop.permute.xlu0 %80  ;;  %v91_v54 = vpop.permute.xlu1 %90 }
  0x7a   :  { %751 = vperm.xlu2 %3710, %v3329_v5  }
  0x7b   :  { %3312 = vmatmul.msk.f32.gmra.mxu0 %vm118_vm0, %v53_v6  ;;  %756 = vperm.xlu1 %3709, %v3330_v7   ;;  %v3428_v6 = vld [vmem:[%s5671_s5 + $0x118] sm:$0xff]  ;;  %v3728_v7 = vmov 64.0  }
  0x7c   :  { %761 = vperm.xlu0 %3708, %v3331_v8   ;;  %3711 = vrcp.f32 %v3728_v7  ;;  %v106_v8 = vpop.permute.xlu2 %105 }
  0x7d   :  { %v86_v57 = vpop.permute.xlu0 %85  ;;  %v96_v0 = vpop.permute.xlu1 %95 }
  0x82   :  { %898 = vperm.xlu2 %3710, %v3366_v9  }
  0x83   :  { %903 = vperm.xlu1 %3709, %v3367_v10   ;;  %v3429_v10 = vld [vmem:[%s5671_s5 + $0x120] sm:$0xff] }
  0x84   :  { %908 = vperm.xlu0 %3708, %v3368_v11  }
  0x8a   :  { %883 = vperm.xlu2 %3710, %v3363_v12  }
  0x8b   :  { %888 = vperm.xlu1 %3709, %v3364_v13  }
  0x8c   :  { %893 = vperm.xlu0 %3708, %v3365_v14   ;;  %v3430_v14 = vld [vmem:[%s5671_s5 + $0x128] sm:$0xff] }
  0x92   :  { %868 = vperm.xlu2 %3710, %v3360_v15   ;;  %v111_v15 = vpop.permute.xlu0 %110 }
  0x93   :  { %873 = vperm.xlu1 %3709, %v3361_v16  }
  0x94   :  { %878 = vperm.xlu0 %3708, %v3362_v17  }
  0x9a   :  { %853 = vperm.xlu2 %3710, %v3357_v18  }
  0x9b   :  { %858 = vperm.xlu1 %3709, %v3358_v19   ;;  %v3712_v19 = vpop.eup %3711 }
  0x9c   :  { %863 = vperm.xlu0 %3708, %v3359_v20   ;;  %vm266_vm1 = vweird.f32 %v3712_v19 }
  0xa2   :  { %838 = vperm.xlu2 %3710, %v3354_v21  }
  0xa3   :  { %843 = vperm.xlu1 %3709, %v3355_v22  }
  0xa4   :  { %848 = vperm.xlu0 %3708, %v3356_v23  }
  0xaa   :  { %1081 = vperm.xlu2 %3710, %v3394_v24   ;;  %v3425_v24 = vld [vmem:[%s5671_s5 + $0x100] sm:$0xff] }
  0xab   :  { %1076 = vperm.xlu1 %3709, %v3393_v25   ;;  %v116_v25 = vpop.permute.xlu1 %115 }
  0xac   :  { %833 = vperm.xlu0 %3708, %v3353_v26  }
  0xb2   :  { %1096 = vperm.xlu2 %3710, %v3397_v27   ;;  %v262_v27 = vmul.f32 64.0, %v3712_v19 }
  0xb3   :  { %1091 = vperm.xlu1 %3709, %v3396_v28   ;;  %v3426_v28 = vld [vmem:[%s5671_s5 + $0x108] sm:$0xff] }
  0xb4   :  { %1086 = vperm.xlu0 %3708, %v3395_v29  }
  0xba   :  { %1111 = vperm.xlu2 %3710, %v3400_v30  }
  0xbb   :  { %1106 = vperm.xlu1 %3709, %v3399_v31   ;;  %v3427_v31 = vld [vmem:[%s5671_s5 + $0x110] sm:$0xff] }
  0xbc   :  { %1101 = vperm.xlu0 %3708, %v3398_v32  }
  0xc0   :  { %v208_v34 = vpop.f32.mrf.mxu0 }
  0xc1   :  { %v4167_v62 = vadd.f32 %v208_v34, %v81_v49  ;;  %v263_v34 = vsub.f32 1.0, %v262_v27 }
  0xc2   :  { %1240 = vperm.xlu2 %3710, %v3406_v33  }
  0xc3   :  { %1245 = vperm.xlu1 %3709, %v3407_v35   ;;  %v240_v3 = vmul.f32 %v4167_v62, %v4167_v62 }
  0xc4   :  { %1250 = vperm.xlu0 %3708, %v3408_v36  }
  0xc8   :  { %v211_v38 = vpop.f32.mrf.mxu0 }
  0xc9   :  { %v4162_v60 = vadd.f32 %v211_v38, %v86_v57  ;;  %v264_v38 = vmul.f32 %v3712_v19, %v263_v34 }
  0xca   :  { %1225 = vperm.xlu2 %3710, %v3403_v37   ;;  %v3467_v37 = vld [vmem:[%s5673_s7 + $0x90] sm:$0xff] }
  0xcb   :  { %1230 = vperm.xlu1 %3709, %v3404_v39   ;;  %v241_v1 = vmul.f32 %v4162_v60, %v4162_v60  ;;  %v3466_v39 = vld [vmem:[%s5673_s7 + $0x88] sm:$0xff] }
  0xcc   :  { %1235 = vperm.xlu0 %3708, %v3405_v40  }
  0xcd   :  { %v248_v11 = vadd.f32 %v241_v1, %v240_v3  ;;  %v326_v1 = vpop.permute.xlu2 %325 }
  0xd0   :  { %v214_v42 = vpop.f32.mrf.mxu0 }
  0xd1   :  { %v4169_v63 = vadd.f32 %v214_v42, %v91_v54  ;;  %v3472_v54 = vld [vmem:[%s5673_s7 + $0xb8] sm:$0xff] }
  0xd2   :  { %1372 = vperm.xlu2 %3710, %v3440_v41   ;;  %v3465_v41 = vld [vmem:[%s5673_s7 + $0x80] sm:$0xff] }
  0xd3   :  { %1215 = vperm.xlu1 %3709, %v3401_v43   ;;  %v242_v4 = vmul.f32 %v4169_v63, %v4169_v63  ;;  %v265_v43 = vadd.f32 %v3712_v19, %v264_v38  ;;  %v3508_v38 = vld [vmem:[%s5671_s5 + $0x1d8] sm:$0xff] }
  0xd4   :  { %1220 = vperm.xlu0 %3708, %v3402_v44  }
  0xd5   :  { %v249_v16 = vadd.f32 %v248_v11, %v242_v4  ;;  %v321_v4 = vpop.permute.xlu0 %320  ;;  %v3476_v11 = vld [vmem:[%s5670_s3 + $0xd8] sm:$0xff] }
  0xd8   :  { %v217_v46 = vpop.f32.mrf.mxu0 }
  0xd9   :  { %v4173_v2 = vadd.f32 %v217_v46, %v96_v0  ;;  %v3470_v46 = vld [vmem:[%s5673_s7 + $0xa8] sm:$0xff]  ;;  %v3479_v0 = vld [vmem:[%s5670_s3 + $0xf0] sm:$0xff] }
  0xda   :  { %1357 = vperm.xlu2 %3710, %v3437_v45  }
  0xdb   :  { %1362 = vperm.xlu1 %3709, %v3438_v47   ;;  %v243_v12 = vmul.f32 %v4173_v2, %v4173_v2  ;;  %v4227_v47 = vsel %vm266_vm1, %v3712_v19, %v265_v43  ;;  %v311_v19 = vpop.permute.xlu2 %310  ;;  %v336_v43 = vld [vmem:[%s5674_s4] sm:$0xff] }
  0xdc   :  { %1367 = vperm.xlu0 %3708, %v3439_v48   ;;  %v3469_v48 = vld [vmem:[%s5673_s7 + $0xa0] sm:$0xff] }
  0xdd   :  { %v250_v20 = vadd.f32 %v249_v16, %v243_v12 }
  0xe0   :  { %v220_v51 = vpop.f32.mrf.mxu0 }
  0xe1   :  { %v4179_v5 = vadd.f32 %v220_v51, %v101_v55  ;;  %v3471_v55 = vld [vmem:[%s5673_s7 + $0xb0] sm:$0xff] }
  0xe2   :  { %1342 = vperm.xlu2 %3710, %v3434_v50   ;;  %v3468_v50 = vld [vmem:[%s5673_s7 + $0x98] sm:$0xff] }
  0xe3   :  { %1347 = vperm.xlu1 %3709, %v3435_v52   ;;  %v244_v17 = vmul.f32 %v4179_v5, %v4179_v5 }
  0xe4   :  { %1352 = vperm.xlu0 %3708, %v3436_v53   ;;  %v3480_v53 = vld [vmem:[%s5670_s3 + $0xf8] sm:$0xff] }
  0xe5   :  { %v251_v22 = vadd.f32 %v250_v20, %v244_v17 }
  0xe8   :  { %v223_v58 = vpop.f32.mrf.mxu0 }
  0xe9   :  { %v4189_v13 = vadd.f32 %v223_v58, %v106_v8  ;;  %v3477_v58 = vld [vmem:[%s5670_s3 + $0xe0] sm:$0xff]  ;;  %v3474_v8 = vld [vmem:[%s5670_s3 + $0xc8] sm:$0xff] }
  0xea   :  { %1327 = vperm.xlu2 %3710, %v3431_v56  }
  0xeb   :  { %1332 = vperm.xlu1 %3709, %v3432_v59   ;;  %v245_v21 = vmul.f32 %v4189_v13, %v4189_v13 }
  0xec   :  { %1337 = vperm.xlu0 %3708, %v3433_v61   ;;  %v3478_v61 = vld [vmem:[%s5670_s3 + $0xe8] sm:$0xff] }
  0xed   :  { %v252_v29 = vadd.f32 %v251_v22, %v245_v21  ;;  %v306_v22 = vpop.permute.xlu0 %305 }
  0xf0   :  { %v226_v9 = vpop.f32.mrf.mxu0 }
  0xf1   :  { %v4196_v18 = vadd.f32 %v226_v9, %v111_v15  ;;  %v3475_v9 = vld [vmem:[%s5670_s3 + $0xd0] sm:$0xff]  ;;  %v316_v15 = vpop.permute.xlu1 %315 }
  0xf2   :  { %1312 = vperm.xlu2 %3710, %v3428_v6  }
  0xf3   :  { %1317 = vperm.xlu1 %3709, %v3429_v10   ;;  %v246_v23 = vmul.f32 %v4196_v18, %v4196_v18 }
  0xf4   :  { %1322 = vperm.xlu0 %3708, %v3430_v14  }
  0xf5   :  { %v253_v32 = vadd.f32 %v252_v29, %v246_v23 }
  0xf8   :  { %v229_v26 = vpop.f32.mrf.mxu0 }
  0xf9   :  { %v4208_v30 = vadd.f32 %v229_v26, %v116_v25  ;;  %v3512_v26 = vld [vmem:[%s5671_s5 + $0x1f8] sm:$0xff] }
  0xfa   :  { %1297 = vperm.xlu2 %3710, %v3425_v24   ;;  %v3511_v24 = vld [vmem:[%s5671_s5 + $0x1f0] sm:$0xff] }
  0xfb   :  { %v247_v33 = vmul.f32 %v4208_v30, %v4208_v30  ;;  %1302 = vperm.xlu1 %3709, %v3426_v28   ;;  %v3473_v28 = vld [vmem:[%s5670_s3 + $0xc0] sm:$0xff] }
  0xfc   :  { %1307 = vperm.xlu0 %3708, %v3427_v31  }
  0xfd   :  { %v254_v35 = vadd.f32 %v253_v32, %v247_v33  ;;  %v301_v33 = vpop.permute.xlu1 %300 }
  0xff   :  { %v255_v36 = vrot.slane %v254_v35, 4 }
 0x101   :  { %v256_v40 = vadd.f32 %v255_v36, %v254_v35  ;;  %v296_v36 = vpop.permute.xlu2 %295 }
 0x102   :  { %1550 = vperm.xlu2 %3710, %v3467_v37  }
 0x103   :  { %v257_v42 = vrot.slane %v256_v40, 2  ;;  %1545 = vperm.xlu1 %3709, %v3466_v39   ;;  %v291_v39 = vpop.permute.xlu0 %290 }
 0x104   :  { %1540 = vperm.xlu0 %3708, %v3465_v41  }
 0x105   :  { %v258_v44 = vadd.f32 %v257_v42, %v256_v40  ;;  %v3509_v40 = vld [vmem:[%s5671_s5 + $0x1e0] sm:$0xff]  ;;  %v3510_v42 = vld [vmem:[%s5671_s5 + $0x1e8] sm:$0xff] }
 0x107   :  { %v259_v45 = vrot.slane %v258_v44, 1 }
 0x109   :  { %v260_v49 = vadd.f32 %v259_v45, %v258_v44  ;;  %v3505_v44 = vld [vmem:[%s5671_s5 + $0x1c0] sm:$0xff]  ;;  %v3506_v45 = vld [vmem:[%s5671_s5 + $0x1c8] sm:$0xff] }
 0x10a   :  { %1565 = vperm.xlu2 %3710, %v3470_v46   ;;  %v3507_v46 = vld [vmem:[%s5671_s5 + $0x1d0] sm:$0xff] }
 0x10b   :  { %v268_v51 = vmul.f32 %v4227_v47, %v260_v49  ;;  %1560 = vperm.xlu1 %3709, %v3469_v48   ;;  %v337_v48 = vld [vmem:[%s5674_s4 + $0x8] sm:$0xff] }
 0x10c   :  { %1555 = vperm.xlu0 %3708, %v3468_v50   ;;  %v3502_v49 = vld [vmem:[%s5671_s5 + $0x1a8] sm:$0xff]  ;;  %v3503_v50 = vld [vmem:[%s5671_s5 + $0x1b0] sm:$0xff] }
 0x10d   :  { %v269_v52 = vadd.f32 1e-05, %v268_v51  ;;  %v3504_v51 = vld [vmem:[%s5671_s5 + $0x1b8] sm:$0xff] }
 0x10f   :  { %3713 = vrsqrt.f32 %v269_v52  ;;  %vm276_vm3 = vweird.f32 %v269_v52 }
 0x112   :  { %1714 = vperm.xlu2 %3710, %v3480_v53   ;;  %v3499_v53 = vld [vmem:[%s5671_s5 + $0x190] sm:$0xff] }
 0x113   :  { %1575 = vperm.xlu1 %3709, %v3472_v54   ;;  %v3500_v54 = vld [vmem:[%s5671_s5 + $0x198] sm:$0xff] }
 0x114   :  { %1570 = vperm.xlu0 %3708, %v3471_v55   ;;  %v3501_v55 = vld [vmem:[%s5671_s5 + $0x1a0] sm:$0xff] }
 0x115   :  { %v3714_v56 = vpop.eup %3713 }
 0x116   :  { %v271_v57 = vmul.f32 %v3714_v56, %v269_v52  ;;  %vm277_vm2 = vweird.f32 %v3714_v56  ;;  %v338_v52 = vld [vmem:[%s5674_s4 + $0x10] sm:$0xff] }
 0x117   :  { %vm278_vm4 = vmor %vm276_vm3, %vm277_vm2 }
 0x118   :  { %v272_v59 = vmul.f32 %v3714_v56, %v271_v57  ;;  %v3537_v57 = vld [vmem:[%s5673_s7 + $0xc0] sm:$0xff] }
 0x11a   :  { %v273_v3 = vmul.f32 0.5, %v272_v59  ;;  %1699 = vperm.xlu2 %3710, %v3477_v58   ;;  %v3497_v58 = vld [vmem:[%s5671_s5 + $0x180] sm:$0xff]  ;;  %v3498_v59 = vld [vmem:[%s5671_s5 + $0x188] sm:$0xff] }
 0x11b   :  { %1704 = vperm.xlu1 %3709, %v3478_v61   ;;  %v340_v61 = vld [vmem:[%s5674_s4 + $0x20] sm:$0xff] }
 0x11c   :  { %v274_v6 = vsub.f32 1.5, %v273_v3  ;;  %1709 = vperm.xlu0 %3708, %v3479_v0   ;;  %v3540_v0 = vld [vmem:[%s5673_s7 + $0xd8] sm:$0xff]  ;;  %v3538_v3 = vld [vmem:[%s5673_s7 + $0xc8] sm:$0xff] }
 0x11e   :  { %v275_v7 = vmul.f32 %v3714_v56, %v274_v6  ;;  %v3543_v6 = vld [vmem:[%s5673_s7 + $0xf0] sm:$0xff] }
 0x120   :  { %v279_v10 = vsel %vm278_vm4, %v3714_v56, %v275_v7  ;;  %v339_v56 = vld [vmem:[%s5674_s4 + $0x18] sm:$0xff]  ;;  %v3542_v7 = vld [vmem:[%s5673_s7 + $0xe8] sm:$0xff] }
 0x121   :  { %v287_v12 = vmul.f32 %v279_v10, %v4208_v30  ;;  %v286_v14 = vmul.f32 %v279_v10, %v4196_v18  ;;  %v285_v17 = vmul.f32 %v279_v10, %v4189_v13  ;;  %v284_v21 = vmul.f32 %v279_v10, %v4179_v5 }
 0x122   :  { %1684 = vperm.xlu2 %3710, %v3474_v8   ;;  %v283_v25 = vmul.f32 %v279_v10, %v4173_v2  ;;  %v282_v29 = vmul.f32 %v279_v10, %v4169_v63  ;;  %v281_v32 = vmul.f32 %v279_v10, %v4162_v60  ;;  %v280_v35 = vmul.f32 %v279_v10, %v4167_v62  ;;  %v3541_v8 = vld [vmem:[%s5673_s7 + $0xe0] sm:$0xff]  ;;  %v3551_v10 = vld [vmem:[%s5670_s3 + $0x130] sm:$0xff] }
 0x123   :  { %1689 = vperm.xlu1 %3709, %v3475_v9   ;;  %v335_v16 = vmul.f32 %v326_v1, %v287_v12  ;;  %v334_v20 = vmul.f32 %v321_v4, %v286_v14  ;;  %v333_v23 = vmul.f32 %v316_v15, %v285_v17  ;;  %v332_v27 = vmul.f32 %v311_v19, %v284_v21  ;;  %v3539_v1 = vld [vmem:[%s5673_s7 + $0xd0] sm:$0xff]  ;;  %v341_v4 = vld [vmem:[%s5674_s4 + $0x28] sm:$0xff]  ;;  %v3544_v12 = vld [vmem:[%s5673_s7 + $0xf8] sm:$0xff] }
 0x124   :  { %1694 = vperm.xlu0 %3708, %v3476_v11   ;;  %v331_v31 = vmul.f32 %v306_v22, %v283_v25  ;;  %v330_v34 = vmul.f32 %v301_v33, %v282_v29  ;;  %v329_v37 = vmul.f32 %v296_v36, %v281_v32  ;;  %v328_v41 = vmul.f32 %v291_v39, %v280_v35  ;;  %v342_v9 = vld [vmem:[%s5674_s4 + $0x30] sm:$0xff]  ;;  %v3552_v11 = vld [vmem:[%s5670_s3 + $0x138] sm:$0xff]  ;;  %v3550_v17 = vld [vmem:[%s5670_s3 + $0x128] sm:$0xff]  ;;  %v4444_v36 = vpop.permute.xlu1 %445 }
 0x125   :  { %505 = vmatpush.msra.mxu1 %v335_v16  ;;  %v343_v14 = vld [vmem:[%s5674_s4 + $0x38] sm:$0xff]  ;;  %v3549_v16 = vld [vmem:[%s5670_s3 + $0x120] sm:$0xff]  ;;  %v3546_v21 = vld [vmem:[%s5670_s3 + $0x108] sm:$0xff] }
 0x126   :  { %v3548_v15 = vld [vmem:[%s5670_s3 + $0x118] sm:$0xff]  ;;  %v344_v19 = vld [vmem:[%s5674_s4 + $0x40] sm:$0xff]  ;;  %v3547_v22 = vld [vmem:[%s5670_s3 + $0x110] sm:$0xff] }
 0x127   :  { %506 = vmatpush.msra.mxu1 %v334_v20  ;;  %v3545_v20 = vld [vmem:[%s5670_s3 + $0x100] sm:$0xff]  ;;  %v3583_v25 = vld [vmem:[%s5671_s5 + $0x270] sm:$0xff]  ;;  %v3580_v29 = vld [vmem:[%s5671_s5 + $0x258] sm:$0xff] }
 0x128   :  { %v347_v32 = vld [vmem:[%s5674_s4 + $0x58] sm:$0xff]  ;;  %v3577_v35 = vld [vmem:[%s5671_s5 + $0x240] sm:$0xff] }
 0x129   :  { %507 = vmatpush.msra.mxu1 %v333_v23  ;;  %v345_v23 = vld [vmem:[%s5674_s4 + $0x48] sm:$0xff]  ;;  %v3576_v33 = vld [vmem:[%s5671_s5 + $0x238] sm:$0xff]  ;;  %v3573_v39 = vld [vmem:[%s5671_s5 + $0x220] sm:$0xff] }
 0x12a   :  { %1831 = vperm.xlu2 %3710, %v3511_v24   ;;  %v3582_v24 = vld [vmem:[%s5671_s5 + $0x268] sm:$0xff] }
 0x12b   :  { %508 = vmatpush.msra.mxu1 %v332_v27  ;;  %1836 = vperm.xlu1 %3709, %v3512_v26   ;;  %v3584_v26 = vld [vmem:[%s5671_s5 + $0x278] sm:$0xff]  ;;  %v346_v27 = vld [vmem:[%s5674_s4 + $0x50] sm:$0xff] }
 0x12c   :  { %1679 = vperm.xlu0 %3708, %v3473_v28   ;;  %v3579_v28 = vld [vmem:[%s5671_s5 + $0x250] sm:$0xff] }
 0x12d   :  { %509 = vmatpush.msra.mxu1 %v331_v31  ;;  %v3581_v31 = vld [vmem:[%s5671_s5 + $0x260] sm:$0xff] }
 0x12f   :  { %510 = vmatpush.msra.mxu1 %v330_v34  ;;  %v4439_v34 = vpop.permute.xlu2 %440 }
 0x131   :  { %511 = vmatpush.msra.mxu1 %v329_v37  ;;  %v3578_v37 = vld [vmem:[%s5671_s5 + $0x248] sm:$0xff] }
 0x132   :  { %1816 = vperm.xlu2 %3710, %v3508_v38   ;;  %v348_v38 = vld [vmem:[%s5674_s4 + $0x60] sm:$0xff] }
 0x133   :  { %512 = vmatpush.msra.mxu1 %v328_v41  ;;  %1821 = vperm.xlu1 %3709, %v3509_v40   ;;  %v3574_v40 = vld [vmem:[%s5671_s5 + $0x228] sm:$0xff]  ;;  %v3575_v41 = vld [vmem:[%s5671_s5 + $0x230] sm:$0xff] }
 0x134   :  { %1826 = vperm.xlu0 %3708, %v3510_v42   ;;  %3313 = vmatmul.msk.f32.vlgmr.msra.gmra.mxu1 %vm448_vm5, %v336_v43  ;;  %v349_v42 = vld [vmem:[%s5674_s4 + $0x68] sm:$0xff] }
 0x137   :  { %v4465_v43 = vpop.permute.xlu2 %425 }
 0x13a   :  { %1801 = vperm.xlu2 %3710, %v3505_v44   ;;  %v4467_v44 = vpop.permute.xlu0 %435 }
 0x13b   :  { %1806 = vperm.xlu1 %3709, %v3506_v45   ;;  %v4469_v45 = vpop.permute.xlu1 %430 }
 0x13c   :  { %1811 = vperm.xlu0 %3708, %v3507_v46   ;;  %3314 = vmatmul.msk.f32.gmra.mxu1 %vm448_vm5, %v337_v48  ;;  %v3570_v46 = vld [vmem:[%s5671_s5 + $0x208] sm:$0xff]  ;;  %v3571_v48 = vld [vmem:[%s5671_s5 + $0x210] sm:$0xff] }
 0x142   :  { %1786 = vperm.xlu2 %3710, %v3502_v49   ;;  %v3572_v49 = vld [vmem:[%s5671_s5 + $0x218] sm:$0xff] }
 0x143   :  { %1791 = vperm.xlu1 %3709, %v3503_v50   ;;  %v350_v50 = vld [vmem:[%s5674_s4 + $0x70] sm:$0xff] }
 0x144   :  { %1796 = vperm.xlu0 %3708, %v3504_v51   ;;  %3315 = vmatmul.msk.f32.gmra.mxu1 %vm448_vm5, %v338_v52  ;;  %v4484_v51 = vpop.permute.xlu2 %410  ;;  %v4486_v52 = vpop.permute.xlu0 %420 }
 0x14a   :  { %1771 = vperm.xlu2 %3710, %v3499_v53   ;;  %v4489_v53 = vpop.permute.xlu1 %415 }
 0x14b   :  { %1776 = vperm.xlu1 %3709, %v3500_v54   ;;  %v3610_v54 = vld [vmem:[%s5673_s7 + $0x108] sm:$0xff] }
 0x14c   :  { %1781 = vperm.xlu0 %3708, %v3501_v55   ;;  %3316 = vmatmul.msk.f32.gmra.mxu1 %vm448_vm5, %v339_v56  ;;  %v3609_v55 = vld [vmem:[%s5673_s7 + $0x100] sm:$0xff] }
 0x14d   :  { %v3569_v56 = vld [vmem:[%s5671_s5 + $0x200] sm:$0xff] }
 0x152   :  { %2004 = vperm.xlu2 %3710, %v3537_v57   ;;  %v351_v57 = vld [vmem:[%s5674_s4 + $0x78] sm:$0xff] }
 0x153   :  { %1761 = vperm.xlu1 %3709, %v3497_v58   ;;  %v4504_v58 = vpop.permute.xlu2 %395 }
 0x154   :  { %1766 = vperm.xlu0 %3708, %v3498_v59   ;;  %3317 = vmatmul.msk.f32.gmra.mxu1 %vm448_vm5, %v340_v61  ;;  %v4506_v59 = vpop.permute.xlu0 %405  ;;  %v4508_v61 = vpop.permute.xlu1 %400 }
 0x15a   :  { %2019 = vperm.xlu2 %3710, %v3540_v0   ;;  %v3613_v0 = vld [vmem:[%s5673_s7 + $0x120] sm:$0xff] }
 0x15b   :  { %2014 = vperm.xlu1 %3709, %v3539_v1   ;;  %v3612_v1 = vld [vmem:[%s5673_s7 + $0x118] sm:$0xff] }
 0x15c   :  { %2009 = vperm.xlu0 %3708, %v3538_v3   ;;  %3318 = vmatmul.msk.f32.gmra.mxu1 %vm448_vm5, %v341_v4  ;;  %v3611_v4 = vld [vmem:[%s5673_s7 + $0x110] sm:$0xff] }
 0x162   :  { %2034 = vperm.xlu2 %3710, %v3543_v6   ;;  %v3616_v6 = vld [vmem:[%s5673_s7 + $0x138] sm:$0xff] }
 0x163   :  { %2029 = vperm.xlu1 %3709, %v3542_v7   ;;  %v4524_v7 = vpop.permute.xlu2 %380 }
 0x164   :  { %2024 = vperm.xlu0 %3708, %v3541_v8   ;;  %3319 = vmatmul.msk.f32.gmra.mxu1 %vm448_vm5, %v342_v9  ;;  %v4526_v8 = vpop.permute.xlu0 %390  ;;  %v3615_v9 = vld [vmem:[%s5673_s7 + $0x130] sm:$0xff] }
 0x16a   :  { %2173 = vperm.xlu2 %3710, %v3551_v10   ;;  %v4531_v10 = vpop.permute.xlu1 %385 }
 0x16b   :  { %2178 = vperm.xlu1 %3709, %v3552_v11  }
 0x16c   :  { %2039 = vperm.xlu0 %3708, %v3544_v12   ;;  %3320 = vmatmul.msk.f32.gmra.mxu1 %vm448_vm5, %v343_v14  ;;  %v3614_v12 = vld [vmem:[%s5673_s7 + $0x128] sm:$0xff] }
 0x16d   :  { %v3622_v14 = vld [vmem:[%s5670_s3 + $0x168] sm:$0xff] }
 0x172   :  { %2158 = vperm.xlu2 %3710, %v3548_v15   ;;  %v3623_v15 = vld [vmem:[%s5670_s3 + $0x170] sm:$0xff] }
 0x173   :  { %2163 = vperm.xlu1 %3709, %v3549_v16  }
 0x174   :  { %2168 = vperm.xlu0 %3708, %v3550_v17   ;;  %3321 = vmatmul.msk.f32.gmra.mxu1 %vm448_vm5, %v344_v19  ;;  %v3624_v17 = vld [vmem:[%s5670_s3 + $0x178] sm:$0xff]  ;;  %v4549_v19 = vpop.permute.xlu2 %612 }
 0x17a   :  { %2143 = vperm.xlu2 %3710, %v3545_v20   ;;  %v4551_v20 = vpop.permute.xlu0 %375 }
 0x17b   :  { %2148 = vperm.xlu1 %3709, %v3546_v21   ;;  %v4553_v21 = vpop.permute.xlu1 %370 }
 0x17c   :  { %2153 = vperm.xlu0 %3708, %v3547_v22   ;;  %3322 = vmatmul.msk.f32.gmra.mxu1 %vm448_vm5, %v345_v23  ;;  %v3619_v22 = vld [vmem:[%s5670_s3 + $0x150] sm:$0xff]  ;;  %v3620_v23 = vld [vmem:[%s5670_s3 + $0x158] sm:$0xff] }
 0x182   :  { %2290 = vperm.xlu2 %3710, %v3582_v24  }
 0x183   :  { %2295 = vperm.xlu1 %3709, %v3583_v25   ;;  %v3621_v25 = vld [vmem:[%s5670_s3 + $0x160] sm:$0xff] }
 0x184   :  { %2300 = vperm.xlu0 %3708, %v3584_v26   ;;  %3323 = vmatmul.msk.f32.gmra.mxu1 %vm448_vm5, %v346_v27  ;;  %v4566_v26 = vpop.permute.xlu2 %627  ;;  %v4568_v27 = vpop.permute.xlu0 %617 }
 0x18a   :  { %2275 = vperm.xlu2 %3710, %v3579_v28   ;;  %v4570_v28 = vpop.permute.xlu1 %622 }
 0x18b   :  { %2280 = vperm.xlu1 %3709, %v3580_v29   ;;  %v3656_v29 = vld [vmem:[%s5671_s5 + $0x2f8] sm:$0xff] }
 0x18c   :  { %2285 = vperm.xlu0 %3708, %v3581_v31   ;;  %3324 = vmatmul.msk.f32.gmra.mxu1 %vm448_vm5, %v347_v32  ;;  %v3617_v31 = vld [vmem:[%s5670_s3 + $0x140] sm:$0xff] }
 0x192   :  { %2260 = vperm.xlu2 %3710, %v3576_v33   ;;  %v3618_v33 = vld [vmem:[%s5670_s3 + $0x148] sm:$0xff] }
 0x193   :  { %2265 = vperm.xlu1 %3709, %v3577_v35   ;;  %v4583_v35 = vpop.permute.xlu2 %642 }
 0x194   :  { %2270 = vperm.xlu0 %3708, %v3578_v37   ;;  %3325 = vmatmul.msk.f32.gmra.mxu1 %vm448_vm5, %v348_v38  ;;  %v4585_v37 = vpop.permute.xlu0 %632  ;;  %v4587_v38 = vpop.permute.xlu1 %637 }
 0x19a   :  { %2245 = vperm.xlu2 %3710, %v3573_v39   ;;  %v3653_v39 = vld [vmem:[%s5671_s5 + $0x2e0] sm:$0xff] }
 0x19b   :  { %2250 = vperm.xlu1 %3709, %v3574_v40   ;;  %v3654_v40 = vld [vmem:[%s5671_s5 + $0x2e8] sm:$0xff] }
 0x19c   :  { %2255 = vperm.xlu0 %3708, %v3575_v41   ;;  %3326 = vmatmul.msk.f32.gmra.mxu1 %vm448_vm5, %v349_v42  ;;  %v3655_v42 = vld [vmem:[%s5671_s5 + $0x2f0] sm:$0xff] }
 0x1a2   :  { %2230 = vperm.xlu2 %3710, %v3570_v46   ;;  %v3650_v46 = vld [vmem:[%s5671_s5 + $0x2c8] sm:$0xff] }
 0x1a3   :  { %2235 = vperm.xlu1 %3709, %v3571_v48   ;;  %v4603_v48 = vpop.permute.xlu2 %781 }
 0x1a4   :  { %2240 = vperm.xlu0 %3708, %v3572_v49   ;;  %3327 = vmatmul.msk.f32.gmra.mxu1 %vm448_vm5, %v350_v50  ;;  %v4605_v49 = vpop.permute.xlu0 %647  ;;  %v3651_v50 = vld [vmem:[%s5671_s5 + $0x2d0] sm:$0xff] }
 0x1aa   :  { %2473 = vperm.xlu2 %3710, %v3610_v54   ;;  %v4610_v54 = vpop.permute.xlu1 %786 }
 0x1ab   :  { %2468 = vperm.xlu1 %3709, %v3609_v55  }
 0x1ac   :  { %2225 = vperm.xlu0 %3708, %v3569_v56   ;;  %3328 = vmatmul.msk.f32.gmra.mxu1 %vm448_vm5, %v351_v57  ;;  %v3652_v56 = vld [vmem:[%s5671_s5 + $0x2d8] sm:$0xff]  ;;  %v3647_v57 = vld [vmem:[%s5671_s5 + $0x2b0] sm:$0xff] }
 0x1b1   :  { %v4516_v3 = vpop.f32.mrf.mxu1 }
 0x1b2   :  { %2488 = vperm.xlu2 %3710, %v3613_v0   ;;  %v3648_v0 = vld [vmem:[%s5671_s5 + $0x2b8] sm:$0xff] }
 0x1b3   :  { %2483 = vperm.xlu1 %3709, %v3612_v1  }
 0x1b4   :  { %2478 = vperm.xlu0 %3708, %v3611_v4   ;;  %v3649_v4 = vld [vmem:[%s5671_s5 + $0x2c0] sm:$0xff] }
 0x1b9   :  { %v4533_v11 = vpop.f32.mrf.mxu1 }
 0x1ba   :  { %2503 = vperm.xlu2 %3710, %v3616_v6   ;;  %v4628_v6 = vpop.permute.xlu2 %766 }
 0x1bb   :  { %2498 = vperm.xlu1 %3709, %v3615_v9   ;;  %5682 = vst [vmem:[#allocation3_spill] sm:$0xff] %v4628_v6  ;;  %v4630_v9 = vpop.permute.xlu0 %776  ;;  %v3127_v6 = vld [vmem:[%s5677_s10 + $0x18] sm:$0xff] }
 0x1bc   :  { %2493 = vperm.xlu0 %3708, %v3614_v12   ;;  %v4632_v12 = vpop.permute.xlu1 %771 }
 0x1bd   :  { %5683 = vst [vmem:[#allocation4_spill] sm:$0xff] %v4632_v12 }
 0x1c1   :  { %v4544_v16 = vpop.f32.mrf.mxu1 }
 0x1c2   :  { %2632 = vperm.xlu2 %3710, %v3622_v14   ;;  %v3644_v14 = vld [vmem:[%s5671_s5 + $0x298] sm:$0xff] }
 0x1c3   :  { %2637 = vperm.xlu1 %3709, %v3623_v15   ;;  %v3645_v15 = vld [vmem:[%s5671_s5 + $0x2a0] sm:$0xff] }
 0x1c4   :  { %2642 = vperm.xlu0 %3708, %v3624_v17  }
 0x1c9   :  { %v4561_v24 = vpop.f32.mrf.mxu1 }
 0x1ca   :  { %2617 = vperm.xlu2 %3710, %v3619_v22   ;;  %v3646_v22 = vld [vmem:[%s5671_s5 + $0x2a8] sm:$0xff] }
 0x1cb   :  { %2622 = vperm.xlu1 %3709, %v3620_v23   ;;  %v4645_v23 = vpop.permute.xlu2 %751 }
 0x1cc   :  { %2627 = vperm.xlu0 %3708, %v3621_v25   ;;  %5684 = vst [vmem:[#allocation5_spill] sm:$0xff] %v4645_v23  ;;  %v4647_v25 = vpop.permute.xlu0 %761  ;;  %v3131_v23 = vld [vmem:[%s5677_s10 + $0x38] sm:$0xff] }
 0x1cd   :  { %5685 = vst [vmem:[#allocation6_spill] sm:$0xff] %v4647_v25 }
 0x1d1   :  { %v4578_v32 = vpop.f32.mrf.mxu1 }
 0x1d2   :  { %2764 = vperm.xlu2 %3710, %v3656_v29   ;;  %v4649_v29 = vpop.permute.xlu1 %756 }
 0x1d3   :  { %2607 = vperm.xlu1 %3709, %v3617_v31   ;;  %5686 = vst [vmem:[#allocation7_spill] sm:$0xff] %v4649_v29  ;;  %v3641_v31 = vld [vmem:[%s5671_s5 + $0x280] sm:$0xff] }
 0x1d4   :  { %2612 = vperm.xlu0 %3708, %v3618_v33   ;;  %v3642_v33 = vld [vmem:[%s5671_s5 + $0x288] sm:$0xff] }
 0x1d9   :  { %v4595_v41 = vpop.f32.mrf.mxu1 }
 0x1da   :  { %2749 = vperm.xlu2 %3710, %v3653_v39  }
 0x1db   :  { %2754 = vperm.xlu1 %3709, %v3654_v40   ;;  %v3643_v40 = vld [vmem:[%s5671_s5 + $0x290] sm:$0xff] }
 0x1dc   :  { %2759 = vperm.xlu0 %3708, %v3655_v42   ;;  %v4662_v42 = vpop.permute.xlu2 %898 }
 0x1dd   :  { %5687 = vst [vmem:[#allocation8_spill] sm:$0xff] %v4662_v42 }
 0x1e1   :  { %v4612_v55 = vpop.f32.mrf.mxu1 }
 0x1e2   :  { %2734 = vperm.xlu2 %3710, %v3650_v46   ;;  %v4664_v46 = vpop.permute.xlu0 %908 }
 0x1e3   :  { %2739 = vperm.xlu1 %3709, %v3651_v50   ;;  %5688 = vst [vmem:[#allocation9_spill] sm:$0xff] %v4664_v46  ;;  %v4666_v50 = vpop.permute.xlu1 %903 }
 0x1e4   :  { %2744 = vperm.xlu0 %3708, %v3652_v56   ;;  %5689 = vst [vmem:[#allocation10_spill] sm:$0xff] %v4666_v50  ;;  %v3683_v56 = vld [vmem:[%s5673_s7 + $0x150] sm:$0xff] }
 0x1e9   :  { %v4623_v1 = vpop.f32.mrf.mxu1 }
 0x1ea   :  { %2719 = vperm.xlu2 %3710, %v3647_v57   ;;  %v3682_v57 = vld [vmem:[%s5673_s7 + $0x148] sm:$0xff] }
 0x1eb   :  { %2724 = vperm.xlu1 %3709, %v3648_v0  }
 0x1ec   :  { %2729 = vperm.xlu0 %3708, %v3649_v4   ;;  %v3681_v4 = vld [vmem:[%s5673_s7 + $0x140] sm:$0xff] }
 0x1f1   :  { %v4640_v17 = vpop.f32.mrf.mxu1 }
 0x1f2   :  { %2704 = vperm.xlu2 %3710, %v3644_v14   ;;  %v3686_v14 = vld [vmem:[%s5673_s7 + $0x168] sm:$0xff] }
 0x1f3   :  { %2709 = vperm.xlu1 %3709, %v3645_v15   ;;  %v4682_v15 = vpop.permute.xlu2 %883 }
 0x1f4   :  { %2714 = vperm.xlu0 %3708, %v3646_v22   ;;  %5690 = vst [vmem:[#allocation11_spill] sm:$0xff] %v4682_v15  ;;  %v4684_v22 = vpop.permute.xlu0 %893 }
 0x1f5   :  { %5691 = vst [vmem:[#allocation12_spill] sm:$0xff] %v4684_v22 }
 0x1f9   :  { %v4657_v39 = vpop.f32.mrf.mxu1 }
 0x1fa   :  { %2689 = vperm.xlu2 %3710, %v3641_v31   ;;  %v3685_v31 = vld [vmem:[%s5673_s7 + $0x160] sm:$0xff] }
 0x1fb   :  { %2694 = vperm.xlu1 %3709, %v3642_v33   ;;  %v4689_v33 = vpop.permute.xlu1 %888  ;;  %v4703_v22 = vpop.permute.xlu2 %868 }
 0x1fc   :  { %2699 = vperm.xlu0 %3708, %v3643_v40   ;;  %5692 = vst [vmem:[#allocation13_spill] sm:$0xff] %v4689_v33  ;;  %v3687_v33 = vld [vmem:[%s5673_s7 + $0x170] sm:$0xff]  ;;  %v4705_v46 = vpop.permute.xlu0 %878 }
 0x1fd   :  { %5693 = vst [vmem:[#allocation14_spill] sm:$0xff] %v4703_v22  ;;  %v3025_v22 = vld [vmem:[%s5675_s8 + $0x30] sm:$0xff] }
 0x1fe   :  { %5694 = vst [vmem:[#allocation15_spill] sm:$0xff] %v4705_v46  ;;  %v3020_v46 = vld [vmem:[%s5675_s8 + $0x8] sm:$0xff] }
 0x201   :  { %v4674_v0 = vpop.f32.mrf.mxu1 }
 0x202   :  { %2942 = vperm.xlu2 %3710, %v3683_v56   ;;  %v3684_v56 = vld [vmem:[%s5673_s7 + $0x158] sm:$0xff] }
 0x203   :  { %2937 = vperm.xlu1 %3709, %v3682_v57   ;;  %v3026_v57 = vld [vmem:[%s5675_s8 + $0x38] sm:$0xff] }
 0x204   :  { %2932 = vperm.xlu0 %3708, %v3681_v4   ;;  %v3688_v4 = vld [vmem:[%s5673_s7 + $0x178] sm:$0xff] }
 0x209   :  { %v547_v40 = vpop.f32.mrf.mxu1 }
 0x20a   :  { %2957 = vperm.xlu2 %3710, %v3686_v14   ;;  %v4707_v14 = vpop.permute.xlu1 %873 }
 0x20b   :  { %2952 = vperm.xlu1 %3709, %v3685_v31   ;;  %5695 = vst [vmem:[#allocation16_spill] sm:$0xff] %v4707_v14  ;;  %v3023_v31 = vld [vmem:[%s5675_s8 + $0x20] sm:$0xff]  ;;  %v4720_v14 = vpop.permute.xlu0 %863 }
 0x20c   :  { %2947 = vperm.xlu0 %3708, %v3684_v56   ;;  %v3024_v56 = vld [vmem:[%s5675_s8 + $0x28] sm:$0xff]  ;;  %5697 = vst [vmem:[#allocation18_spill] sm:$0xff] %v4720_v14  ;;  %v3130_v14 = vld [vmem:[%s5677_s10 + $0x30] sm:$0xff] }
 0x211   :  { %v550_v15 = vpop.f32.mrf.mxu1 }
 0x212   :  { %3105 = vperm.xlu2 %3710, %v3026_v57   ;;  %v4718_v57 = vpop.permute.xlu2 %853 }
 0x213   :  { %2967 = vperm.xlu1 %3709, %v3688_v4   ;;  %5696 = vst [vmem:[#allocation17_spill] sm:$0xff] %v4718_v57  ;;  %v4725_v4 = vpop.permute.xlu1 %858 }
 0x214   :  { %2962 = vperm.xlu0 %3708, %v3687_v33   ;;  %v18_v33 = vstv %s5676_s12  ;;  %5698 = vst [vmem:[#allocation19_spill] sm:$0xff] %v4725_v4  ;;  %v4738_v4 = vpop.permute.xlu0 %848 }
 0x215   :  { %19 = vst [vmem:[#allocation2] sm:$0x1] %v18_v33 }
 0x216   :  { %5700 = vst [vmem:[#allocation21_spill] sm:$0xff] %v4738_v4 }
 0x219   :  { %v553_v42 = vpop.f32.mrf.mxu1 }
 0x21a   :  { %3090 = vperm.xlu2 %3710, %v3023_v31   ;;  %v3021_v31 = vld [vmem:[%s5675_s8 + $0x10] sm:$0xff]  ;;  %v4736_v57 = vpop.permute.xlu2 %838 }
 0x21b   :  { %3095 = vperm.xlu1 %3709, %v3024_v56   ;;  %5699 = vst [vmem:[#allocation20_spill] sm:$0xff] %v4736_v57  ;;  %v4740_v33 = vpop.permute.xlu1 %843  ;;  %v551_v57 = vadd.f32 %v550_v15, %v4469_v45 }
 0x21c   :  { %3100 = vperm.xlu0 %3708, %v3025_v22   ;;  %v3022_v22 = vld [vmem:[%s5675_s8 + $0x18] sm:$0xff]  ;;  %5701 = vst [vmem:[#allocation22_spill] sm:$0xff] %v4740_v33 }
 0x221   :  { %v556_v56 = vpop.f32.mrf.mxu1 }
 0x222   :  { %3075 = vperm.xlu2 %3710, %v3020_v46   ;;  %v557_v50 = vadd.f32 %v556_v56, %v4439_v34  ;;  %v3019_v46 = vld [vmem:[%s5675_s8] sm:$0xff]  ;;  %v548_v56 = vadd.f32 %v547_v40, %v4465_v43  ;;  %v4759_v12 = vpop.permute.xlu2 %1081  ;;  %v574_v43 = vmax.f32 %v551_v57, 0.0  ;;  %v536_v57 = vadd.f32 %v4623_v1, %v4506_v59  ;;  %v3126_v59 = vld [vmem:[%s5677_s10 + $0x10] sm:$0xff] }
 0x223   :  { %3080 = vperm.xlu1 %3709, %v3021_v31   ;;  %v554_v31 = vadd.f32 %v553_v42, %v4467_v44  ;;  %v4761_v44 = vpop.permute.xlu0 %833  ;;  %v3129_v42 = vld [vmem:[%s5677_s10 + $0x28] sm:$0xff] }
 0x224   :  { %3085 = vperm.xlu0 %3708, %v3022_v22   ;;  %v576_v34 = vmax.f32 %v557_v50, 0.0  ;;  %v542_v50 = vadd.f32 %v4657_v39, %v4489_v53  ;;  %v590_v40 = vmul.f32 %v574_v43, %v574_v43  ;;  %v3124_v53 = vld [vmem:[%s5677_s10] sm:$0xff] }
 0x225   :  { %v575_v25 = vmax.f32 %v554_v31, 0.0 }
 0x226   :  { %v592_v45 = vmul.f32 %v576_v34, %v576_v34 }
 0x227   :  { %v591_v15 = vmul.f32 %v575_v25, %v575_v25 }
 0x229   :  { %v559_v29 = vpop.f32.mrf.mxu1 }
 0x22a   :  { %3164 = vperm.xlu2 %3710, %v3130_v14   ;;  %v560_v22 = vadd.f32 %v559_v29, %v4444_v36  ;;  %v545_v36 = vadd.f32 %v4674_v0, %v4486_v52  ;;  %v4768_v29 = vpop.permute.xlu1 %1076  ;;  %v573_v52 = vmax.f32 %v548_v56, 0.0  ;;  %v539_v0 = vadd.f32 %v4640_v17, %v4484_v51  ;;  %v3125_v51 = vld [vmem:[%s5677_s10 + $0x8] sm:$0xff]  ;;  %v4790_v1 = vpop.permute.xlu2 %1096 }
 0x22b   :  { %3169 = vperm.xlu1 %3709, %v3131_v23   ;;  %v3128_v23 = vld [vmem:[%s5677_s10 + $0x20] sm:$0xff]  ;;  %v4792_v39 = vpop.permute.xlu0 %1086 }
 0x22c   :  { %3070 = vperm.xlu0 %3708, %v3019_v46   ;;  %v577_v33 = vmax.f32 %v560_v22, 0.0  ;;  %v572_v14 = vmax.f32 %v545_v36, 0.0  ;;  %v570_v17 = vmax.f32 %v539_v0, 0.0  ;;  %v530_v46 = vadd.f32 %v4595_v41, %v4504_v58 }
 0x22d   :  { %v527_v22 = vadd.f32 %v4578_v32, %v4526_v8  ;;  %v524_v36 = vadd.f32 %v4561_v24, %v4531_v10  ;;  %v521_v41 = vadd.f32 %v4544_v16, %v4524_v7  ;;  %v518_v8 = vadd.f32 %v4533_v11, %v4551_v20 }
 0x22e   :  { %v593_v4 = vmul.f32 %v577_v33, %v577_v33  ;;  %v571_v33 = vmax.f32 %v542_v50, 0.0  ;;  %v588_v25 = vmul.f32 %v572_v14, %v572_v14  ;;  %v586_v34 = vmul.f32 %v570_v17, %v570_v17  ;;  %v594_v14 = vld [vmem:[%s5678_s6] sm:$0xff] }
 0x22f   :  { %v567_v58 = vmax.f32 %v530_v46, 0.0  ;;  %v566_v43 = vmax.f32 %v527_v22, 0.0  ;;  %v565_v50 = vmax.f32 %v524_v36, 0.0  ;;  %v515_v10 = vadd.f32 %v4516_v3, %v4553_v21  ;;  %v595_v3 = vld [vmem:[%s5678_s6 + $0x8] sm:$0xff]  ;;  %v596_v21 = vld [vmem:[%s5678_s6 + $0x10] sm:$0xff] }
 0x230   :  { %650 = vmatpush.msra.mxu2 %v593_v4  ;;  %v589_v4 = vmul.f32 %v573_v52, %v573_v52  ;;  %v564_v52 = vmax.f32 %v521_v41, 0.0  ;;  %v563_v16 = vmax.f32 %v518_v8, 0.0 }
 0x231   :  { %v583_v32 = vmul.f32 %v567_v58, %v567_v58  ;;  %v582_v24 = vmul.f32 %v566_v43, %v566_v43  ;;  %v581_v7 = vmul.f32 %v565_v50, %v565_v50 }
 0x232   :  { %651 = vmatpush.msra.mxu2 %v592_v45  ;;  %3149 = vperm.xlu2 %3710, %v3127_v6   ;;  %v533_v6 = vadd.f32 %v4612_v55, %v4508_v61  ;;  %v587_v61 = vmul.f32 %v571_v33, %v571_v33  ;;  %v569_v55 = vmax.f32 %v536_v57, 0.0  ;;  %v4796_v31 = vpop.permute.xlu1 %1091  ;;  %v580_v0 = vmul.f32 %v564_v52, %v564_v52  ;;  %v597_v57 = vld [vmem:[%s5678_s6 + $0x18] sm:$0xff]  ;;  %v599_v33 = vld [vmem:[%s5678_s6 + $0x28] sm:$0xff] }
 0x233   :  { %3154 = vperm.xlu1 %3709, %v3128_v23   ;;  %v579_v11 = vmul.f32 %v563_v16, %v563_v16 }
 0x234   :  { %3159 = vperm.xlu0 %3708, %v3129_v42   ;;  %652 = vmatpush.msra.mxu2 %v591_v15  ;;  %v568_v56 = vmax.f32 %v533_v6, 0.0  ;;  %v585_v45 = vmul.f32 %v569_v55, %v569_v55  ;;  %v3254_v42 = vld [vmem:[#allocation2] sm:$0x1]  ;;  %v4806_v15 = vpop.permute.xlu0 %1101  ;;  %v601_v6 = vld [vmem:[%s5678_s6 + $0x38] sm:$0xff] }
 0x236   :  { %653 = vmatpush.msra.mxu2 %v590_v40  ;;  %v584_v23 = vmul.f32 %v568_v56, %v568_v56  ;;  %v562_v40 = vmax.f32 %v515_v10, 0.0 }
 0x238   :  { %654 = vmatpush.msra.mxu2 %v589_v4  ;;  %v578_v20 = vmul.f32 %v562_v40, %v562_v40  ;;  %v598_v4 = vld [vmem:[%s5678_s6 + $0x20] sm:$0xff] }
 0x23a   :  { %655 = vmatpush.msra.mxu2 %v588_v25  ;;  %3134 = vperm.xlu2 %3710, %v3124_v53   ;;  %v600_v53 = vld [vmem:[%s5678_s6 + $0x30] sm:$0xff] }
 0x23b   :  { %3139 = vperm.xlu1 %3709, %v3125_v51  }
 0x23c   :  { %3144 = vperm.xlu0 %3708, %v3126_v59   ;;  %656 = vmatpush.msra.mxu2 %v587_v61 }
 0x23e   :  { %657 = vmatpush.msra.mxu2 %v586_v34 }
 0x240   :  { %658 = vmatpush.msra.mxu2 %v585_v45 }
 0x242   :  { %659 = vmatpush.msra.mxu2 %v584_v23 }
 0x244   :  { %3257 = vperm.xlu0 %3708, %v3254_v42   ;;  %660 = vmatpush.msra.mxu2 %v583_v32 }
 0x246   :  { %661 = vmatpush.msra.mxu2 %v582_v24 }
 0x248   :  { %662 = vmatpush.msra.mxu2 %v581_v7 }
 0x24a   :  { %663 = vmatpush.msra.mxu2 %v580_v0 }
 0x24c   :  { %664 = vmatpush.msra.mxu2 %v579_v11 }
 0x24e   :  { %665 = vmatpush.msra.mxu2 %v578_v20 }
 0x24f   :  { %666 = vmatmul.f32.vlgmr.msra.gmra.mxu2 %v594_v14 }
 0x257   :  { %669 = vmatmul.f32.gmra.mxu2 %v595_v3 }
 0x25f   :  { %672 = vmatmul.f32.gmra.mxu2 %v596_v21 }
 0x267   :  { %675 = vmatmul.f32.gmra.mxu2 %v597_v57 }
 0x26f   :  { %678 = vmatmul.f32.gmra.mxu2 %v598_v4 }
 0x277   :  { %681 = vmatmul.f32.gmra.mxu2 %v599_v33 }
 0x27f   :  { %684 = vmatmul.f32.gmra.mxu2 %v600_v53 }
 0x287   :  { %687 = vmatmul.f32.gmra.mxu2 %v601_v6 }
 0x2d2   :  { %v667_v25 = vpop.f32.mrf.mxu2 }
 0x2d3   :  { %v668_v22 = vadd.f32 %v667_v25, %v4549_v19 }
 0x2d5   :  { %v4842_v45 = vadd.f32 %v668_v22, %v4167_v62 }
 0x2da   :  { %v670_v51 = vpop.f32.mrf.mxu2 }
 0x2db   :  { %v671_v61 = vadd.f32 %v670_v51, %v4568_v27 }
 0x2dd   :  { %v4838_v56 = vadd.f32 %v671_v61, %v4162_v60 }
 0x2df   :  { %v709_v27 = vmul.f32 %v4838_v56, %v4838_v56 }
 0x2e2   :  { %v673_v17 = vpop.f32.mrf.mxu2 }
 0x2e3   :  { %v674_v34 = vadd.f32 %v673_v17, %v4570_v28 }
 0x2e5   :  { %v4845_v58 = vadd.f32 %v674_v34, %v4169_v63 }
 0x2e7   :  { %v710_v62 = vmul.f32 %v4845_v58, %v4845_v58 }
 0x2ea   :  { %v676_v59 = vpop.f32.mrf.mxu2 }
 0x2eb   :  { %v677_v36 = vadd.f32 %v676_v59, %v4566_v26  ;;  %v708_v26 = vmul.f32 %v4842_v45, %v4842_v45 }
 0x2ed   :  { %v4851_v19 = vadd.f32 %v677_v36, %v4173_v2  ;;  %v716_v23 = vadd.f32 %v709_v27, %v708_v26  ;;  %v5702_v36 = vld [vmem:[#allocation4_spill] sm:$0xff]  ;;  %v5704_v26 = vld [vmem:[#allocation6_spill] sm:$0xff] }
 0x2ef   :  { %v711_v43 = vmul.f32 %v4851_v19, %v4851_v19 }
 0x2f2   :  { %v679_v46 = vpop.f32.mrf.mxu2 }
 0x2f3   :  { %v680_v41 = vadd.f32 %v679_v46, %v4585_v37 }
 0x2f5   :  { %v4859_v63 = vadd.f32 %v680_v41, %v4179_v5 }
 0x2f7   :  { %v712_v42 = vmul.f32 %v4859_v63, %v4859_v63 }
 0x2fa   :  { %v682_v55 = vpop.f32.mrf.mxu2 }
 0x2fb   :  { %v683_v28 = vadd.f32 %v682_v55, %v4587_v38  ;;  %v717_v38 = vadd.f32 %v716_v23, %v710_v62  ;;  %v5706_v23 = vld [vmem:[#allocation5_spill] sm:$0xff] }
 0x2fd   :  { %v4865_v2 = vadd.f32 %v683_v28, %v4189_v13  ;;  %v718_v32 = vadd.f32 %v717_v38, %v711_v43  ;;  %v5703_v28 = vld [vmem:[#allocation3_spill] sm:$0xff] }
 0x2fe   :  { %v3337_v38 = vld [vmem:[%s5674_s4 + $0x80] sm:$0xff] }
 0x2ff   :  { %v713_v5 = vmul.f32 %v4865_v2, %v4865_v2 }
 0x302   :  { %v685_v60 = vpop.f32.mrf.mxu2 }
 0x303   :  { %v686_v37 = vadd.f32 %v685_v60, %v4583_v35  ;;  %v719_v35 = vadd.f32 %v718_v32, %v712_v42  ;;  %v3338_v42 = vld [vmem:[%s5674_s4 + $0x88] sm:$0xff]  ;;  %v3339_v32 = vld [vmem:[%s5674_s4 + $0x90] sm:$0xff] }
 0x305   :  { %v4870_v8 = vadd.f32 %v686_v37, %v4196_v18  ;;  %v720_v13 = vadd.f32 %v719_v35, %v713_v5  ;;  %v5705_v37 = vld [vmem:[#allocation7_spill] sm:$0xff]  ;;  %v3340_v5 = vld [vmem:[%s5674_s4 + $0x98] sm:$0xff] }
 0x306   :  { %v3342_v35 = vld [vmem:[%s5674_s4 + $0xa8] sm:$0xff] }
 0x307   :  { %v714_v10 = vmul.f32 %v4870_v8, %v4870_v8 }
 0x309   :  { %v721_v7 = vadd.f32 %v720_v13, %v714_v10  ;;  %v3343_v10 = vld [vmem:[%s5674_s4 + $0xb0] sm:$0xff]  ;;  %v3345_v13 = vld [vmem:[%s5674_s4 + $0xc0] sm:$0xff] }
 0x30a   :  { %v688_v50 = vpop.f32.mrf.mxu2 }
 0x30b   :  { %v689_v24 = vadd.f32 %v688_v50, %v4605_v49  ;;  %v3341_v50 = vld [vmem:[%s5674_s4 + $0xa0] sm:$0xff] }
 0x30d   :  { %v4878_v52 = vadd.f32 %v689_v24, %v4208_v30  ;;  %v3344_v24 = vld [vmem:[%s5674_s4 + $0xb8] sm:$0xff] }
 0x30f   :  { %v715_v18 = vmul.f32 %v4878_v52, %v4878_v52 }
 0x311   :  { %v722_v16 = vadd.f32 %v721_v7, %v715_v18  ;;  %v3346_v7 = vld [vmem:[%s5674_s4 + $0xc8] sm:$0xff]  ;;  %v3347_v18 = vld [vmem:[%s5674_s4 + $0xd0] sm:$0xff] }
 0x313   :  { %v723_v0 = vrot.slane %v722_v16, 4 }
 0x315   :  { %v724_v40 = vadd.f32 %v723_v0, %v722_v16  ;;  %v3348_v16 = vld [vmem:[%s5674_s4 + $0xd8] sm:$0xff]  ;;  %v3349_v0 = vld [vmem:[%s5674_s4 + $0xe0] sm:$0xff] }
 0x317   :  { %v725_v11 = vrot.slane %v724_v40, 2 }
 0x319   :  { %v726_v20 = vadd.f32 %v725_v11, %v724_v40  ;;  %v3350_v40 = vld [vmem:[%s5674_s4 + $0xe8] sm:$0xff]  ;;  %v3351_v11 = vld [vmem:[%s5674_s4 + $0xf0] sm:$0xff] }
 0x31b   :  { %v727_v14 = vrot.slane %v726_v20, 1 }
 0x31d   :  { %v728_v3 = vadd.f32 %v727_v14, %v726_v20  ;;  %v3352_v20 = vld [vmem:[%s5674_s4 + $0xf8] sm:$0xff] }
 0x31f   :  { %v729_v21 = vmul.f32 %v728_v3, %v4227_v47 }
 0x321   :  { %v730_v57 = vadd.f32 1e-05, %v729_v21 }
 0x323   :  { %3715 = vrsqrt.f32 %v730_v57  ;;  %vm737_vm7 = vweird.f32 %v730_v57 }
 0x329   :  { %v3716_v49 = vpop.eup %3715 }
 0x32a   :  { %v732_v4 = vmul.f32 %v3716_v49, %v730_v57  ;;  %vm738_vm6 = vweird.f32 %v3716_v49 }
 0x32b   :  { %vm739_vm8 = vmor %vm737_vm7, %vm738_vm6 }
 0x32c   :  { %v733_v33 = vmul.f32 %v3716_v49, %v732_v4 }
 0x32e   :  { %v734_v30 = vmul.f32 0.5, %v733_v33 }
 0x330   :  { %v735_v53 = vsub.f32 1.5, %v734_v30 }
 0x332   :  { %v736_v6 = vmul.f32 %v3716_v49, %v735_v53 }
 0x334   :  { %v740_v25 = vsel %vm739_vm8, %v3716_v49, %v736_v6 }
 0x335   :  { %v748_v51 = vmul.f32 %v740_v25, %v4878_v52  ;;  %v747_v17 = vmul.f32 %v740_v25, %v4870_v8  ;;  %v746_v46 = vmul.f32 %v740_v25, %v4865_v2  ;;  %v745_v55 = vmul.f32 %v740_v25, %v4859_v63 }
 0x336   :  { %v744_v34 = vmul.f32 %v740_v25, %v4851_v19  ;;  %v743_v27 = vmul.f32 %v740_v25, %v4845_v58  ;;  %v742_v60 = vmul.f32 %v740_v25, %v4838_v56  ;;  %v741_v62 = vmul.f32 %v740_v25, %v4842_v45 }
 0x337   :  { %v796_v59 = vmul.f32 %v4610_v54, %v748_v51  ;;  %v795_v61 = vmul.f32 %v4603_v48, %v747_v17  ;;  %v794_v22 = vmul.f32 %v4630_v9, %v746_v46  ;;  %v793_v41 = vmul.f32 %v5702_v36, %v745_v55 }
 0x338   :  { %v792_v54 = vmul.f32 %v5703_v28, %v744_v34  ;;  %v791_v48 = vmul.f32 %v5704_v26, %v743_v27  ;;  %v790_v9 = vmul.f32 %v5705_v37, %v742_v60  ;;  %v789_v43 = vmul.f32 %v5706_v23, %v741_v62  ;;  %v5708_v34 = vld [vmem:[#allocation8_spill] sm:$0xff]  ;;  %v5712_v23 = vld [vmem:[#allocation11_spill] sm:$0xff] }
 0x339   :  { %967 = vmatpush.msra.mxu3 %v796_v59  ;;  %v5710_v28 = vld [vmem:[#allocation12_spill] sm:$0xff] }
 0x33b   :  { %968 = vmatpush.msra.mxu3 %v795_v61  ;;  %v5707_v61 = vld [vmem:[#allocation10_spill] sm:$0xff] }
 0x33d   :  { %969 = vmatpush.msra.mxu3 %v794_v22 }
 0x33f   :  { %970 = vmatpush.msra.mxu3 %v793_v41  ;;  %v5709_v41 = vld [vmem:[#allocation9_spill] sm:$0xff] }
 0x341   :  { %971 = vmatpush.msra.mxu3 %v792_v54 }
 0x343   :  { %972 = vmatpush.msra.mxu3 %v791_v48  ;;  %v5711_v48 = vld [vmem:[#allocation13_spill] sm:$0xff] }
 0x345   :  { %973 = vmatpush.msra.mxu3 %v790_v9 }
 0x347   :  { %974 = vmatpush.msra.mxu3 %v789_v43 }
 0x348   :  { %3369 = vmatmul.msk.f32.vlgmr.msra.gmra.mxu3 %vm448_vm5, %v3337_v38 }
 0x350   :  { %3370 = vmatmul.msk.f32.gmra.mxu3 %vm448_vm5, %v3338_v42 }
 0x358   :  { %3371 = vmatmul.msk.f32.gmra.mxu3 %vm448_vm5, %v3339_v32  ;;  %v5713_v32 = vld [vmem:[#allocation15_spill] sm:$0xff] }
 0x360   :  { %3372 = vmatmul.msk.f32.gmra.mxu3 %vm448_vm5, %v3340_v5 }
 0x368   :  { %3373 = vmatmul.msk.f32.gmra.mxu3 %vm448_vm5, %v3341_v50 }
 0x370   :  { %3374 = vmatmul.msk.f32.gmra.mxu3 %vm448_vm5, %v3342_v35 }
 0x378   :  { %3375 = vmatmul.msk.f32.gmra.mxu3 %vm448_vm5, %v3343_v10  ;;  %v5714_v10 = vld [vmem:[#allocation16_spill] sm:$0xff] }
 0x380   :  { %3376 = vmatmul.msk.f32.gmra.mxu3 %vm448_vm5, %v3344_v24 }
 0x388   :  { %3377 = vmatmul.msk.f32.gmra.mxu3 %vm448_vm5, %v3345_v13 }
 0x390   :  { %3378 = vmatmul.msk.f32.gmra.mxu3 %vm448_vm5, %v3346_v7 }
 0x398   :  { %3379 = vmatmul.msk.f32.gmra.mxu3 %vm448_vm5, %v3347_v18  ;;  %v5715_v18 = vld [vmem:[#allocation14_spill] sm:$0xff] }
 0x3a0   :  { %3380 = vmatmul.msk.f32.gmra.mxu3 %vm448_vm5, %v3348_v16 }
 0x3a8   :  { %3381 = vmatmul.msk.f32.gmra.mxu3 %vm448_vm5, %v3349_v0 }
 0x3b0   :  { %3382 = vmatmul.msk.f32.gmra.mxu3 %vm448_vm5, %v3350_v40 }
 0x3b8   :  { %3383 = vmatmul.msk.f32.gmra.mxu3 %vm448_vm5, %v3351_v11  ;;  %v5716_v11 = vld [vmem:[#allocation18_spill] sm:$0xff] }
 0x3c0   :  { %3384 = vmatmul.msk.f32.gmra.mxu3 %vm448_vm5, %v3352_v20 }
 0x3cb   :  { %v4963_v14 = vpop.f32.mrf.mxu3 }
 0x3d3   :  { %v979_v3 = vpop.f32.mrf.mxu3 }
 0x3db   :  { %v982_v21 = vpop.f32.mrf.mxu3 }
 0x3e3   :  { %v985_v57 = vpop.f32.mrf.mxu3 }
 0x3eb   :  { %v988_v49 = vpop.f32.mrf.mxu3 }
 0x3f3   :  { %v991_v4 = vpop.f32.mrf.mxu3 }
 0x3fb   :  { %v994_v33 = vpop.f32.mrf.mxu3 }
 0x3fc   :  { %v995_v20 = vadd.f32 %v994_v33, %v5716_v11 }
 0x403   :  { %v997_v30 = vpop.f32.mrf.mxu3 }
 0x404   :  { %v998_v16 = vadd.f32 %v997_v30, %v5715_v18 }
 0x40b   :  { %v1000_v53 = vpop.f32.mrf.mxu3 }
 0x40c   :  { %v1001_v24 = vadd.f32 %v1000_v53, %v5714_v10 }
 0x413   :  { %v1003_v6 = vpop.f32.mrf.mxu3 }
 0x414   :  { %v1004_v5 = vadd.f32 %v1003_v6, %v5713_v32  ;;  %v3389_v32 = vld [vmem:[%s5678_s6 + $0x60] sm:$0xff] }
 0x416   :  { %v1033_v40 = vmax.f32 %v1004_v5, 0.0  ;;  %v3390_v5 = vld [vmem:[%s5678_s6 + $0x68] sm:$0xff] }
 0x41b   :  { %v1006_v25 = vpop.f32.mrf.mxu3 }
 0x41c   :  { %v1007_v43 = vadd.f32 %v1006_v25, %v5712_v23 }
 0x41e   :  { %v1034_v7 = vmax.f32 %v1007_v43, 0.0 }
 0x420   :  { %v1050_v25 = vmul.f32 %v1034_v7, %v1034_v7 }
 0x423   :  { %v1009_v51 = vpop.f32.mrf.mxu3 }
 0x424   :  { %v1010_v62 = vadd.f32 %v1009_v51, %v5711_v48  ;;  %v1032_v51 = vmax.f32 %v1001_v24, 0.0 }
 0x426   :  { %v1035_v35 = vmax.f32 %v1010_v62, 0.0 }
 0x428   :  { %v1051_v0 = vmul.f32 %v1035_v35, %v1035_v35  ;;  %v3392_v35 = vld [vmem:[%s5678_s6 + $0x78] sm:$0xff] }
 0x42b   :  { %v1012_v17 = vpop.f32.mrf.mxu3 }
 0x42c   :  { %v1013_v54 = vadd.f32 %v1012_v17, %v5710_v28  ;;  %v5717_v17 = vld [vmem:[#allocation19_spill] sm:$0xff] }
 0x42d   :  { %v992_v6 = vadd.f32 %v991_v4, %v5717_v17 }
 0x42e   :  { %v1036_v42 = vmax.f32 %v1013_v54, 0.0 }
 0x430   :  { %v1052_v13 = vmul.f32 %v1036_v42, %v1036_v42  ;;  %v3388_v42 = vld [vmem:[%s5678_s6 + $0x58] sm:$0xff] }
 0x433   :  { %v1015_v59 = vpop.f32.mrf.mxu3 }
 0x434   :  { %v1016_v36 = vadd.f32 %v1015_v59, %v5708_v34  ;;  %v1049_v59 = vmul.f32 %v1033_v40, %v1033_v40  ;;  %v5719_v34 = vld [vmem:[#allocation21_spill] sm:$0xff] }
 0x435   :  { %v986_v30 = vadd.f32 %v985_v57, %v5719_v34  ;;  %v1112_v34 = vpop.permute.xlu2 %1111 }
 0x436   :  { %v1037_v9 = vmax.f32 %v1016_v36, 0.0 }
 0x437   :  { %v1027_v48 = vmax.f32 %v986_v30, 0.0 }
 0x438   :  { %v1053_v50 = vmul.f32 %v1037_v9, %v1037_v9 }
 0x439   :  { %v1043_v57 = vmul.f32 %v1027_v48, %v1027_v48 }
 0x43b   :  { %v1018_v46 = vpop.f32.mrf.mxu3 }
 0x43c   :  { %v1019_v55 = vadd.f32 %v1018_v46, %v5707_v61  ;;  %v1031_v46 = vmax.f32 %v998_v16, 0.0  ;;  %v5718_v61 = vld [vmem:[#allocation17_spill] sm:$0xff] }
 0x43d   :  { %v989_v53 = vadd.f32 %v988_v49, %v5718_v61  ;;  %v977_v49 = vadd.f32 %v4963_v14, %v4761_v44  ;;  %v3386_v44 = vld [vmem:[%s5678_s6 + $0x48] sm:$0xff]  ;;  %v3387_v14 = vld [vmem:[%s5678_s6 + $0x50] sm:$0xff] }
 0x43e   :  { %v1038_v26 = vmax.f32 %v1019_v55, 0.0  ;;  %v1048_v55 = vmul.f32 %v1032_v51, %v1032_v51  ;;  %v1047_v36 = vmul.f32 %v1031_v46, %v1031_v46 }
 0x43f   :  { %v1028_v54 = vmax.f32 %v989_v53, 0.0 }
 0x440   :  { %v1054_v38 = vmul.f32 %v1038_v26, %v1038_v26 }
 0x441   :  { %v1044_v62 = vmul.f32 %v1028_v54, %v1028_v54 }
 0x443   :  { %v1021_v22 = vpop.f32.mrf.mxu3 }
 0x444   :  { %v1022_v27 = vadd.f32 %v1021_v22, %v5709_v41  ;;  %v1030_v22 = vmax.f32 %v995_v20, 0.0  ;;  %v1029_v41 = vmax.f32 %v992_v6, 0.0 }
 0x446   :  { %v1039_v60 = vmax.f32 %v1022_v27, 0.0  ;;  %v5720_v27 = vld [vmem:[#allocation22_spill] sm:$0xff]  ;;  %v1046_v28 = vmul.f32 %v1030_v22, %v1030_v22  ;;  %v1045_v26 = vmul.f32 %v1029_v41, %v1029_v41 }
 0x447   :  { %v983_v33 = vadd.f32 %v982_v21, %v5720_v27  ;;  %v1024_v21 = vmax.f32 %v977_v49, 0.0 }
 0x448   :  { %v1055_v37 = vmul.f32 %v1039_v60, %v1039_v60  ;;  %v5721_v60 = vld [vmem:[#allocation20_spill] sm:$0xff] }
 0x449   :  { %v980_v4 = vadd.f32 %v979_v3, %v5721_v60  ;;  %v3385_v3 = vld [vmem:[%s5678_s6 + $0x40] sm:$0xff] }
 0x44a   :  { %1114 = vmatpush.msrb.mxu2 %v1055_v37  ;;  %v1026_v37 = vmax.f32 %v983_v33, 0.0 }
 0x44b   :  { %v1025_v9 = vmax.f32 %v980_v4, 0.0 }
 0x44c   :  { %1115 = vmatpush.msrb.mxu2 %v1054_v38  ;;  %v1042_v23 = vmul.f32 %v1026_v37, %v1026_v37  ;;  %v1040_v38 = vmul.f32 %v1024_v21, %v1024_v21 }
 0x44d   :  { %v1041_v43 = vmul.f32 %v1025_v9, %v1025_v9 }
 0x44e   :  { %1116 = vmatpush.msrb.mxu2 %v1053_v50  ;;  %v3391_v50 = vld [vmem:[%s5678_s6 + $0x70] sm:$0xff] }
 0x450   :  { %1117 = vmatpush.msrb.mxu2 %v1052_v13 }
 0x452   :  { %1118 = vmatpush.msrb.mxu2 %v1051_v0 }
 0x454   :  { %1119 = vmatpush.msrb.mxu2 %v1050_v25 }
 0x456   :  { %1120 = vmatpush.msrb.mxu2 %v1049_v59 }
 0x458   :  { %1121 = vmatpush.msrb.mxu2 %v1048_v55 }
 0x45a   :  { %1122 = vmatpush.msrb.mxu2 %v1047_v36 }
 0x45c   :  { %1123 = vmatpush.msrb.mxu2 %v1046_v28 }
 0x45e   :  { %1124 = vmatpush.msrb.mxu2 %v1045_v26 }
 0x460   :  { %1125 = vmatpush.msrb.mxu2 %v1044_v62 }
 0x462   :  { %1126 = vmatpush.msrb.mxu2 %v1043_v57 }
 0x464   :  { %1127 = vmatpush.msrb.mxu2 %v1042_v23 }
 0x466   :  { %1128 = vmatpush.msrb.mxu2 %v1041_v43 }
 0x468   :  { %1129 = vmatpush.msrb.mxu2 %v1040_v38 }
 0x469   :  { %1130 = vmatmul.f32.vlgmr.msrb.gmra.mxu2 %v3385_v3 }
 0x471   :  { %1133 = vmatmul.f32.gmra.mxu2 %v3386_v44 }
 0x479   :  { %1136 = vmatmul.f32.gmra.mxu2 %v3387_v14 }
 0x481   :  { %1139 = vmatmul.f32.gmra.mxu2 %v3388_v42 }
 0x489   :  { %1142 = vmatmul.f32.gmra.mxu2 %v3389_v32 }
 0x491   :  { %1145 = vmatmul.f32.gmra.mxu2 %v3390_v5  ;;  %v1241_v5 = vpop.permute.xlu2 %1240 }
 0x499   :  { %1148 = vmatmul.f32.gmra.mxu2 %v3391_v50 }
 0x4a1   :  { %1151 = vmatmul.f32.gmra.mxu2 %v3392_v35 }
 0x4ec   :  { %v1131_v10 = vpop.f32.mrf.mxu2 }
 0x4ed   :  { %v1132_v40 = vadd.f32 %v1131_v10, %v4768_v29 }
 0x4ef   :  { %v5014_v51 = vadd.f32 %v1132_v40, %v4842_v45 }
 0x4f4   :  { %v1134_v24 = vpop.f32.mrf.mxu2 }
 0x4f5   :  { %v1135_v16 = vadd.f32 %v1134_v24, %v4759_v12 }
 0x4f7   :  { %v5010_v20 = vadd.f32 %v1135_v16, %v4838_v56  ;;  %v1107_v56 = vpop.permute.xlu1 %1106 }
 0x4f9   :  { %v1173_v12 = vmul.f32 %v5010_v20, %v5010_v20 }
 0x4fc   :  { %v1137_v13 = vpop.f32.mrf.mxu2 }
 0x4fd   :  { %v1138_v11 = vadd.f32 %v1137_v13, %v4792_v39 }
 0x4ff   :  { %v5017_v17 = vadd.f32 %v1138_v11, %v4845_v58  ;;  %v1246_v38 = vpop.permute.xlu1 %1245 }
 0x501   :  { %v1174_v45 = vmul.f32 %v5017_v17, %v5017_v17 }
 0x504   :  { %v1140_v7 = vpop.f32.mrf.mxu2 }
 0x505   :  { %v1141_v25 = vadd.f32 %v1140_v7, %v4796_v31  ;;  %v1172_v31 = vmul.f32 %v5014_v51, %v5014_v51 }
 0x507   :  { %v5023_v29 = vadd.f32 %v1141_v25, %v4851_v19  ;;  %v1180_v46 = vadd.f32 %v1173_v12, %v1172_v31  ;;  %v1231_v7 = vpop.permute.xlu1 %1230 }
 0x509   :  { %v1175_v61 = vmul.f32 %v5023_v29, %v5023_v29 }
 0x50c   :  { %v1143_v18 = vpop.f32.mrf.mxu2 }
 0x50d   :  { %v1144_v6 = vadd.f32 %v1143_v18, %v4790_v1 }
 0x50f   :  { %v5031_v58 = vadd.f32 %v1144_v6, %v4859_v63  ;;  %v1226_v6 = vpop.permute.xlu2 %1225  ;;  %v1216_v31 = vpop.permute.xlu1 %1215 }
 0x511   :  { %v1176_v53 = vmul.f32 %v5031_v58, %v5031_v58 }
 0x514   :  { %v1146_v0 = vpop.f32.mrf.mxu2 }
 0x515   :  { %v1147_v39 = vadd.f32 %v1146_v0, %v4806_v15  ;;  %v1181_v15 = vadd.f32 %v1180_v46, %v1174_v45  ;;  %v3422_v46 = vld [vmem:[%s5674_s4 + $0x168] sm:$0xff] }
 0x517   :  { %v5036_v19 = vadd.f32 %v1147_v39, %v4865_v2  ;;  %v1182_v22 = vadd.f32 %v1181_v15, %v1175_v61  ;;  %v3410_v61 = vld [vmem:[%s5674_s4 + $0x108] sm:$0xff]  ;;  %v3423_v15 = vld [vmem:[%s5674_s4 + $0x170] sm:$0xff] }
 0x519   :  { %v1177_v63 = vmul.f32 %v5036_v19, %v5036_v19  ;;  %v1183_v36 = vadd.f32 %v1182_v22, %v1176_v53  ;;  %v3411_v53 = vld [vmem:[%s5674_s4 + $0x110] sm:$0xff]  ;;  %v3424_v22 = vld [vmem:[%s5674_s4 + $0x178] sm:$0xff] }
 0x51b   :  { %v1184_v2 = vadd.f32 %v1183_v36, %v1177_v63  ;;  %v3412_v63 = vld [vmem:[%s5674_s4 + $0x118] sm:$0xff]  ;;  %v3415_v36 = vld [vmem:[%s5674_s4 + $0x130] sm:$0xff] }
 0x51c   :  { %v1149_v59 = vpop.f32.mrf.mxu2 }
 0x51d   :  { %v1150_v1 = vadd.f32 %v1149_v59, %v1107_v56 }
 0x51f   :  { %v5041_v55 = vadd.f32 %v1150_v1, %v4870_v8  ;;  %v3409_v1 = vld [vmem:[%s5674_s4 + $0x100] sm:$0xff] }
 0x521   :  { %v1178_v41 = vmul.f32 %v5041_v55, %v5041_v55 }
 0x523   :  { %v1185_v28 = vadd.f32 %v1184_v2, %v1178_v41  ;;  %v3416_v41 = vld [vmem:[%s5674_s4 + $0x138] sm:$0xff]  ;;  %v3418_v2 = vld [vmem:[%s5674_s4 + $0x148] sm:$0xff] }
 0x524   :  { %v1152_v30 = vpop.f32.mrf.mxu2 }
 0x525   :  { %v1153_v27 = vadd.f32 %v1152_v30, %v1112_v34  ;;  %v3413_v34 = vld [vmem:[%s5674_s4 + $0x120] sm:$0xff]  ;;  %v3414_v30 = vld [vmem:[%s5674_s4 + $0x128] sm:$0xff] }
 0x527   :  { %v5048_v33 = vadd.f32 %v1153_v27, %v4878_v52  ;;  %v1251_v52 = vpop.permute.xlu0 %1250  ;;  %v3417_v27 = vld [vmem:[%s5674_s4 + $0x140] sm:$0xff] }
 0x529   :  { %v1179_v8 = vmul.f32 %v5048_v33, %v5048_v33 }
 0x52b   :  { %v1186_v54 = vadd.f32 %v1185_v28, %v1179_v8  ;;  %v3419_v28 = vld [vmem:[%s5674_s4 + $0x150] sm:$0xff]  ;;  %v3420_v8 = vld [vmem:[%s5674_s4 + $0x158] sm:$0xff] }
 0x52d   :  { %v1187_v60 = vrot.slane %v1186_v54, 4 }
 0x52f   :  { %v1188_v4 = vadd.f32 %v1187_v60, %v1186_v54  ;;  %v1236_v10 = vpop.permute.xlu0 %1235  ;;  %v3421_v54 = vld [vmem:[%s5674_s4 + $0x160] sm:$0xff] }
 0x531   :  { %v1189_v26 = vrot.slane %v1188_v4, 2 }
 0x533   :  { %v1190_v48 = vadd.f32 %v1189_v26, %v1188_v4 }
 0x535   :  { %v1191_v49 = vrot.slane %v1190_v48, 1 }
 0x537   :  { %v1192_v62 = vadd.f32 %v1191_v49, %v1190_v48  ;;  %v1221_v56 = vpop.permute.xlu0 %1220 }
 0x539   :  { %v1193_v37 = vmul.f32 %v1192_v62, %v4227_v47 }
 0x53b   :  { %v1194_v57 = vadd.f32 1e-05, %v1193_v37  ;;  %v1373_v37 = vpop.permute.xlu2 %1372 }
 0x53d   :  { %3717 = vrsqrt.f32 %v1194_v57  ;;  %vm1201_vm10 = vweird.f32 %v1194_v57 }
 0x53f   :  { %v1368_v62 = vpop.permute.xlu0 %1367 }
 0x543   :  { %v3718_v9 = vpop.eup %3717 }
 0x544   :  { %v1196_v23 = vmul.f32 %v3718_v9, %v1194_v57  ;;  %vm1202_vm9 = vweird.f32 %v3718_v9 }
 0x545   :  { %vm1203_vm11 = vmor %vm1201_vm10, %vm1202_vm9 }
 0x546   :  { %v1197_v21 = vmul.f32 %v3718_v9, %v1196_v23 }
 0x548   :  { %v1198_v43 = vmul.f32 0.5, %v1197_v21 }
 0x54a   :  { %v1199_v3 = vsub.f32 1.5, %v1198_v43 }
 0x54c   :  { %v1200_v44 = vmul.f32 %v3718_v9, %v1199_v3 }
 0x54e   :  { %v1204_v14 = vsel %vm1203_vm11, %v3718_v9, %v1200_v44  ;;  %v1363_v9 = vpop.permute.xlu1 %1362 }
 0x54f   :  { %v1212_v42 = vmul.f32 %v1204_v14, %v5048_v33  ;;  %v1211_v32 = vmul.f32 %v1204_v14, %v5041_v55  ;;  %v1210_v35 = vmul.f32 %v1204_v14, %v5036_v19  ;;  %v1209_v13 = vmul.f32 %v1204_v14, %v5031_v58 }
 0x550   :  { %v1208_v16 = vmul.f32 %v1204_v14, %v5023_v29  ;;  %v1207_v40 = vmul.f32 %v1204_v14, %v5017_v17  ;;  %v1206_v25 = vmul.f32 %v1204_v14, %v5010_v20  ;;  %v1205_v39 = vmul.f32 %v1204_v14, %v5014_v51 }
 0x551   :  { %v1260_v50 = vmul.f32 %v1251_v52, %v1212_v42  ;;  %v1259_v24 = vmul.f32 %v1246_v38, %v1211_v32  ;;  %v1258_v18 = vmul.f32 %v1241_v5, %v1210_v35  ;;  %v1257_v0 = vmul.f32 %v1236_v10, %v1209_v13 }
 0x552   :  { %v1256_v11 = vmul.f32 %v1231_v7, %v1208_v16  ;;  %v1255_v12 = vmul.f32 %v1226_v6, %v1207_v40  ;;  %v1254_v59 = vmul.f32 %v1221_v56, %v1206_v25  ;;  %v1253_v45 = vmul.f32 %v1216_v31, %v1205_v39  ;;  %v1358_v7 = vpop.permute.xlu2 %1357  ;;  %v1353_v16 = vpop.permute.xlu0 %1352 }
 0x553   :  { %1431 = vmatpush.msrb.mxu0 %v1260_v50  ;;  %3698 = vmatpush.msrb.mxu3 %v1260_v50 }
 0x555   :  { %1432 = vmatpush.msrb.mxu0 %v1259_v24  ;;  %3699 = vmatpush.msrb.mxu3 %v1259_v24 }
 0x557   :  { %1433 = vmatpush.msrb.mxu0 %v1258_v18  ;;  %3700 = vmatpush.msrb.mxu3 %v1258_v18 }
 0x559   :  { %1434 = vmatpush.msrb.mxu0 %v1257_v0  ;;  %3701 = vmatpush.msrb.mxu3 %v1257_v0  ;;  %v1348_v0 = vpop.permute.xlu1 %1347 }
 0x55a   :  { %v1343_v40 = vpop.permute.xlu2 %1342  ;;  %v1338_v25 = vpop.permute.xlu0 %1337 }
 0x55b   :  { %1435 = vmatpush.msrb.mxu0 %v1256_v11  ;;  %3702 = vmatpush.msrb.mxu3 %v1256_v11 }
 0x55d   :  { %1436 = vmatpush.msrb.mxu0 %v1255_v12  ;;  %3703 = vmatpush.msrb.mxu3 %v1255_v12 }
 0x55f   :  { %1437 = vmatpush.msrb.mxu0 %v1254_v59  ;;  %3704 = vmatpush.msrb.mxu3 %v1254_v59 }
 0x561   :  { %1438 = vmatpush.msrb.mxu0 %v1253_v45  ;;  %3705 = vmatpush.msrb.mxu3 %v1253_v45  ;;  %v1333_v6 = vpop.permute.xlu1 %1332 }
 0x562   :  { %3441 = vmatmul.msk.f32.vlgmr.msrb.gmra.mxu0 %vm448_vm5, %v3409_v1  ;;  %3454 = vmatmul.msk.f32.vlgmr.msrb.gmra.mxu3 %vm448_vm5, %v3422_v46  ;;  %v1328_v39 = vpop.permute.xlu2 %1327 }
 0x56a   :  { %3442 = vmatmul.msk.f32.gmra.mxu0 %vm448_vm5, %v3410_v61  ;;  %3455 = vmatmul.msk.f32.gmra.mxu3 %vm448_vm5, %v3423_v15 }
 0x572   :  { %3443 = vmatmul.msk.f32.gmra.mxu0 %vm448_vm5, %v3411_v53  ;;  %3456 = vmatmul.msk.f32.gmra.mxu3 %vm448_vm5, %v3424_v22  ;;  %v1323_v22 = vpop.permute.xlu0 %1322 }
 0x57a   :  { %3444 = vmatmul.msk.f32.gmra.mxu0 %vm448_vm5, %v3412_v63 }
 0x582   :  { %3445 = vmatmul.msk.f32.gmra.mxu0 %vm448_vm5, %v3413_v34 }
 0x58a   :  { %3446 = vmatmul.msk.f32.gmra.mxu0 %vm448_vm5, %v3414_v30 }
 0x592   :  { %3447 = vmatmul.msk.f32.gmra.mxu0 %vm448_vm5, %v3415_v36  ;;  %v1318_v36 = vpop.permute.xlu1 %1317 }
 0x59a   :  { %3448 = vmatmul.msk.f32.gmra.mxu0 %vm448_vm5, %v3416_v41 }
 0x5a2   :  { %3449 = vmatmul.msk.f32.gmra.mxu0 %vm448_vm5, %v3417_v27 }
 0x5aa   :  { %3450 = vmatmul.msk.f32.gmra.mxu0 %vm448_vm5, %v3418_v2 }
 0x5b2   :  { %3451 = vmatmul.msk.f32.gmra.mxu0 %vm448_vm5, %v3419_v28  ;;  %v1313_v28 = vpop.permute.xlu2 %1312 }
 0x5ba   :  { %3452 = vmatmul.msk.f32.gmra.mxu0 %vm448_vm5, %v3420_v8 }
 0x5c2   :  { %3453 = vmatmul.msk.f32.gmra.mxu0 %vm448_vm5, %v3421_v54 }
 0x5df   :  { %v5125_v60 = vpop.f32.mrf.mxu0 }
 0x5e5   :  { %v1479_v4 = vpop.f32.mrf.mxu3 }
 0x5e6   :  { %v1480_v21 = vadd.f32 %v1479_v4, %v1363_v9 }
 0x5e7   :  { %v5127_v26 = vpop.f32.mrf.mxu0 }
 0x5e8   :  { %v1501_v14 = vmax.f32 %v1480_v21, 0.0  ;;  %v1308_v21 = vpop.permute.xlu0 %1307 }
 0x5ea   :  { %v1517_v32 = vmul.f32 %v1501_v14, %v1501_v14 }
 0x5ed   :  { %v1482_v48 = vpop.f32.mrf.mxu3 }
 0x5ee   :  { %v1483_v57 = vadd.f32 %v1482_v48, %v1368_v62 }
 0x5ef   :  { %v5129_v49 = vpop.f32.mrf.mxu0 }
 0x5f0   :  { %v1502_v3 = vmax.f32 %v1483_v57, 0.0 }
 0x5f2   :  { %v1518_v42 = vmul.f32 %v1502_v3, %v1502_v3 }
 0x5f5   :  { %v1485_v23 = vpop.f32.mrf.mxu3 }
 0x5f6   :  { %v1486_v52 = vadd.f32 %v1485_v23, %v1373_v37 }
 0x5f7   :  { %v1449_v43 = vpop.f32.mrf.mxu0 }
 0x5f8   :  { %v1503_v38 = vmax.f32 %v1486_v52, 0.0  ;;  %v1450_v57 = vadd.f32 %v1449_v43, %v1313_v28  ;;  %v1447_v52 = vadd.f32 %v5129_v49, %v1308_v21 }
 0x5fa   :  { %v1519_v44 = vmul.f32 %v1503_v38, %v1503_v38 }
 0x5fc   :  { %1578 = vmatpush.msrb.mxu1 %v1519_v44  ;;  %v1303_v44 = vpop.permute.xlu1 %1302 }
 0x5fd   :  { %v1444_v14 = vadd.f32 %v5127_v26, %v1303_v44  ;;  %v3457_v26 = vld [vmem:[%s5678_s6 + $0x80] sm:$0xff] }
 0x5fe   :  { %1579 = vmatpush.msrb.mxu1 %v1518_v42 }
 0x5ff   :  { %v1452_v5 = vpop.f32.mrf.mxu0 }
 0x600   :  { %1580 = vmatpush.msrb.mxu1 %v1517_v32  ;;  %v1453_v48 = vadd.f32 %v1452_v5, %v1318_v36  ;;  %v1491_v32 = vmax.f32 %v1450_v57, 0.0  ;;  %v1298_v5 = vpop.permute.xlu2 %1297 }
 0x602   :  { %v1492_v3 = vmax.f32 %v1453_v48, 0.0 }
 0x604   :  { %v1508_v43 = vmul.f32 %v1492_v3, %v1492_v3 }
 0x607   :  { %v1455_v50 = vpop.f32.mrf.mxu0 }
 0x608   :  { %v1456_v8 = vadd.f32 %v1455_v50, %v1323_v22  ;;  %v1441_v50 = vadd.f32 %v5125_v60, %v1298_v5  ;;  %v3458_v60 = vld [vmem:[%s5678_s6 + $0x88] sm:$0xff] }
 0x60a   :  { %v1493_v9 = vmax.f32 %v1456_v8, 0.0 }
 0x60c   :  { %v1509_v42 = vmul.f32 %v1493_v9, %v1493_v9 }
 0x60f   :  { %v1458_v35 = vpop.f32.mrf.mxu0 }
 0x610   :  { %v1459_v41 = vadd.f32 %v1458_v35, %v1328_v39  ;;  %v1490_v35 = vmax.f32 %v1447_v52, 0.0 }
 0x612   :  { %v1494_v62 = vmax.f32 %v1459_v41, 0.0  ;;  %v1506_v49 = vmul.f32 %v1490_v35, %v1490_v35 }
 0x614   :  { %v1510_v38 = vmul.f32 %v1494_v62, %v1494_v62 }
 0x617   :  { %v1461_v10 = vpop.f32.mrf.mxu0 }
 0x618   :  { %v1462_v63 = vadd.f32 %v1461_v10, %v1333_v6  ;;  %v1507_v10 = vmul.f32 %v1491_v32, %v1491_v32  ;;  %v3464_v6 = vld [vmem:[%s5678_s6 + $0xb8] sm:$0xff] }
 0x61a   :  { %v1495_v54 = vmax.f32 %v1462_v63, 0.0 }
 0x61c   :  { %v1511_v23 = vmul.f32 %v1495_v54, %v1495_v54 }
 0x61f   :  { %v1464_v24 = vpop.f32.mrf.mxu0 }
 0x620   :  { %v1465_v61 = vadd.f32 %v1464_v24, %v1338_v25  ;;  %v1489_v24 = vmax.f32 %v1444_v14, 0.0  ;;  %v3463_v25 = vld [vmem:[%s5678_s6 + $0xb0] sm:$0xff] }
 0x622   :  { %v1496_v27 = vmax.f32 %v1465_v61, 0.0 }
 0x624   :  { %v1512_v37 = vmul.f32 %v1496_v27, %v1496_v27 }
 0x627   :  { %v1467_v13 = vpop.f32.mrf.mxu0 }
 0x628   :  { %v1468_v45 = vadd.f32 %v1467_v13, %v1343_v40  ;;  %v1488_v13 = vmax.f32 %v1441_v50, 0.0  ;;  %v3461_v40 = vld [vmem:[%s5678_s6 + $0xa0] sm:$0xff] }
 0x62a   :  { %v1497_v34 = vmax.f32 %v1468_v45, 0.0 }
 0x62c   :  { %v1513_v4 = vmul.f32 %v1497_v34, %v1497_v34 }
 0x62f   :  { %v1470_v18 = vpop.f32.mrf.mxu0 }
 0x630   :  { %v1471_v59 = vadd.f32 %v1470_v18, %v1348_v0  ;;  %v1504_v18 = vmul.f32 %v1488_v13, %v1488_v13  ;;  %v3460_v0 = vld [vmem:[%s5678_s6 + $0x98] sm:$0xff] }
 0x632   :  { %v1498_v15 = vmax.f32 %v1471_v59, 0.0 }
 0x634   :  { %v1514_v2 = vmul.f32 %v1498_v15, %v1498_v15 }
 0x637   :  { %v1473_v11 = vpop.f32.mrf.mxu0 }
 0x638   :  { %v1474_v12 = vadd.f32 %v1473_v11, %v1353_v16  ;;  %v3459_v16 = vld [vmem:[%s5678_s6 + $0x90] sm:$0xff]  ;;  %v3462_v11 = vld [vmem:[%s5678_s6 + $0xa8] sm:$0xff] }
 0x63a   :  { %v1499_v1 = vmax.f32 %v1474_v12, 0.0 }
 0x63c   :  { %v1515_v30 = vmul.f32 %v1499_v1, %v1499_v1  ;;  %v1546_v1 = vpop.permute.xlu1 %1545 }
 0x63f   :  { %v1476_v56 = vpop.f32.mrf.mxu0 }
 0x640   :  { %v1477_v31 = vadd.f32 %v1476_v56, %v1358_v7  ;;  %v1505_v7 = vmul.f32 %v1489_v24, %v1489_v24 }
 0x642   :  { %v1500_v46 = vmax.f32 %v1477_v31, 0.0  ;;  %v1541_v31 = vpop.permute.xlu0 %1540 }
 0x644   :  { %v1516_v53 = vmul.f32 %v1500_v46, %v1500_v46  ;;  %v1551_v46 = vpop.permute.xlu2 %1550  ;;  %v1561_v36 = vpop.permute.xlu1 %1560 }
 0x646   :  { %1581 = vmatpush.msrb.mxu1 %v1516_v53 }
 0x648   :  { %1582 = vmatpush.msrb.mxu1 %v1515_v30 }
 0x64a   :  { %1583 = vmatpush.msrb.mxu1 %v1514_v2  ;;  %v1556_v61 = vpop.permute.xlu0 %1555 }
 0x64c   :  { %1584 = vmatpush.msrb.mxu1 %v1513_v4  ;;  %v1566_v28 = vpop.permute.xlu2 %1565  ;;  %v1576_v3 = vpop.permute.xlu1 %1575 }
 0x64e   :  { %1585 = vmatpush.msrb.mxu1 %v1512_v37 }
 0x650   :  { %1586 = vmatpush.msrb.mxu1 %v1511_v23 }
 0x652   :  { %1587 = vmatpush.msrb.mxu1 %v1510_v38  ;;  %v1571_v48 = vpop.permute.xlu0 %1570 }
 0x654   :  { %1588 = vmatpush.msrb.mxu1 %v1509_v42 }
 0x656   :  { %1589 = vmatpush.msrb.mxu1 %v1508_v43 }
 0x658   :  { %1590 = vmatpush.msrb.mxu1 %v1507_v10 }
 0x65a   :  { %1591 = vmatpush.msrb.mxu1 %v1506_v49 }
 0x65c   :  { %1592 = vmatpush.msrb.mxu1 %v1505_v7 }
 0x65e   :  { %1593 = vmatpush.msrb.mxu1 %v1504_v18 }
 0x65f   :  { %1594 = vmatmul.f32.vlgmr.msrb.gmra.mxu1 %v3457_v26 }
 0x667   :  { %1597 = vmatmul.f32.gmra.mxu1 %v3458_v60 }
 0x66f   :  { %1600 = vmatmul.f32.gmra.mxu1 %v3459_v16 }
 0x677   :  { %1603 = vmatmul.f32.gmra.mxu1 %v3460_v0 }
 0x67f   :  { %1606 = vmatmul.f32.gmra.mxu1 %v3461_v40 }
 0x687   :  { %1609 = vmatmul.f32.gmra.mxu1 %v3462_v11  ;;  %v1710_v11 = vpop.permute.xlu0 %1709 }
 0x68f   :  { %1612 = vmatmul.f32.gmra.mxu1 %v3463_v25 }
 0x697   :  { %1615 = vmatmul.f32.gmra.mxu1 %v3464_v6 }
 0x6dc   :  { %v1595_v12 = vpop.f32.mrf.mxu1 }
 0x6dd   :  { %v1596_v22 = vadd.f32 %v1595_v12, %v1541_v31 }
 0x6df   :  { %v5162_v41 = vadd.f32 %v1596_v22, %v5014_v51 }
 0x6e1   :  { %v1636_v62 = vmul.f32 %v5162_v41, %v5162_v41 }
 0x6e4   :  { %v1598_v39 = vpop.f32.mrf.mxu1 }
 0x6e5   :  { %v1599_v15 = vadd.f32 %v1598_v39, %v1546_v1 }
 0x6e7   :  { %v5159_v34 = vadd.f32 %v1599_v15, %v5010_v20  ;;  %v1695_v15 = vpop.permute.xlu0 %1694 }
 0x6e9   :  { %v1637_v8 = vmul.f32 %v5159_v34, %v5159_v34 }
 0x6eb   :  { %v1644_v57 = vadd.f32 %v1637_v8, %v1636_v62 }
 0x6ec   :  { %v1601_v56 = vpop.f32.mrf.mxu1 }
 0x6ed   :  { %v1602_v63 = vadd.f32 %v1601_v56, %v1551_v46 }
 0x6ef   :  { %v5165_v27 = vadd.f32 %v1602_v63, %v5017_v17  ;;  %v1680_v62 = vpop.permute.xlu0 %1679 }
 0x6f1   :  { %v1638_v51 = vmul.f32 %v5165_v27, %v5165_v27 }
 0x6f3   :  { %v1645_v23 = vadd.f32 %v1644_v57, %v1638_v51  ;;  %v3482_v57 = vld [vmem:[%s5674_s4 + $0x188] sm:$0xff] }
 0x6f4   :  { %v1604_v59 = vpop.f32.mrf.mxu1 }
 0x6f5   :  { %v1605_v30 = vadd.f32 %v1604_v59, %v1556_v61  ;;  %v1705_v59 = vpop.permute.xlu1 %1704 }
 0x6f7   :  { %v5170_v54 = vadd.f32 %v1605_v30, %v5023_v29 }
 0x6f9   :  { %v1639_v9 = vmul.f32 %v5170_v54, %v5170_v54 }
 0x6fb   :  { %v1646_v38 = vadd.f32 %v1645_v23, %v1639_v9  ;;  %v3483_v9 = vld [vmem:[%s5674_s4 + $0x190] sm:$0xff]  ;;  %v3484_v23 = vld [vmem:[%s5674_s4 + $0x198] sm:$0xff] }
 0x6fc   :  { %v1607_v45 = vpop.f32.mrf.mxu1 }
 0x6fd   :  { %v1608_v2 = vadd.f32 %v1607_v45, %v1561_v36 }
 0x6ff   :  { %v5177_v17 = vadd.f32 %v1608_v2, %v5031_v58 }
 0x701   :  { %v1640_v21 = vmul.f32 %v5177_v17, %v5177_v17 }
 0x703   :  { %v1647_v14 = vadd.f32 %v1646_v38, %v1640_v21  ;;  %v3485_v21 = vld [vmem:[%s5674_s4 + $0x1a0] sm:$0xff]  ;;  %v3486_v38 = vld [vmem:[%s5674_s4 + $0x1a8] sm:$0xff] }
 0x704   :  { %v1610_v53 = vpop.f32.mrf.mxu1 }
 0x705   :  { %v1611_v4 = vadd.f32 %v1610_v53, %v1566_v28  ;;  %v1690_v28 = vpop.permute.xlu1 %1689 }
 0x707   :  { %v5182_v29 = vadd.f32 %v1611_v4, %v5036_v19 }
 0x709   :  { %v1641_v58 = vmul.f32 %v5182_v29, %v5182_v29 }
 0x70b   :  { %v1648_v19 = vadd.f32 %v1647_v14, %v1641_v58  ;;  %v3487_v58 = vld [vmem:[%s5674_s4 + $0x1b0] sm:$0xff]  ;;  %v3490_v14 = vld [vmem:[%s5674_s4 + $0x1c8] sm:$0xff] }
 0x70c   :  { %v1613_v20 = vpop.f32.mrf.mxu1 }
 0x70d   :  { %v1614_v37 = vadd.f32 %v1613_v20, %v1571_v48 }
 0x70f   :  { %v5187_v52 = vadd.f32 %v1614_v37, %v5041_v55  ;;  %v3481_v37 = vld [vmem:[%s5674_s4 + $0x180] sm:$0xff] }
 0x711   :  { %v1642_v42 = vmul.f32 %v5187_v52, %v5187_v52 }
 0x713   :  { %v1649_v50 = vadd.f32 %v1648_v19, %v1642_v42  ;;  %v3491_v42 = vld [vmem:[%s5674_s4 + $0x1d0] sm:$0xff]  ;;  %v3493_v19 = vld [vmem:[%s5674_s4 + $0x1e0] sm:$0xff] }
 0x714   :  { %v1616_v44 = vpop.f32.mrf.mxu1 }
 0x715   :  { %v1617_v32 = vadd.f32 %v1616_v44, %v1576_v3  ;;  %v3488_v3 = vld [vmem:[%s5674_s4 + $0x1b8] sm:$0xff]  ;;  %v3489_v44 = vld [vmem:[%s5674_s4 + $0x1c0] sm:$0xff] }
 0x717   :  { %v5194_v5 = vadd.f32 %v1617_v32, %v5048_v33  ;;  %v1715_v33 = vpop.permute.xlu2 %1714  ;;  %v3492_v32 = vld [vmem:[%s5674_s4 + $0x1d8] sm:$0xff] }
 0x719   :  { %v1643_v55 = vmul.f32 %v5194_v5, %v5194_v5 }
 0x71b   :  { %v1650_v43 = vadd.f32 %v1649_v50, %v1643_v55  ;;  %v3494_v50 = vld [vmem:[%s5674_s4 + $0x1e8] sm:$0xff]  ;;  %v3495_v55 = vld [vmem:[%s5674_s4 + $0x1f0] sm:$0xff] }
 0x71d   :  { %v1651_v35 = vrot.slane %v1650_v43, 4 }
 0x71f   :  { %v1652_v10 = vadd.f32 %v1651_v35, %v1650_v43  ;;  %v1700_v1 = vpop.permute.xlu2 %1699  ;;  %v3496_v43 = vld [vmem:[%s5674_s4 + $0x1f8] sm:$0xff] }
 0x721   :  { %v1653_v24 = vrot.slane %v1652_v10, 2 }
 0x723   :  { %v1654_v49 = vadd.f32 %v1653_v24, %v1652_v10 }
 0x725   :  { %v1655_v13 = vrot.slane %v1654_v49, 1 }
 0x727   :  { %v1656_v7 = vadd.f32 %v1655_v13, %v1654_v49  ;;  %v1685_v48 = vpop.permute.xlu2 %1684 }
 0x729   :  { %v1657_v18 = vmul.f32 %v1656_v7, %v4227_v47 }
 0x72b   :  { %v1658_v26 = vadd.f32 1e-05, %v1657_v18 }
 0x72d   :  { %3719 = vrsqrt.f32 %v1658_v26  ;;  %vm1665_vm13 = vweird.f32 %v1658_v26 }
 0x733   :  { %v3720_v60 = vpop.eup %3719 }
 0x734   :  { %v1660_v16 = vmul.f32 %v3720_v60, %v1658_v26  ;;  %vm1666_vm12 = vweird.f32 %v3720_v60 }
 0x735   :  { %vm1667_vm14 = vmor %vm1665_vm13, %vm1666_vm12 }
 0x736   :  { %v1661_v0 = vmul.f32 %v3720_v60, %v1660_v16 }
 0x738   :  { %v1662_v40 = vmul.f32 0.5, %v1661_v0 }
 0x73a   :  { %v1663_v25 = vsub.f32 1.5, %v1662_v40  ;;  %v1837_v40 = vpop.permute.xlu1 %1836 }
 0x73c   :  { %v1664_v6 = vmul.f32 %v3720_v60, %v1663_v25  ;;  %v1832_v25 = vpop.permute.xlu2 %1831 }
 0x73e   :  { %v1668_v12 = vsel %vm1667_vm14, %v3720_v60, %v1664_v6  ;;  %v1827_v6 = vpop.permute.xlu0 %1826 }
 0x73f   :  { %v1676_v39 = vmul.f32 %v1668_v12, %v5194_v5  ;;  %v1675_v56 = vmul.f32 %v1668_v12, %v5187_v52  ;;  %v1674_v45 = vmul.f32 %v1668_v12, %v5182_v29  ;;  %v1673_v61 = vmul.f32 %v1668_v12, %v5177_v17 }
 0x740   :  { %v1672_v22 = vmul.f32 %v1668_v12, %v5170_v54  ;;  %v1671_v30 = vmul.f32 %v1668_v12, %v5165_v27  ;;  %v1670_v2 = vmul.f32 %v1668_v12, %v5159_v34  ;;  %v1669_v4 = vmul.f32 %v1668_v12, %v5162_v41 }
 0x741   :  { %v1724_v31 = vmul.f32 %v1715_v33, %v1676_v39  ;;  %v1723_v46 = vmul.f32 %v1710_v11, %v1675_v56  ;;  %v1722_v53 = vmul.f32 %v1705_v59, %v1674_v45  ;;  %v1721_v63 = vmul.f32 %v1700_v1, %v1673_v61 }
 0x742   :  { %v1720_v36 = vmul.f32 %v1695_v15, %v1672_v22  ;;  %v1719_v8 = vmul.f32 %v1690_v28, %v1671_v30  ;;  %v1718_v20 = vmul.f32 %v1685_v48, %v1670_v2  ;;  %v1717_v51 = vmul.f32 %v1680_v62, %v1669_v4  ;;  %v1822_v39 = vpop.permute.xlu1 %1821 }
 0x743   :  { %1895 = vmatpush.msra.mxu3 %v1724_v31 }
 0x744   :  { %v1817_v56 = vpop.permute.xlu2 %1816 }
 0x745   :  { %1896 = vmatpush.msra.mxu3 %v1723_v46 }
 0x746   :  { %v1812_v31 = vpop.permute.xlu0 %1811 }
 0x747   :  { %1897 = vmatpush.msra.mxu3 %v1722_v53 }
 0x749   :  { %1898 = vmatpush.msra.mxu3 %v1721_v63 }
 0x74a   :  { %v1807_v45 = vpop.permute.xlu1 %1806 }
 0x74b   :  { %1899 = vmatpush.msra.mxu3 %v1720_v36 }
 0x74c   :  { %v1802_v53 = vpop.permute.xlu2 %1801 }
 0x74d   :  { %1900 = vmatpush.msra.mxu3 %v1719_v8 }
 0x74e   :  { %v1797_v36 = vpop.permute.xlu0 %1796 }
 0x74f   :  { %1901 = vmatpush.msra.mxu3 %v1718_v20 }
 0x751   :  { %1902 = vmatpush.msra.mxu3 %v1717_v51 }
 0x752   :  { %3513 = vmatmul.msk.f32.vlgmr.msra.gmra.mxu3 %vm448_vm5, %v3481_v37  ;;  %v1792_v4 = vpop.permute.xlu1 %1791 }
 0x75a   :  { %3514 = vmatmul.msk.f32.gmra.mxu3 %vm448_vm5, %v3482_v57 }
 0x762   :  { %3515 = vmatmul.msk.f32.gmra.mxu3 %vm448_vm5, %v3483_v9 }
 0x76a   :  { %3516 = vmatmul.msk.f32.gmra.mxu3 %vm448_vm5, %v3484_v23 }
 0x772   :  { %3517 = vmatmul.msk.f32.gmra.mxu3 %vm448_vm5, %v3485_v21 }
 0x77a   :  { %3518 = vmatmul.msk.f32.gmra.mxu3 %vm448_vm5, %v3486_v38  ;;  %v1787_v38 = vpop.permute.xlu2 %1786 }
 0x782   :  { %3519 = vmatmul.msk.f32.gmra.mxu3 %vm448_vm5, %v3487_v58 }
 0x78a   :  { %3520 = vmatmul.msk.f32.gmra.mxu3 %vm448_vm5, %v3488_v3 }
 0x792   :  { %3521 = vmatmul.msk.f32.gmra.mxu3 %vm448_vm5, %v3489_v44 }
 0x79a   :  { %3522 = vmatmul.msk.f32.gmra.mxu3 %vm448_vm5, %v3490_v14  ;;  %v1782_v14 = vpop.permute.xlu0 %1781 }
 0x7a2   :  { %3523 = vmatmul.msk.f32.gmra.mxu3 %vm448_vm5, %v3491_v42 }
 0x7aa   :  { %3524 = vmatmul.msk.f32.gmra.mxu3 %vm448_vm5, %v3492_v32 }
 0x7b2   :  { %3525 = vmatmul.msk.f32.gmra.mxu3 %vm448_vm5, %v3493_v19 }
 0x7ba   :  { %3526 = vmatmul.msk.f32.gmra.mxu3 %vm448_vm5, %v3494_v50  ;;  %v1777_v50 = vpop.permute.xlu1 %1776 }
 0x7c2   :  { %3527 = vmatmul.msk.f32.gmra.mxu3 %vm448_vm5, %v3495_v55 }
 0x7ca   :  { %3528 = vmatmul.msk.f32.gmra.mxu3 %vm448_vm5, %v3496_v43 }
 0x7d5   :  { %v5271_v35 = vpop.f32.mrf.mxu3 }
 0x7dd   :  { %v5273_v10 = vpop.f32.mrf.mxu3 }
 0x7e5   :  { %v5275_v24 = vpop.f32.mrf.mxu3 }
 0x7ed   :  { %v5277_v49 = vpop.f32.mrf.mxu3 }
 0x7f5   :  { %v1916_v13 = vpop.f32.mrf.mxu3 }
 0x7fd   :  { %v1919_v7 = vpop.f32.mrf.mxu3 }
 0x7fe   :  { %v1920_v55 = vadd.f32 %v1919_v7, %v1787_v38 }
 0x805   :  { %v1922_v18 = vpop.f32.mrf.mxu3 }
 0x806   :  { %v1923_v42 = vadd.f32 %v1922_v18, %v1792_v4 }
 0x80d   :  { %v1925_v26 = vpop.f32.mrf.mxu3 }
 0x80e   :  { %v1926_v58 = vadd.f32 %v1925_v26, %v1797_v36  ;;  %v1957_v26 = vmax.f32 %v1920_v55, 0.0  ;;  %v3534_v36 = vld [vmem:[%s5678_s6 + $0xe8] sm:$0xff] }
 0x810   :  { %v1959_v43 = vmax.f32 %v1926_v58, 0.0 }
 0x815   :  { %v1928_v60 = vpop.f32.mrf.mxu3 }
 0x816   :  { %v1929_v9 = vadd.f32 %v1928_v60, %v1802_v53  ;;  %v1958_v60 = vmax.f32 %v1923_v42, 0.0 }
 0x818   :  { %v1960_v32 = vmax.f32 %v1929_v9, 0.0 }
 0x81d   :  { %v1931_v16 = vpop.f32.mrf.mxu3 }
 0x81e   :  { %v1932_v51 = vadd.f32 %v1931_v16, %v1807_v45 }
 0x820   :  { %v1961_v3 = vmax.f32 %v1932_v51, 0.0 }
 0x822   :  { %v1977_v16 = vmul.f32 %v1961_v3, %v1961_v3 }
 0x825   :  { %v1934_v0 = vpop.f32.mrf.mxu3 }
 0x826   :  { %v1935_v48 = vadd.f32 %v1934_v0, %v1812_v31  ;;  %v1917_v0 = vadd.f32 %v1916_v13, %v1782_v14  ;;  %v1762_v13 = vpop.permute.xlu1 %1761 }
 0x827   :  { %v1905_v31 = vadd.f32 %v5271_v35, %v1762_v13  ;;  %v3530_v35 = vld [vmem:[%s5678_s6 + $0xc8] sm:$0xff] }
 0x828   :  { %v1962_v23 = vmax.f32 %v1935_v48, 0.0 }
 0x82a   :  { %v1978_v19 = vmul.f32 %v1962_v23, %v1962_v23 }
 0x82d   :  { %v1937_v33 = vpop.f32.mrf.mxu3 }
 0x82e   :  { %v1938_v2 = vadd.f32 %v1937_v33, %v1817_v56  ;;  %v1976_v33 = vmul.f32 %v1960_v32, %v1960_v32 }
 0x830   :  { %v1963_v37 = vmax.f32 %v1938_v2, 0.0  ;;  %v3535_v2 = vld [vmem:[%s5678_s6 + $0xf0] sm:$0xff] }
 0x832   :  { %v1979_v44 = vmul.f32 %v1963_v37, %v1963_v37 }
 0x835   :  { %v1940_v11 = vpop.f32.mrf.mxu3 }
 0x836   :  { %v1941_v22 = vadd.f32 %v1940_v11, %v1822_v39  ;;  %v1975_v11 = vmul.f32 %v1959_v43, %v1959_v43  ;;  %v1767_v39 = vpop.permute.xlu0 %1766 }
 0x837   :  { %v1908_v7 = vadd.f32 %v5273_v10, %v1767_v39  ;;  %v3529_v10 = vld [vmem:[%s5678_s6 + $0xc0] sm:$0xff] }
 0x838   :  { %v1964_v20 = vmax.f32 %v1941_v22, 0.0  ;;  %v3531_v22 = vld [vmem:[%s5678_s6 + $0xd0] sm:$0xff] }
 0x83a   :  { %v1980_v21 = vmul.f32 %v1964_v20, %v1964_v20 }
 0x83d   :  { %v1943_v12 = vpop.f32.mrf.mxu3 }
 0x83e   :  { %v1944_v61 = vadd.f32 %v1943_v12, %v1827_v6  ;;  %v1956_v6 = vmax.f32 %v1917_v0, 0.0  ;;  %v1974_v12 = vmul.f32 %v1958_v60, %v1958_v60  ;;  %v2010_v37 = vpop.permute.xlu0 %2009 }
 0x840   :  { %v1965_v28 = vmax.f32 %v1944_v61, 0.0  ;;  %v1952_v61 = vmax.f32 %v1905_v31, 0.0 }
 0x842   :  { %v1981_v57 = vmul.f32 %v1965_v28, %v1965_v28  ;;  %v1968_v53 = vmul.f32 %v1952_v61, %v1952_v61  ;;  %v3536_v28 = vld [vmem:[%s5678_s6 + $0xf8] sm:$0xff] }
 0x845   :  { %v1946_v59 = vpop.f32.mrf.mxu3 }
 0x846   :  { %v1947_v1 = vadd.f32 %v1946_v59, %v1832_v25  ;;  %v1772_v25 = vpop.permute.xlu2 %1771  ;;  %v1973_v59 = vmul.f32 %v1957_v26, %v1957_v26  ;;  %v2025_v14 = vpop.permute.xlu0 %2024 }
 0x847   :  { %v1911_v18 = vadd.f32 %v5275_v24, %v1772_v25 }
 0x848   :  { %v1966_v63 = vmax.f32 %v1947_v1, 0.0  ;;  %v1953_v1 = vmax.f32 %v1908_v7, 0.0 }
 0x849   :  { %v1954_v45 = vmax.f32 %v1911_v18, 0.0 }
 0x84a   :  { %v1982_v62 = vmul.f32 %v1966_v63, %v1966_v63  ;;  %v3532_v63 = vld [vmem:[%s5678_s6 + $0xd8] sm:$0xff] }
 0x84b   :  { %v1970_v24 = vmul.f32 %v1954_v45, %v1954_v45 }
 0x84d   :  { %v1949_v46 = vpop.f32.mrf.mxu3 }
 0x84e   :  { %v1950_v15 = vadd.f32 %v1949_v46, %v1837_v40  ;;  %v1914_v40 = vadd.f32 %v5277_v49, %v1777_v50  ;;  %v1972_v49 = vmul.f32 %v1956_v6, %v1956_v6 }
 0x850   :  { %v1967_v30 = vmax.f32 %v1950_v15, 0.0  ;;  %v1955_v56 = vmax.f32 %v1914_v40, 0.0  ;;  %v1969_v15 = vmul.f32 %v1953_v1, %v1953_v1 }
 0x852   :  { %v1983_v8 = vmul.f32 %v1967_v30, %v1967_v30  ;;  %v1971_v46 = vmul.f32 %v1955_v56, %v1955_v56  ;;  %v3533_v30 = vld [vmem:[%s5678_s6 + $0xe0] sm:$0xff] }
 0x854   :  { %2042 = vmatpush.msra.mxu2 %v1983_v8 }
 0x856   :  { %2043 = vmatpush.msra.mxu2 %v1982_v62  ;;  %v2005_v62 = vpop.permute.xlu2 %2004 }
 0x858   :  { %2044 = vmatpush.msra.mxu2 %v1981_v57  ;;  %v2015_v57 = vpop.permute.xlu1 %2014 }
 0x85a   :  { %2045 = vmatpush.msra.mxu2 %v1980_v21 }
 0x85c   :  { %2046 = vmatpush.msra.mxu2 %v1979_v44 }
 0x85e   :  { %2047 = vmatpush.msra.mxu2 %v1978_v19  ;;  %v2020_v9 = vpop.permute.xlu2 %2019 }
 0x860   :  { %2048 = vmatpush.msra.mxu2 %v1977_v16  ;;  %v2030_v50 = vpop.permute.xlu1 %2029 }
 0x862   :  { %2049 = vmatpush.msra.mxu2 %v1976_v33 }
 0x864   :  { %2050 = vmatpush.msra.mxu2 %v1975_v11 }
 0x866   :  { %2051 = vmatpush.msra.mxu2 %v1974_v12  ;;  %v2035_v0 = vpop.permute.xlu2 %2034  ;;  %v2040_v12 = vpop.permute.xlu0 %2039 }
 0x868   :  { %2052 = vmatpush.msra.mxu2 %v1973_v59 }
 0x86a   :  { %2053 = vmatpush.msra.mxu2 %v1972_v49 }
 0x86c   :  { %2054 = vmatpush.msra.mxu2 %v1971_v46 }
 0x86e   :  { %2055 = vmatpush.msra.mxu2 %v1970_v24 }
 0x870   :  { %2056 = vmatpush.msra.mxu2 %v1969_v15 }
 0x872   :  { %2057 = vmatpush.msra.mxu2 %v1968_v53 }
 0x873   :  { %2058 = vmatmul.f32.vlgmr.msra.gmra.mxu2 %v3529_v10 }
 0x87b   :  { %2061 = vmatmul.f32.gmra.mxu2 %v3530_v35 }
 0x883   :  { %2064 = vmatmul.f32.gmra.mxu2 %v3531_v22 }
 0x88b   :  { %2067 = vmatmul.f32.gmra.mxu2 %v3532_v63 }
 0x893   :  { %2070 = vmatmul.f32.gmra.mxu2 %v3533_v30 }
 0x89b   :  { %2073 = vmatmul.f32.gmra.mxu2 %v3534_v36  ;;  %v2174_v36 = vpop.permute.xlu2 %2173 }
 0x8a3   :  { %2076 = vmatmul.f32.gmra.mxu2 %v3535_v2 }
 0x8ab   :  { %2079 = vmatmul.f32.gmra.mxu2 %v3536_v28 }
 0x8f6   :  { %v2059_v8 = vpop.f32.mrf.mxu2 }
 0x8f7   :  { %v2060_v38 = vadd.f32 %v2059_v8, %v2005_v62 }
 0x8f9   :  { %v5311_v42 = vadd.f32 %v2060_v38, %v5162_v41 }
 0x8fb   :  { %v2100_v60 = vmul.f32 %v5311_v42, %v5311_v42 }
 0x8fe   :  { %v2062_v4 = vpop.f32.mrf.mxu2 }
 0x8ff   :  { %v2063_v23 = vadd.f32 %v2062_v4, %v2010_v37 }
 0x901   :  { %v5308_v3 = vadd.f32 %v2063_v23, %v5159_v34  ;;  %v2159_v23 = vpop.permute.xlu2 %2158 }
 0x903   :  { %v2101_v55 = vmul.f32 %v5308_v3, %v5308_v3 }
 0x905   :  { %v2108_v40 = vadd.f32 %v2101_v55, %v2100_v60 }
 0x906   :  { %v2065_v48 = vpop.f32.mrf.mxu2 }
 0x907   :  { %v2066_v58 = vadd.f32 %v2065_v48, %v2015_v57 }
 0x909   :  { %v5314_v32 = vadd.f32 %v2066_v58, %v5165_v27  ;;  %v2144_v60 = vpop.permute.xlu2 %2143 }
 0x90b   :  { %v2102_v41 = vmul.f32 %v5314_v32, %v5314_v32 }
 0x90d   :  { %v2109_v11 = vadd.f32 %v2108_v40, %v2102_v41  ;;  %v3554_v40 = vld [vmem:[%s5674_s4 + $0x208] sm:$0xff] }
 0x90e   :  { %v2068_v20 = vpop.f32.mrf.mxu2 }
 0x90f   :  { %v2069_v44 = vadd.f32 %v2068_v20, %v2020_v9  ;;  %v2169_v20 = vpop.permute.xlu0 %2168 }
 0x911   :  { %v5319_v43 = vadd.f32 %v2069_v44, %v5170_v54 }
 0x913   :  { %v2103_v26 = vmul.f32 %v5319_v43, %v5319_v43 }
 0x915   :  { %v2110_v6 = vadd.f32 %v2109_v11, %v2103_v26  ;;  %v3555_v26 = vld [vmem:[%s5674_s4 + $0x210] sm:$0xff]  ;;  %v3556_v11 = vld [vmem:[%s5674_s4 + $0x218] sm:$0xff] }
 0x916   :  { %v2071_v51 = vpop.f32.mrf.mxu2 }
 0x917   :  { %v2072_v19 = vadd.f32 %v2071_v51, %v2025_v14 }
 0x919   :  { %v5326_v27 = vadd.f32 %v2072_v19, %v5177_v17 }
 0x91b   :  { %v2104_v25 = vmul.f32 %v5326_v27, %v5326_v27 }
 0x91d   :  { %v2111_v7 = vadd.f32 %v2110_v6, %v2104_v25  ;;  %v3557_v25 = vld [vmem:[%s5674_s4 + $0x220] sm:$0xff]  ;;  %v3558_v6 = vld [vmem:[%s5674_s4 + $0x228] sm:$0xff] }
 0x91e   :  { %v2074_v21 = vpop.f32.mrf.mxu2 }
 0x91f   :  { %v2075_v16 = vadd.f32 %v2074_v21, %v2030_v50  ;;  %v2154_v50 = vpop.permute.xlu0 %2153 }
 0x921   :  { %v5331_v54 = vadd.f32 %v2075_v16, %v5182_v29 }
 0x923   :  { %v2105_v17 = vmul.f32 %v5331_v54, %v5331_v54 }
 0x925   :  { %v2112_v29 = vadd.f32 %v2111_v7, %v2105_v17  ;;  %v3559_v17 = vld [vmem:[%s5674_s4 + $0x230] sm:$0xff]  ;;  %v3562_v7 = vld [vmem:[%s5674_s4 + $0x248] sm:$0xff] }
 0x926   :  { %v2077_v34 = vpop.f32.mrf.mxu2 }
 0x927   :  { %v2078_v33 = vadd.f32 %v2077_v34, %v2035_v0 }
 0x929   :  { %v5336_v18 = vadd.f32 %v2078_v33, %v5187_v52  ;;  %v3553_v33 = vld [vmem:[%s5674_s4 + $0x200] sm:$0xff] }
 0x92b   :  { %v2106_v56 = vmul.f32 %v5336_v18, %v5336_v18 }
 0x92d   :  { %v2113_v31 = vadd.f32 %v2112_v29, %v2106_v56  ;;  %v3563_v56 = vld [vmem:[%s5674_s4 + $0x250] sm:$0xff]  ;;  %v3565_v29 = vld [vmem:[%s5674_s4 + $0x260] sm:$0xff] }
 0x92e   :  { %v2080_v39 = vpop.f32.mrf.mxu2 }
 0x92f   :  { %v2081_v59 = vadd.f32 %v2080_v39, %v2040_v12  ;;  %v3560_v12 = vld [vmem:[%s5674_s4 + $0x238] sm:$0xff]  ;;  %v3561_v39 = vld [vmem:[%s5674_s4 + $0x240] sm:$0xff] }
 0x931   :  { %v5343_v13 = vadd.f32 %v2081_v59, %v5194_v5  ;;  %v2179_v5 = vpop.permute.xlu1 %2178  ;;  %v3564_v59 = vld [vmem:[%s5674_s4 + $0x258] sm:$0xff] }
 0x933   :  { %v2107_v52 = vmul.f32 %v5343_v13, %v5343_v13 }
 0x935   :  { %v2114_v45 = vadd.f32 %v2113_v31, %v2107_v52  ;;  %v3566_v31 = vld [vmem:[%s5674_s4 + $0x268] sm:$0xff]  ;;  %v3567_v52 = vld [vmem:[%s5674_s4 + $0x270] sm:$0xff] }
 0x937   :  { %v2115_v49 = vrot.slane %v2114_v45, 4 }
 0x939   :  { %v2116_v1 = vadd.f32 %v2115_v49, %v2114_v45  ;;  %v2164_v37 = vpop.permute.xlu1 %2163  ;;  %v3568_v45 = vld [vmem:[%s5674_s4 + $0x278] sm:$0xff] }
 0x93b   :  { %v2117_v46 = vrot.slane %v2116_v1, 2 }
 0x93d   :  { %v2118_v61 = vadd.f32 %v2117_v46, %v2116_v1 }
 0x93f   :  { %v2119_v24 = vrot.slane %v2118_v61, 1 }
 0x941   :  { %v2120_v15 = vadd.f32 %v2119_v24, %v2118_v61  ;;  %v2149_v0 = vpop.permute.xlu1 %2148 }
 0x943   :  { %v2121_v53 = vmul.f32 %v2120_v15, %v4227_v47 }
 0x945   :  { %v2122_v10 = vadd.f32 1e-05, %v2121_v53 }
 0x947   :  { %3721 = vrsqrt.f32 %v2122_v10  ;;  %vm2129_vm0 = vweird.f32 %v2122_v10 }
 0x94d   :  { %v3722_v35 = vpop.eup %3721 }
 0x94e   :  { %v2124_v22 = vmul.f32 %v3722_v35, %v2122_v10  ;;  %vm2130_vm15 = vweird.f32 %v3722_v35 }
 0x94f   :  { %vm2131_vm1 = vmor %vm2129_vm0, %vm2130_vm15 }
 0x950   :  { %v2125_v63 = vmul.f32 %v3722_v35, %v2124_v22 }
 0x952   :  { %v2126_v30 = vmul.f32 0.5, %v2125_v63 }
 0x954   :  { %v2127_v2 = vsub.f32 1.5, %v2126_v30  ;;  %v2301_v30 = vpop.permute.xlu0 %2300 }
 0x956   :  { %v2128_v28 = vmul.f32 %v3722_v35, %v2127_v2  ;;  %v2296_v2 = vpop.permute.xlu1 %2295 }
 0x958   :  { %v2132_v8 = vsel %vm2131_vm1, %v3722_v35, %v2128_v28  ;;  %v2291_v28 = vpop.permute.xlu2 %2290 }
 0x959   :  { %v2140_v4 = vmul.f32 %v2132_v8, %v5343_v13  ;;  %v2139_v48 = vmul.f32 %v2132_v8, %v5336_v18  ;;  %v2138_v51 = vmul.f32 %v2132_v8, %v5331_v54  ;;  %v2137_v9 = vmul.f32 %v2132_v8, %v5326_v27 }
 0x95a   :  { %v2136_v38 = vmul.f32 %v2132_v8, %v5319_v43  ;;  %v2135_v44 = vmul.f32 %v2132_v8, %v5314_v32  ;;  %v2134_v19 = vmul.f32 %v2132_v8, %v5308_v3  ;;  %v2133_v16 = vmul.f32 %v2132_v8, %v5311_v42 }
 0x95b   :  { %v2188_v62 = vmul.f32 %v2179_v5, %v2140_v4  ;;  %v2187_v57 = vmul.f32 %v2174_v36, %v2139_v48  ;;  %v2186_v21 = vmul.f32 %v2169_v20, %v2138_v51  ;;  %v2185_v58 = vmul.f32 %v2164_v37, %v2137_v9 }
 0x95c   :  { %v2184_v14 = vmul.f32 %v2159_v23, %v2136_v38  ;;  %v2183_v55 = vmul.f32 %v2154_v50, %v2135_v44  ;;  %v2182_v34 = vmul.f32 %v2149_v0, %v2134_v19  ;;  %v2181_v41 = vmul.f32 %v2144_v60, %v2133_v16  ;;  %v2286_v4 = vpop.permute.xlu0 %2285 }
 0x95d   :  { %2359 = vmatpush.msra.mxu1 %v2188_v62 }
 0x95e   :  { %v2281_v48 = vpop.permute.xlu1 %2280 }
 0x95f   :  { %2360 = vmatpush.msra.mxu1 %v2187_v57 }
 0x960   :  { %v2276_v62 = vpop.permute.xlu2 %2275 }
 0x961   :  { %2361 = vmatpush.msra.mxu1 %v2186_v21 }
 0x963   :  { %2362 = vmatpush.msra.mxu1 %v2185_v58 }
 0x964   :  { %v2271_v51 = vpop.permute.xlu0 %2270 }
 0x965   :  { %2363 = vmatpush.msra.mxu1 %v2184_v14 }
 0x966   :  { %v2266_v21 = vpop.permute.xlu1 %2265 }
 0x967   :  { %2364 = vmatpush.msra.mxu1 %v2183_v55 }
 0x968   :  { %v2261_v14 = vpop.permute.xlu2 %2260 }
 0x969   :  { %2365 = vmatpush.msra.mxu1 %v2182_v34 }
 0x96b   :  { %2366 = vmatpush.msra.mxu1 %v2181_v41 }
 0x96c   :  { %3585 = vmatmul.msk.f32.vlgmr.msra.gmra.mxu1 %vm448_vm5, %v3553_v33  ;;  %v2256_v16 = vpop.permute.xlu0 %2255 }
 0x974   :  { %3586 = vmatmul.msk.f32.gmra.mxu1 %vm448_vm5, %v3554_v40 }
 0x97c   :  { %3587 = vmatmul.msk.f32.gmra.mxu1 %vm448_vm5, %v3555_v26 }
 0x984   :  { %3588 = vmatmul.msk.f32.gmra.mxu1 %vm448_vm5, %v3556_v11 }
 0x98c   :  { %3589 = vmatmul.msk.f32.gmra.mxu1 %vm448_vm5, %v3557_v25 }
 0x994   :  { %3590 = vmatmul.msk.f32.gmra.mxu1 %vm448_vm5, %v3558_v6  ;;  %v2251_v6 = vpop.permute.xlu1 %2250 }
 0x99c   :  { %3591 = vmatmul.msk.f32.gmra.mxu1 %vm448_vm5, %v3559_v17 }
 0x9a4   :  { %3592 = vmatmul.msk.f32.gmra.mxu1 %vm448_vm5, %v3560_v12 }
 0x9ac   :  { %3593 = vmatmul.msk.f32.gmra.mxu1 %vm448_vm5, %v3561_v39 }
 0x9b4   :  { %3594 = vmatmul.msk.f32.gmra.mxu1 %vm448_vm5, %v3562_v7  ;;  %v2246_v7 = vpop.permute.xlu2 %2245 }
 0x9bc   :  { %3595 = vmatmul.msk.f32.gmra.mxu1 %vm448_vm5, %v3563_v56 }
 0x9c4   :  { %3596 = vmatmul.msk.f32.gmra.mxu1 %vm448_vm5, %v3564_v59 }
 0x9cc   :  { %3597 = vmatmul.msk.f32.gmra.mxu1 %vm448_vm5, %v3565_v29 }
 0x9d4   :  { %3598 = vmatmul.msk.f32.gmra.mxu1 %vm448_vm5, %v3566_v31  ;;  %v2241_v31 = vpop.permute.xlu0 %2240 }
 0x9dc   :  { %3599 = vmatmul.msk.f32.gmra.mxu1 %vm448_vm5, %v3567_v52 }
 0x9e4   :  { %3600 = vmatmul.msk.f32.gmra.mxu1 %vm448_vm5, %v3568_v45 }
 0x9e9   :  { %v5420_v49 = vpop.f32.mrf.mxu1 }
 0x9f1   :  { %v5422_v1 = vpop.f32.mrf.mxu1 }
 0x9f9   :  { %v5424_v46 = vpop.f32.mrf.mxu1 }
 0xa01   :  { %v5426_v61 = vpop.f32.mrf.mxu1 }
 0xa09   :  { %v2380_v24 = vpop.f32.mrf.mxu1 }
 0xa11   :  { %v2383_v15 = vpop.f32.mrf.mxu1 }
 0xa12   :  { %v2384_v52 = vadd.f32 %v2383_v15, %v2251_v6 }
 0xa19   :  { %v2386_v53 = vpop.f32.mrf.mxu1 }
 0xa1a   :  { %v2387_v56 = vadd.f32 %v2386_v53, %v2256_v16 }
 0xa21   :  { %v2389_v10 = vpop.f32.mrf.mxu1 }
 0xa22   :  { %v2390_v17 = vadd.f32 %v2389_v10, %v2261_v14  ;;  %v2421_v10 = vmax.f32 %v2384_v52, 0.0  ;;  %v3606_v14 = vld [vmem:[%s5678_s6 + $0x128] sm:$0xff] }
 0xa24   :  { %v2423_v45 = vmax.f32 %v2390_v17, 0.0 }
 0xa29   :  { %v2392_v35 = vpop.f32.mrf.mxu1 }
 0xa2a   :  { %v2393_v26 = vadd.f32 %v2392_v35, %v2266_v21  ;;  %v2422_v35 = vmax.f32 %v2387_v56, 0.0 }
 0xa2c   :  { %v2424_v59 = vmax.f32 %v2393_v26, 0.0 }
 0xa31   :  { %v2395_v22 = vpop.f32.mrf.mxu1 }
 0xa32   :  { %v2396_v41 = vadd.f32 %v2395_v22, %v2271_v51 }
 0xa34   :  { %v2425_v12 = vmax.f32 %v2396_v41, 0.0 }
 0xa36   :  { %v2441_v22 = vmul.f32 %v2425_v12, %v2425_v12 }
 0xa39   :  { %v2398_v63 = vpop.f32.mrf.mxu1 }
 0xa3a   :  { %v2399_v0 = vadd.f32 %v2398_v63, %v2276_v62  ;;  %v2381_v63 = vadd.f32 %v2380_v24, %v2246_v7  ;;  %v2226_v24 = vpop.permute.xlu0 %2225 }
 0xa3b   :  { %v2369_v62 = vadd.f32 %v5420_v49, %v2226_v24  ;;  %v3602_v49 = vld [vmem:[%s5678_s6 + $0x108] sm:$0xff] }
 0xa3c   :  { %v2426_v11 = vmax.f32 %v2399_v0, 0.0 }
 0xa3e   :  { %v2442_v29 = vmul.f32 %v2426_v11, %v2426_v11 }
 0xa41   :  { %v2401_v5 = vpop.f32.mrf.mxu1 }
 0xa42   :  { %v2402_v19 = vadd.f32 %v2401_v5, %v2281_v48  ;;  %v2440_v5 = vmul.f32 %v2424_v59, %v2424_v59 }
 0xa44   :  { %v2427_v33 = vmax.f32 %v2402_v19, 0.0  ;;  %v3607_v19 = vld [vmem:[%s5678_s6 + $0x130] sm:$0xff] }
 0xa46   :  { %v2443_v39 = vmul.f32 %v2427_v33, %v2427_v33 }
 0xa49   :  { %v2404_v36 = vpop.f32.mrf.mxu1 }
 0xa4a   :  { %v2405_v38 = vadd.f32 %v2404_v36, %v2286_v4  ;;  %v2439_v36 = vmul.f32 %v2423_v45, %v2423_v45  ;;  %v2231_v4 = vpop.permute.xlu2 %2230 }
 0xa4b   :  { %v2372_v15 = vadd.f32 %v5422_v1, %v2231_v4  ;;  %v3601_v1 = vld [vmem:[%s5678_s6 + $0x100] sm:$0xff] }
 0xa4c   :  { %v2428_v34 = vmax.f32 %v2405_v38, 0.0  ;;  %v3603_v38 = vld [vmem:[%s5678_s6 + $0x110] sm:$0xff] }
 0xa4e   :  { %v2444_v25 = vmul.f32 %v2428_v34, %v2428_v34 }
 0xa51   :  { %v2407_v8 = vpop.f32.mrf.mxu1 }
 0xa52   :  { %v2408_v9 = vadd.f32 %v2407_v8, %v2291_v28  ;;  %v2420_v28 = vmax.f32 %v2381_v63, 0.0  ;;  %v2438_v8 = vmul.f32 %v2422_v35, %v2422_v35  ;;  %v2474_v33 = vpop.permute.xlu2 %2473 }
 0xa54   :  { %v2429_v50 = vmax.f32 %v2408_v9, 0.0  ;;  %v2416_v9 = vmax.f32 %v2369_v62, 0.0 }
 0xa56   :  { %v2445_v40 = vmul.f32 %v2429_v50, %v2429_v50  ;;  %v2432_v21 = vmul.f32 %v2416_v9, %v2416_v9  ;;  %v3608_v50 = vld [vmem:[%s5678_s6 + $0x138] sm:$0xff] }
 0xa59   :  { %v2410_v20 = vpop.f32.mrf.mxu1 }
 0xa5a   :  { %v2411_v37 = vadd.f32 %v2410_v20, %v2296_v2  ;;  %v2236_v2 = vpop.permute.xlu1 %2235  ;;  %v2437_v20 = vmul.f32 %v2421_v10, %v2421_v10  ;;  %v2489_v7 = vpop.permute.xlu2 %2488 }
 0xa5b   :  { %v2375_v53 = vadd.f32 %v5424_v46, %v2236_v2 }
 0xa5c   :  { %v2430_v58 = vmax.f32 %v2411_v37, 0.0  ;;  %v2417_v37 = vmax.f32 %v2372_v15, 0.0 }
 0xa5d   :  { %v2418_v51 = vmax.f32 %v2375_v53, 0.0 }
 0xa5e   :  { %v2446_v60 = vmul.f32 %v2430_v58, %v2430_v58  ;;  %v3604_v58 = vld [vmem:[%s5678_s6 + $0x118] sm:$0xff] }
 0xa5f   :  { %v2434_v46 = vmul.f32 %v2418_v51, %v2418_v51 }
 0xa61   :  { %v2413_v57 = vpop.f32.mrf.mxu1 }
 0xa62   :  { %v2414_v23 = vadd.f32 %v2413_v57, %v2301_v30  ;;  %v2378_v30 = vadd.f32 %v5426_v61, %v2241_v31  ;;  %v2436_v61 = vmul.f32 %v2420_v28, %v2420_v28 }
 0xa64   :  { %v2431_v44 = vmax.f32 %v2414_v23, 0.0  ;;  %v2419_v48 = vmax.f32 %v2378_v30, 0.0  ;;  %v2433_v23 = vmul.f32 %v2417_v37, %v2417_v37 }
 0xa66   :  { %v2447_v55 = vmul.f32 %v2431_v44, %v2431_v44  ;;  %v2435_v57 = vmul.f32 %v2419_v48, %v2419_v48  ;;  %v3605_v44 = vld [vmem:[%s5678_s6 + $0x120] sm:$0xff] }
 0xa68   :  { %2506 = vmatpush.msrb.mxu2 %v2447_v55 }
 0xa6a   :  { %2507 = vmatpush.msrb.mxu2 %v2446_v60  ;;  %v2469_v60 = vpop.permute.xlu1 %2468 }
 0xa6c   :  { %2508 = vmatpush.msrb.mxu2 %v2445_v40  ;;  %v2479_v40 = vpop.permute.xlu0 %2478 }
 0xa6e   :  { %2509 = vmatpush.msrb.mxu2 %v2444_v25 }
 0xa70   :  { %2510 = vmatpush.msrb.mxu2 %v2443_v39 }
 0xa72   :  { %2511 = vmatpush.msrb.mxu2 %v2442_v29  ;;  %v2484_v26 = vpop.permute.xlu1 %2483 }
 0xa74   :  { %2512 = vmatpush.msrb.mxu2 %v2441_v22  ;;  %v2494_v31 = vpop.permute.xlu0 %2493 }
 0xa76   :  { %2513 = vmatpush.msrb.mxu2 %v2440_v5 }
 0xa78   :  { %2514 = vmatpush.msrb.mxu2 %v2439_v36 }
 0xa7a   :  { %2515 = vmatpush.msrb.mxu2 %v2438_v8  ;;  %v2499_v63 = vpop.permute.xlu1 %2498  ;;  %v2504_v8 = vpop.permute.xlu2 %2503 }
 0xa7c   :  { %2516 = vmatpush.msrb.mxu2 %v2437_v20 }
 0xa7e   :  { %2517 = vmatpush.msrb.mxu2 %v2436_v61 }
 0xa80   :  { %2518 = vmatpush.msrb.mxu2 %v2435_v57 }
 0xa82   :  { %2519 = vmatpush.msrb.mxu2 %v2434_v46 }
 0xa84   :  { %2520 = vmatpush.msrb.mxu2 %v2433_v23 }
 0xa86   :  { %2521 = vmatpush.msrb.mxu2 %v2432_v21 }
 0xa87   :  { %2522 = vmatmul.f32.vlgmr.msrb.gmra.mxu2 %v3601_v1 }
 0xa8f   :  { %2525 = vmatmul.f32.gmra.mxu2 %v3602_v49 }
 0xa97   :  { %2528 = vmatmul.f32.gmra.mxu2 %v3603_v38 }
 0xa9f   :  { %2531 = vmatmul.f32.gmra.mxu2 %v3604_v58 }
 0xaa7   :  { %2534 = vmatmul.f32.gmra.mxu2 %v3605_v44 }
 0xaaf   :  { %2537 = vmatmul.f32.gmra.mxu2 %v3606_v14  ;;  %v2638_v14 = vpop.permute.xlu1 %2637 }
 0xab7   :  { %2540 = vmatmul.f32.gmra.mxu2 %v3607_v19 }
 0xabf   :  { %2543 = vmatmul.f32.gmra.mxu2 %v3608_v50 }
 0xb0a   :  { %v2523_v55 = vpop.f32.mrf.mxu2 }
 0xb0b   :  { %v2524_v6 = vadd.f32 %v2523_v55, %v2469_v60 }
 0xb0d   :  { %v5460_v56 = vadd.f32 %v2524_v6, %v5311_v42 }
 0xb0f   :  { %v2564_v35 = vmul.f32 %v5460_v56, %v5460_v56 }
 0xb12   :  { %v2526_v16 = vpop.f32.mrf.mxu2 }
 0xb13   :  { %v2527_v11 = vadd.f32 %v2526_v16, %v2474_v33 }
 0xb15   :  { %v5457_v12 = vadd.f32 %v2527_v11, %v5308_v3  ;;  %v2623_v11 = vpop.permute.xlu1 %2622 }
 0xb17   :  { %v2565_v52 = vmul.f32 %v5457_v12, %v5457_v12 }
 0xb19   :  { %v2572_v30 = vadd.f32 %v2565_v52, %v2564_v35 }
 0xb1a   :  { %v2529_v0 = vpop.f32.mrf.mxu2 }
 0xb1b   :  { %v2530_v17 = vadd.f32 %v2529_v0, %v2479_v40 }
 0xb1d   :  { %v5463_v59 = vadd.f32 %v2530_v17, %v5314_v32  ;;  %v2608_v35 = vpop.permute.xlu1 %2607 }
 0xb1f   :  { %v2566_v42 = vmul.f32 %v5463_v59, %v5463_v59 }
 0xb21   :  { %v2573_v36 = vadd.f32 %v2572_v30, %v2566_v42  ;;  %v3626_v30 = vld [vmem:[%s5674_s4 + $0x288] sm:$0xff] }
 0xb22   :  { %v2532_v34 = vpop.f32.mrf.mxu2 }
 0xb23   :  { %v2533_v39 = vadd.f32 %v2532_v34, %v2484_v26  ;;  %v2633_v34 = vpop.permute.xlu2 %2632 }
 0xb25   :  { %v5468_v45 = vadd.f32 %v2533_v39, %v5319_v43 }
 0xb27   :  { %v2567_v10 = vmul.f32 %v5468_v45, %v5468_v45 }
 0xb29   :  { %v2574_v28 = vadd.f32 %v2573_v36, %v2567_v10  ;;  %v3627_v10 = vld [vmem:[%s5674_s4 + $0x290] sm:$0xff]  ;;  %v3628_v36 = vld [vmem:[%s5674_s4 + $0x298] sm:$0xff] }
 0xb2a   :  { %v2535_v41 = vpop.f32.mrf.mxu2 }
 0xb2b   :  { %v2536_v29 = vadd.f32 %v2535_v41, %v2489_v7 }
 0xb2d   :  { %v5475_v32 = vadd.f32 %v2536_v29, %v5326_v27 }
 0xb2f   :  { %v2568_v2 = vmul.f32 %v5475_v32, %v5475_v32 }
 0xb31   :  { %v2575_v15 = vadd.f32 %v2574_v28, %v2568_v2  ;;  %v3629_v2 = vld [vmem:[%s5674_s4 + $0x2a0] sm:$0xff]  ;;  %v3630_v28 = vld [vmem:[%s5674_s4 + $0x2a8] sm:$0xff] }
 0xb32   :  { %v2538_v25 = vpop.f32.mrf.mxu2 }
 0xb33   :  { %v2539_v22 = vadd.f32 %v2538_v25, %v2494_v31  ;;  %v2618_v31 = vpop.permute.xlu2 %2617 }
 0xb35   :  { %v5480_v43 = vadd.f32 %v2539_v22, %v5331_v54 }
 0xb37   :  { %v2569_v27 = vmul.f32 %v5480_v43, %v5480_v43 }
 0xb39   :  { %v2576_v54 = vadd.f32 %v2575_v15, %v2569_v27  ;;  %v3631_v27 = vld [vmem:[%s5674_s4 + $0x2b0] sm:$0xff]  ;;  %v3634_v15 = vld [vmem:[%s5674_s4 + $0x2c8] sm:$0xff] }
 0xb3a   :  { %v2541_v3 = vpop.f32.mrf.mxu2 }
 0xb3b   :  { %v2542_v5 = vadd.f32 %v2541_v3, %v2499_v63 }
 0xb3d   :  { %v5485_v53 = vadd.f32 %v2542_v5, %v5336_v18  ;;  %v3625_v5 = vld [vmem:[%s5674_s4 + $0x280] sm:$0xff] }
 0xb3f   :  { %v2570_v48 = vmul.f32 %v5485_v53, %v5485_v53 }
 0xb41   :  { %v2577_v62 = vadd.f32 %v2576_v54, %v2570_v48  ;;  %v3635_v48 = vld [vmem:[%s5674_s4 + $0x2d0] sm:$0xff]  ;;  %v3637_v54 = vld [vmem:[%s5674_s4 + $0x2e0] sm:$0xff] }
 0xb42   :  { %v2544_v4 = vpop.f32.mrf.mxu2 }
 0xb43   :  { %v2545_v20 = vadd.f32 %v2544_v4, %v2504_v8  ;;  %v3632_v8 = vld [vmem:[%s5674_s4 + $0x2b8] sm:$0xff]  ;;  %v3633_v4 = vld [vmem:[%s5674_s4 + $0x2c0] sm:$0xff] }
 0xb45   :  { %v5492_v24 = vadd.f32 %v2545_v20, %v5343_v13  ;;  %v2643_v13 = vpop.permute.xlu0 %2642  ;;  %v3636_v20 = vld [vmem:[%s5674_s4 + $0x2d8] sm:$0xff] }
 0xb47   :  { %v2571_v18 = vmul.f32 %v5492_v24, %v5492_v24 }
 0xb49   :  { %v2578_v51 = vadd.f32 %v2577_v62, %v2571_v18  ;;  %v3638_v62 = vld [vmem:[%s5674_s4 + $0x2e8] sm:$0xff]  ;;  %v3639_v18 = vld [vmem:[%s5674_s4 + $0x2f0] sm:$0xff] }
 0xb4b   :  { %v2579_v61 = vrot.slane %v2578_v51, 4 }
 0xb4d   :  { %v2580_v37 = vadd.f32 %v2579_v61, %v2578_v51  ;;  %v2628_v33 = vpop.permute.xlu0 %2627  ;;  %v3640_v51 = vld [vmem:[%s5674_s4 + $0x2f8] sm:$0xff] }
 0xb4f   :  { %v2581_v57 = vrot.slane %v2580_v37, 2 }
 0xb51   :  { %v2582_v9 = vadd.f32 %v2581_v57, %v2580_v37 }
 0xb53   :  { %v2583_v46 = vrot.slane %v2582_v9, 1 }
 0xb55   :  { %v2584_v23 = vadd.f32 %v2583_v46, %v2582_v9  ;;  %v2613_v63 = vpop.permute.xlu0 %2612 }
 0xb57   :  { %v2585_v21 = vmul.f32 %v2584_v23, %v4227_v47 }
 0xb59   :  { %v2586_v1 = vadd.f32 1e-05, %v2585_v21 }
 0xb5b   :  { %3723 = vrsqrt.f32 %v2586_v1  ;;  %vm2593_vm3 = vweird.f32 %v2586_v1 }
 0xb61   :  { %v3724_v49 = vpop.eup %3723 }
 0xb62   :  { %v2588_v38 = vmul.f32 %v3724_v49, %v2586_v1  ;;  %vm2594_vm2 = vweird.f32 %v3724_v49 }
 0xb63   :  { %vm2595_vm4 = vmor %vm2593_vm3, %vm2594_vm2 }
 0xb64   :  { %v2589_v58 = vmul.f32 %v3724_v49, %v2588_v38 }
 0xb66   :  { %v2590_v44 = vmul.f32 0.5, %v2589_v58 }
 0xb68   :  { %v2591_v19 = vsub.f32 1.5, %v2590_v44  ;;  %v2765_v44 = vpop.permute.xlu2 %2764 }
 0xb6a   :  { %v2592_v50 = vmul.f32 %v3724_v49, %v2591_v19  ;;  %v2760_v19 = vpop.permute.xlu0 %2759 }
 0xb6c   :  { %v2596_v55 = vsel %vm2595_vm4, %v3724_v49, %v2592_v50  ;;  %v2755_v50 = vpop.permute.xlu1 %2754 }
 0xb6d   :  { %v2604_v16 = vmul.f32 %v2596_v55, %v5492_v24  ;;  %v2603_v0 = vmul.f32 %v2596_v55, %v5485_v53  ;;  %v2602_v41 = vmul.f32 %v2596_v55, %v5480_v43  ;;  %v2601_v26 = vmul.f32 %v2596_v55, %v5475_v32 }
 0xb6e   :  { %v2600_v6 = vmul.f32 %v2596_v55, %v5468_v45  ;;  %v2599_v39 = vmul.f32 %v2596_v55, %v5463_v59  ;;  %v2598_v29 = vmul.f32 %v2596_v55, %v5457_v12  ;;  %v2597_v22 = vmul.f32 %v2596_v55, %v5460_v56 }
 0xb6f   :  { %v2652_v60 = vmul.f32 %v2643_v13, %v2604_v16  ;;  %v2651_v40 = vmul.f32 %v2638_v14, %v2603_v0  ;;  %v2650_v25 = vmul.f32 %v2633_v34, %v2602_v41  ;;  %v2649_v17 = vmul.f32 %v2628_v33, %v2601_v26 }
 0xb70   :  { %v2648_v7 = vmul.f32 %v2623_v11, %v2600_v6  ;;  %v2647_v52 = vmul.f32 %v2618_v31, %v2599_v39  ;;  %v2646_v3 = vmul.f32 %v2613_v63, %v2598_v29  ;;  %v2645_v42 = vmul.f32 %v2608_v35, %v2597_v22  ;;  %v2750_v16 = vpop.permute.xlu2 %2749 }
 0xb71   :  { %2823 = vmatpush.msra.mxu0 %v2652_v60 }
 0xb72   :  { %v2745_v0 = vpop.permute.xlu0 %2744 }
 0xb73   :  { %2824 = vmatpush.msra.mxu0 %v2651_v40 }
 0xb74   :  { %v2740_v60 = vpop.permute.xlu1 %2739 }
 0xb75   :  { %2825 = vmatpush.msra.mxu0 %v2650_v25 }
 0xb77   :  { %2826 = vmatpush.msra.mxu0 %v2649_v17 }
 0xb78   :  { %v2735_v41 = vpop.permute.xlu2 %2734 }
 0xb79   :  { %2827 = vmatpush.msra.mxu0 %v2648_v7 }
 0xb7a   :  { %v2730_v25 = vpop.permute.xlu0 %2729 }
 0xb7b   :  { %2828 = vmatpush.msra.mxu0 %v2647_v52 }
 0xb7c   :  { %v2725_v7 = vpop.permute.xlu1 %2724 }
 0xb7d   :  { %2829 = vmatpush.msra.mxu0 %v2646_v3 }
 0xb7f   :  { %2830 = vmatpush.msra.mxu0 %v2645_v42 }
 0xb80   :  { %3657 = vmatmul.msk.f32.vlgmr.msra.gmra.mxu0 %vm448_vm5, %v3625_v5  ;;  %v2720_v22 = vpop.permute.xlu2 %2719 }
 0xb88   :  { %3658 = vmatmul.msk.f32.gmra.mxu0 %vm448_vm5, %v3626_v30 }
 0xb90   :  { %3659 = vmatmul.msk.f32.gmra.mxu0 %vm448_vm5, %v3627_v10 }
 0xb98   :  { %3660 = vmatmul.msk.f32.gmra.mxu0 %vm448_vm5, %v3628_v36 }
 0xba0   :  { %3661 = vmatmul.msk.f32.gmra.mxu0 %vm448_vm5, %v3629_v2 }
 0xba8   :  { %3662 = vmatmul.msk.f32.gmra.mxu0 %vm448_vm5, %v3630_v28  ;;  %v2715_v28 = vpop.permute.xlu0 %2714 }
 0xbb0   :  { %3663 = vmatmul.msk.f32.gmra.mxu0 %vm448_vm5, %v3631_v27 }
 0xbb8   :  { %3664 = vmatmul.msk.f32.gmra.mxu0 %vm448_vm5, %v3632_v8 }
 0xbc0   :  { %3665 = vmatmul.msk.f32.gmra.mxu0 %vm448_vm5, %v3633_v4 }
 0xbc8   :  { %3666 = vmatmul.msk.f32.gmra.mxu0 %vm448_vm5, %v3634_v15  ;;  %v2710_v15 = vpop.permute.xlu1 %2709 }
 0xbd0   :  { %3667 = vmatmul.msk.f32.gmra.mxu0 %vm448_vm5, %v3635_v48 }
 0xbd8   :  { %3668 = vmatmul.msk.f32.gmra.mxu0 %vm448_vm5, %v3636_v20 }
 0xbe0   :  { %3669 = vmatmul.msk.f32.gmra.mxu0 %vm448_vm5, %v3637_v54 }
 0xbe8   :  { %3670 = vmatmul.msk.f32.gmra.mxu0 %vm448_vm5, %v3638_v62  ;;  %v2705_v62 = vpop.permute.xlu2 %2704 }
 0xbf0   :  { %3671 = vmatmul.msk.f32.gmra.mxu0 %vm448_vm5, %v3639_v18 }
 0xbf8   :  { %3672 = vmatmul.msk.f32.gmra.mxu0 %vm448_vm5, %v3640_v51 }
 0xbfd   :  { %v5569_v61 = vpop.f32.mrf.mxu0 }
 0xc05   :  { %v5571_v37 = vpop.f32.mrf.mxu0 }
 0xc0d   :  { %v5573_v57 = vpop.f32.mrf.mxu0 }
 0xc15   :  { %v5575_v9 = vpop.f32.mrf.mxu0 }
 0xc1d   :  { %v2844_v46 = vpop.f32.mrf.mxu0 }
 0xc25   :  { %v2847_v23 = vpop.f32.mrf.mxu0 }
 0xc26   :  { %v2848_v18 = vadd.f32 %v2847_v23, %v2715_v28 }
 0xc2d   :  { %v2850_v21 = vpop.f32.mrf.mxu0 }
 0xc2e   :  { %v2851_v48 = vadd.f32 %v2850_v21, %v2720_v22 }
 0xc35   :  { %v2853_v1 = vpop.f32.mrf.mxu0 }
 0xc36   :  { %v2854_v27 = vadd.f32 %v2853_v1, %v2725_v7  ;;  %v2885_v1 = vmax.f32 %v2848_v18, 0.0  ;;  %v3678_v7 = vld [vmem:[%s5678_s6 + $0x168] sm:$0xff] }
 0xc38   :  { %v2887_v51 = vmax.f32 %v2854_v27, 0.0 }
 0xc3d   :  { %v2856_v49 = vpop.f32.mrf.mxu0 }
 0xc3e   :  { %v2857_v10 = vadd.f32 %v2856_v49, %v2730_v25  ;;  %v2886_v49 = vmax.f32 %v2851_v48, 0.0 }
 0xc40   :  { %v2888_v20 = vmax.f32 %v2857_v10, 0.0 }
 0xc45   :  { %v2859_v38 = vpop.f32.mrf.mxu0 }
 0xc46   :  { %v2860_v42 = vadd.f32 %v2859_v38, %v2735_v41 }
 0xc48   :  { %v2889_v8 = vmax.f32 %v2860_v42, 0.0 }
 0xc4a   :  { %v2905_v38 = vmul.f32 %v2889_v8, %v2889_v8 }
 0xc4d   :  { %v2862_v58 = vpop.f32.mrf.mxu0 }
 0xc4e   :  { %v2863_v63 = vadd.f32 %v2862_v58, %v2740_v60  ;;  %v2845_v58 = vadd.f32 %v2844_v46, %v2710_v15  ;;  %v2690_v46 = vpop.permute.xlu2 %2689 }
 0xc4f   :  { %v2833_v60 = vadd.f32 %v5569_v61, %v2690_v46  ;;  %v3674_v61 = vld [vmem:[%s5678_s6 + $0x148] sm:$0xff] }
 0xc50   :  { %v2890_v36 = vmax.f32 %v2863_v63, 0.0 }
 0xc52   :  { %v2906_v54 = vmul.f32 %v2890_v36, %v2890_v36 }
 0xc55   :  { %v2865_v13 = vpop.f32.mrf.mxu0 }
 0xc56   :  { %v2866_v29 = vadd.f32 %v2865_v13, %v2745_v0  ;;  %v2904_v13 = vmul.f32 %v2888_v20, %v2888_v20 }
 0xc58   :  { %v2891_v5 = vmax.f32 %v2866_v29, 0.0  ;;  %v3679_v29 = vld [vmem:[%s5678_s6 + $0x170] sm:$0xff] }
 0xc5a   :  { %v2907_v4 = vmul.f32 %v2891_v5, %v2891_v5 }
 0xc5d   :  { %v2868_v14 = vpop.f32.mrf.mxu0 }
 0xc5e   :  { %v2869_v6 = vadd.f32 %v2868_v14, %v2750_v16  ;;  %v2903_v14 = vmul.f32 %v2887_v51, %v2887_v51  ;;  %v2695_v16 = vpop.permute.xlu1 %2694 }
 0xc5f   :  { %v2836_v23 = vadd.f32 %v5571_v37, %v2695_v16  ;;  %v3673_v37 = vld [vmem:[%s5678_s6 + $0x140] sm:$0xff] }
 0xc60   :  { %v2892_v3 = vmax.f32 %v2869_v6, 0.0  ;;  %v3675_v6 = vld [vmem:[%s5678_s6 + $0x150] sm:$0xff] }
 0xc62   :  { %v2908_v2 = vmul.f32 %v2892_v3, %v2892_v3 }
 0xc65   :  { %v2871_v55 = vpop.f32.mrf.mxu0 }
 0xc66   :  { %v2872_v26 = vadd.f32 %v2871_v55, %v2755_v50  ;;  %v2884_v50 = vmax.f32 %v2845_v58, 0.0  ;;  %v2902_v55 = vmul.f32 %v2886_v49, %v2886_v49  ;;  %v2938_v5 = vpop.permute.xlu1 %2937 }
 0xc68   :  { %v2893_v31 = vmax.f32 %v2872_v26, 0.0  ;;  %v2880_v26 = vmax.f32 %v2833_v60, 0.0 }
 0xc6a   :  { %v2909_v30 = vmul.f32 %v2893_v31, %v2893_v31  ;;  %v2896_v25 = vmul.f32 %v2880_v26, %v2880_v26  ;;  %v3680_v31 = vld [vmem:[%s5678_s6 + $0x178] sm:$0xff] }
 0xc6d   :  { %v2874_v34 = vpop.f32.mrf.mxu0 }
 0xc6e   :  { %v2875_v33 = vadd.f32 %v2874_v34, %v2760_v19  ;;  %v2700_v19 = vpop.permute.xlu0 %2699  ;;  %v2901_v34 = vmul.f32 %v2885_v1, %v2885_v1  ;;  %v2953_v15 = vpop.permute.xlu1 %2952 }
 0xc6f   :  { %v2839_v21 = vadd.f32 %v5573_v57, %v2700_v19 }
 0xc70   :  { %v2894_v17 = vmax.f32 %v2875_v33, 0.0  ;;  %v2881_v33 = vmax.f32 %v2836_v23, 0.0 }
 0xc71   :  { %v2882_v41 = vmax.f32 %v2839_v21, 0.0 }
 0xc72   :  { %v2910_v35 = vmul.f32 %v2894_v17, %v2894_v17  ;;  %v3676_v17 = vld [vmem:[%s5678_s6 + $0x158] sm:$0xff] }
 0xc73   :  { %v2898_v57 = vmul.f32 %v2882_v41, %v2882_v41 }
 0xc75   :  { %v2877_v40 = vpop.f32.mrf.mxu0 }
 0xc76   :  { %v2878_v11 = vadd.f32 %v2877_v40, %v2765_v44  ;;  %v2842_v44 = vadd.f32 %v5575_v9, %v2705_v62  ;;  %v2900_v9 = vmul.f32 %v2884_v50, %v2884_v50  ;;  %v2968_v16 = vpop.permute.xlu1 %2967 }
 0xc78   :  { %v2895_v39 = vmax.f32 %v2878_v11, 0.0  ;;  %v2883_v0 = vmax.f32 %v2842_v44, 0.0  ;;  %v2897_v11 = vmul.f32 %v2881_v33, %v2881_v33 }
 0xc7a   :  { %v2911_v52 = vmul.f32 %v2895_v39, %v2895_v39  ;;  %v2899_v40 = vmul.f32 %v2883_v0, %v2883_v0  ;;  %v3677_v39 = vld [vmem:[%s5678_s6 + $0x160] sm:$0xff] }
 0xc7c   :  { %2970 = vmatpush.msrb.mxu3 %v2911_v52 }
 0xc7e   :  { %2971 = vmatpush.msrb.mxu3 %v2910_v35  ;;  %v2933_v35 = vpop.permute.xlu0 %2932 }
 0xc80   :  { %2972 = vmatpush.msrb.mxu3 %v2909_v30  ;;  %v2943_v30 = vpop.permute.xlu2 %2942 }
 0xc82   :  { %2973 = vmatpush.msrb.mxu3 %v2908_v2 }
 0xc84   :  { %2974 = vmatpush.msrb.mxu3 %v2907_v4 }
 0xc86   :  { %2975 = vmatpush.msrb.mxu3 %v2906_v54  ;;  %v2948_v10 = vpop.permute.xlu0 %2947 }
 0xc88   :  { %2976 = vmatpush.msrb.mxu3 %v2905_v38  ;;  %v2958_v62 = vpop.permute.xlu2 %2957 }
 0xc8a   :  { %2977 = vmatpush.msrb.mxu3 %v2904_v13 }
 0xc8c   :  { %2978 = vmatpush.msrb.mxu3 %v2903_v14 }
 0xc8e   :  { %2979 = vmatpush.msrb.mxu3 %v2902_v55  ;;  %v2963_v58 = vpop.permute.xlu0 %2962 }
 0xc90   :  { %2980 = vmatpush.msrb.mxu3 %v2901_v34 }
 0xc92   :  { %2981 = vmatpush.msrb.mxu3 %v2900_v9 }
 0xc94   :  { %2982 = vmatpush.msrb.mxu3 %v2899_v40 }
 0xc96   :  { %2983 = vmatpush.msrb.mxu3 %v2898_v57 }
 0xc98   :  { %2984 = vmatpush.msrb.mxu3 %v2897_v11 }
 0xc9a   :  { %2985 = vmatpush.msrb.mxu3 %v2896_v25 }
 0xc9b   :  { %2986 = vmatmul.f32.vlgmr.msrb.gmra.mxu3 %v3673_v37 }
 0xca3   :  { %2989 = vmatmul.f32.gmra.mxu3 %v3674_v61 }
 0xcab   :  { %2992 = vmatmul.f32.gmra.mxu3 %v3675_v6 }
 0xcb3   :  { %2995 = vmatmul.f32.gmra.mxu3 %v3676_v17 }
 0xcbb   :  { %2998 = vmatmul.f32.gmra.mxu3 %v3677_v39  ;;  %v3106_v39 = vpop.permute.xlu2 %3105 }
 0xcc3   :  { %3001 = vmatmul.f32.gmra.mxu3 %v3678_v7 }
 0xccb   :  { %3004 = vmatmul.f32.gmra.mxu3 %v3679_v29  ;;  %v3101_v29 = vpop.permute.xlu0 %3100 }
 0xcd3   :  { %3007 = vmatmul.f32.gmra.mxu3 %v3680_v31 }
 0xd1e   :  { %v2987_v52 = vpop.f32.mrf.mxu3 }
 0xd1f   :  { %v2988_v28 = vadd.f32 %v2987_v52, %v2933_v35 }
 0xd21   :  { %v5609_v48 = vadd.f32 %v2988_v28, %v5460_v56 }
 0xd26   :  { %v2990_v22 = vpop.f32.mrf.mxu3 }
 0xd27   :  { %v2991_v36 = vadd.f32 %v2990_v22, %v2938_v5 }
 0xd29   :  { %v5606_v8 = vadd.f32 %v2991_v36, %v5457_v12  ;;  %v3027_v12 = vmul.f32 %v5609_v48, %v5609_v48 }
 0xd2b   :  { %v3028_v18 = vmul.f32 %v5606_v8, %v5606_v8 }
 0xd2d   :  { %v3035_v44 = vadd.f32 %v3028_v18, %v3027_v12 }
 0xd2e   :  { %v2993_v63 = vpop.f32.mrf.mxu3 }
 0xd2f   :  { %v2994_v27 = vadd.f32 %v2993_v63, %v2943_v30 }
 0xd31   :  { %v5612_v20 = vadd.f32 %v2994_v27, %v5463_v59 }
 0xd33   :  { %v3029_v56 = vmul.f32 %v5612_v20, %v5612_v20 }
 0xd35   :  { %v3036_v19 = vadd.f32 %v3035_v44, %v3029_v56  ;;  %v3120_v56 = vld [vmem:[%s5679_s9 + $0x20] sm:$0xff]  ;;  %v3123_v44 = vld [vmem:[%s5679_s9 + $0x38] sm:$0xff] }
 0xd36   :  { %v2996_v3 = vpop.f32.mrf.mxu3 }
 0xd37   :  { %v2997_v4 = vadd.f32 %v2996_v3, %v2948_v10  ;;  %v3096_v3 = vpop.permute.xlu1 %3095  ;;  %v3086_v10 = vpop.permute.xlu0 %3085 }
 0xd39   :  { %v3014_v51 = vadd.f32 %v2997_v4, %v5468_v45 }
 0xd3b   :  { %v3030_v1 = vmul.f32 %v3014_v51, %v3014_v51 }
 0xd3d   :  { %v3037_v50 = vadd.f32 %v3036_v19, %v3030_v1 }
 0xd3e   :  { %v2999_v42 = vpop.f32.mrf.mxu3 }
 0xd3f   :  { %v3000_v54 = vadd.f32 %v2999_v42, %v2953_v15 }
 0xd41   :  { %v3015_v13 = vadd.f32 %v3000_v54, %v5475_v32  ;;  %v3081_v54 = vpop.permute.xlu1 %3080 }
 0xd43   :  { %v3031_v21 = vmul.f32 %v3015_v13, %v3015_v13 }
 0xd45   :  { %v3038_v0 = vadd.f32 %v3037_v50, %v3031_v21 }
 0xd46   :  { %v3002_v2 = vpop.f32.mrf.mxu3 }
 0xd47   :  { %v3003_v38 = vadd.f32 %v3002_v2, %v2958_v62 }
 0xd49   :  { %v3016_v14 = vadd.f32 %v3003_v38, %v5480_v43 }
 0xd4b   :  { %v3032_v55 = vmul.f32 %v3016_v14, %v3016_v14 }
 0xd4d   :  { %v3039_v60 = vadd.f32 %v3038_v0, %v3032_v55  ;;  %v3170_v55 = vpop.permute.xlu1 %3169 }
 0xd4e   :  { %v3005_v49 = vpop.f32.mrf.mxu3 }
 0xd4f   :  { %v3006_v59 = vadd.f32 %v3005_v49, %v2963_v58  ;;  %v3071_v49 = vpop.permute.xlu0 %3070 }
 0xd51   :  { %v3017_v45 = vadd.f32 %v3006_v59, %v5485_v53  ;;  %v3122_v59 = vld [vmem:[%s5679_s9 + $0x30] sm:$0xff] }
 0xd53   :  { %v3033_v34 = vmul.f32 %v3017_v45, %v3017_v45 }
 0xd55   :  { %v3040_v32 = vadd.f32 %v3039_v60, %v3033_v34  ;;  %v3155_v34 = vpop.permute.xlu1 %3154 }
 0xd56   :  { %v3008_v23 = vpop.f32.mrf.mxu3 }
 0xd57   :  { %v3009_v46 = vadd.f32 %v3008_v23, %v2968_v16  ;;  %v3160_v0 = vpop.permute.xlu0 %3159 }
 0xd59   :  { %v3018_v41 = vadd.f32 %v3009_v46, %v5492_v24 }
 0xd5b   :  { %v3034_v9 = vmul.f32 %v3018_v41, %v3018_v41 }
 0xd5d   :  { %v3041_v33 = vadd.f32 %v3040_v32, %v3034_v9 }
 0xd5f   :  { %v3042_v40 = vrot.slane %v3041_v33, 4 }
 0xd61   :  { %v3043_v26 = vadd.f32 %v3042_v40, %v3041_v33 }
 0xd63   :  { %v3044_v43 = vrot.slane %v3043_v26, 2 }
 0xd65   :  { %v3045_v57 = vadd.f32 %v3044_v43, %v3043_v26 }
 0xd67   :  { %v3046_v11 = vrot.slane %v3045_v57, 1 }
 0xd69   :  { %v3047_v25 = vadd.f32 %v3046_v11, %v3045_v57 }
 0xd6b   :  { %v3048_v53 = vmul.f32 %v3047_v25, %v4227_v47  ;;  %v3091_v47 = vpop.permute.xlu2 %3090  ;;  %v3145_v25 = vpop.permute.xlu0 %3144 }
 0xd6d   :  { %v3049_v37 = vadd.f32 1.1920929e-07, %v3048_v53 }
 0xd6f   :  { %3725 = vrsqrt.f32 %v3049_v37  ;;  %vm3056_vm7 = vweird.f32 %v3049_v37 }
 0xd73   :  { %v3076_v38 = vpop.permute.xlu2 %3075 }
 0xd75   :  { %v3726_v61 = vpop.eup %3725 }
 0xd76   :  { %v3051_v6 = vmul.f32 %v3726_v61, %v3049_v37  ;;  %vm3057_vm6 = vweird.f32 %v3726_v61 }
 0xd77   :  { %vm3058_vm8 = vmor %vm3056_vm7, %vm3057_vm6 }
 0xd78   :  { %v3052_v17 = vmul.f32 %v3726_v61, %v3051_v6  ;;  %v3140_v6 = vpop.permute.xlu1 %3139 }
 0xd7a   :  { %v3053_v7 = vmul.f32 0.5, %v3052_v17 }
 0xd7b   :  { %v3165_v16 = vpop.permute.xlu2 %3164 }
 0xd7c   :  { %v3054_v24 = vsub.f32 1.5, %v3053_v7 }
 0xd7e   :  { %v3055_v31 = vmul.f32 %v3726_v61, %v3054_v24 }
 0xd80   :  { %v3059_v52 = vsel %vm3058_vm8, %v3726_v61, %v3055_v31 }
 0xd81   :  { %v3067_v22 = vmul.f32 %v3059_v52, %v3018_v41  ;;  %v3066_v63 = vmul.f32 %v3059_v52, %v3017_v45  ;;  %v3065_v42 = vmul.f32 %v3059_v52, %v3016_v14  ;;  %v3064_v30 = vmul.f32 %v3059_v52, %v3015_v13  ;;  %v3121_v13 = vld [vmem:[%s5679_s9 + $0x28] sm:$0xff] }
 0xd82   :  { %v3063_v2 = vmul.f32 %v3059_v52, %v3014_v51  ;;  %v3062_v27 = vmul.f32 %v3059_v52, %v5612_v20  ;;  %v3061_v15 = vmul.f32 %v3059_v52, %v5606_v8  ;;  %v3060_v18 = vmul.f32 %v3059_v52, %v5609_v48  ;;  %v3116_v51 = vld [vmem:[%s5679_s9] sm:$0xff]  ;;  %v3117_v8 = vld [vmem:[%s5679_s9 + $0x8] sm:$0xff]  ;;  %v3118_v48 = vld [vmem:[%s5679_s9 + $0x10] sm:$0xff] }
 0xd83   :  { %v3115_v35 = vmul.f32 %v3106_v39, %v3067_v22  ;;  %v3114_v5 = vmul.f32 %v3101_v29, %v3066_v63  ;;  %v3113_v36 = vmul.f32 %v3096_v3, %v3065_v42  ;;  %v3112_v28 = vmul.f32 %v3091_v47, %v3064_v30  ;;  %v3119_v20 = vld [vmem:[%s5679_s9 + $0x18] sm:$0xff]  ;;  %v3150_v60 = vpop.permute.xlu2 %3149  ;;  %v3258_v30 = vpop.permute.xlu0 %3257 }
 0xd84   :  { %v3111_v4 = vmul.f32 %v3086_v10, %v3063_v2  ;;  %v3110_v62 = vmul.f32 %v3081_v54, %v3062_v27  ;;  %v3109_v58 = vmul.f32 %v3076_v38, %v3061_v15  ;;  %v3108_v12 = vmul.f32 %v3071_v49, %v3060_v18 }
 0xd85   :  { %3204 = vmatpush.msra.mxu2 %v3115_v35  ;;  %v3260_v10 = vperm.slane %v3258_v30, 0 }
 0xd87   :  { %3205 = vmatpush.msra.mxu2 %v3114_v5  ;;  %v3253_v5 = vld [vmem:[%s5680_s11] sm:$0x1] }
 0xd89   :  { %3206 = vmatpush.msra.mxu2 %v3113_v36 }
 0xd8b   :  { %3207 = vmatpush.msra.mxu2 %v3112_v28  ;;  %v3135_v29 = vpop.permute.xlu2 %3134 }
 0xd8d   :  { %3208 = vmatpush.msra.mxu2 %v3111_v4 }
 0xd8f   :  { %3209 = vmatpush.msra.mxu2 %v3110_v62 }
 0xd91   :  { %3210 = vmatpush.msra.mxu2 %v3109_v58 }
 0xd93   :  { %3211 = vmatpush.msra.mxu2 %v3108_v12 }
 0xd94   :  { %3689 = vmatmul.msk.f32.vlgmr.msra.gmra.mxu2 %vm448_vm5, %v3116_v51 }
 0xd9c   :  { %3690 = vmatmul.msk.f32.gmra.mxu2 %vm448_vm5, %v3117_v8 }
 0xda4   :  { %3691 = vmatmul.msk.f32.gmra.mxu2 %vm448_vm5, %v3118_v48 }
 0xdac   :  { %3692 = vmatmul.msk.f32.gmra.mxu2 %vm448_vm5, %v3119_v20 }
 0xdb4   :  { %3693 = vmatmul.msk.f32.gmra.mxu2 %vm448_vm5, %v3120_v56 }
 0xdbc   :  { %3694 = vmatmul.msk.f32.gmra.mxu2 %vm448_vm5, %v3121_v13 }
 0xdc4   :  { %3695 = vmatmul.msk.f32.gmra.mxu2 %vm448_vm5, %v3122_v59 }
 0xdcc   :  { %3696 = vmatmul.msk.f32.gmra.mxu2 %vm448_vm5, %v3123_v44 }
 0xe17   :  { %v3213_v1 = vpop.f32.mrf.mxu2 }
 0xe18   :  { %v3214_v24 = vadd.f32 %v3213_v1, %v3135_v29 }
 0xe1a   :  { %v3237_v3 = vmax.f32 %v3214_v24, 0.0 }
 0xe1c   :  { %v3245_v47 = vmul.f32 %v3237_v3, %v3237_v3 }
 0xe1f   :  { %v3216_v14 = vpop.f32.mrf.mxu2 }
 0xe20   :  { %v3217_v17 = vadd.f32 %v3216_v14, %v3140_v6 }
 0xe22   :  { %v3238_v22 = vmax.f32 %v3217_v17, 0.0 }
 0xe24   :  { %v3246_v42 = vmul.f32 %v3238_v22, %v3238_v22 }
 0xe27   :  { %v3219_v19 = vpop.f32.mrf.mxu2 }
 0xe28   :  { %v3220_v53 = vadd.f32 %v3219_v19, %v3145_v25 }
 0xe2a   :  { %v3239_v31 = vmax.f32 %v3220_v53, 0.0 }
 0xe2c   :  { %v3247_v35 = vmul.f32 %v3239_v31, %v3239_v31 }
 0xe2f   :  { %v3222_v21 = vpop.f32.mrf.mxu2 }
 0xe30   :  { %v3223_v43 = vadd.f32 %v3222_v21, %v3150_v60 }
 0xe32   :  { %v3240_v39 = vmax.f32 %v3223_v43, 0.0 }
 0xe34   :  { %v3248_v63 = vmul.f32 %v3240_v39, %v3240_v39 }
 0xe37   :  { %v3225_v45 = vpop.f32.mrf.mxu2 }
 0xe38   :  { %v3226_v33 = vadd.f32 %v3225_v45, %v3155_v34 }
 0xe3a   :  { %v3241_v37 = vmax.f32 %v3226_v33, 0.0 }
 0xe3c   :  { %v3249_v52 = vmul.f32 %v3241_v37, %v3241_v37 }
 0xe3f   :  { %v3228_v50 = vpop.f32.mrf.mxu2 }
 0xe40   :  { %v3229_v32 = vadd.f32 %v3228_v50, %v3160_v0 }
 0xe42   :  { %v3242_v57 = vmax.f32 %v3229_v32, 0.0 }
 0xe44   :  { %v3250_v7 = vmul.f32 %v3242_v57, %v3242_v57 }
 0xe47   :  { %v3231_v23 = vpop.f32.mrf.mxu2 }
 0xe48   :  { %v3232_v46 = vadd.f32 %v3231_v23, %v3165_v16 }
 0xe4a   :  { %v3243_v40 = vmax.f32 %v3232_v46, 0.0 }
 0xe4c   :  { %v3251_v61 = vmul.f32 %v3243_v40, %v3243_v40 }
 0xe4f   :  { %v3234_v41 = vpop.f32.mrf.mxu2 }
 0xe50   :  { %v3235_v9 = vadd.f32 %v3234_v41, %v3170_v55 }
 0xe52   :  { %v3244_v26 = vmax.f32 %v3235_v9, 0.0 }
 0xe54   :  { %v3252_v11 = vmul.f32 %v3244_v26, %v3244_v26 }
 0xe56   :  { %3272 = vmatpush.msrb.mxu1 %v3252_v11 }
 0xe58   :  { %3273 = vmatpush.msrb.mxu1 %v3251_v61 }
 0xe5a   :  { %3274 = vmatpush.msrb.mxu1 %v3250_v7 }
 0xe5c   :  { %3275 = vmatpush.msrb.mxu1 %v3249_v52 }
 0xe5e   :  { %3276 = vmatpush.msrb.mxu1 %v3248_v63 }
 0xe60   :  { %3277 = vmatpush.msrb.mxu1 %v3247_v35 }
 0xe62   :  { %3278 = vmatpush.msrb.mxu1 %v3246_v42 }
 0xe64   :  { %3279 = vmatpush.msrb.mxu1 %v3245_v47 }
 0xe65   :  { %3697 = vmatmul.msk.f32.vlgmr.msrb.gmra.mxu1 %vm448_vm5, %v3253_v5 }
 0xee2   :  { %v3281_v36 = vpop.f32.mrf.mxu1 }
 0xee3   :  { %v3282_v2 = vadd.f32 %v3281_v36, %v3260_v10 }
 0xee5   :  { %3284 = vst [vmem:[%s5681_s13] sm:$0x1] %v3282_v2 }

</bundles_post_ra>
